<compile_context>
chip_gen: v5e
topology: v5e:2x2
jax: 0.10.0
libtpu: 0.0.40
codegen_flags: <defaults>
</compile_context>

<pallas_src>
import jax
import jax.numpy as jnp
import numpy as np
from jax.experimental import pallas as pl
from jax.experimental.pallas import tpu as pltpu

ACTIONS_NUM = 2  # cfg._ACTIONS_NUM for Flappy Bird (flap / no-flap)


# ----------------------------------------------------------------------------
# Constant patch-gather (selection) matrices for conv2 / conv3
# ----------------------------------------------------------------------------
def _build_gather_conv2():
    """(16*32, 128): row 32*t+q selects pooled row for tap t of output q."""
    g = np.zeros((16 * 32, 128), np.float32)
    for qh in range(5):
        for qw in range(5):
            q = 5 * qh + qw
            for i in range(4):
                for j in range(4):
                    t = 4 * i + j
                    ph = 2 * qh + i - 1
                    pw = 2 * qw + j - 1
                    if 0 <= ph < 10 and 0 <= pw < 10:
                        g[32 * t + q, 10 * ph + pw] = 1.0
    return g


def _build_gather_conv3():
    """(9*32, 32): row 32*t+q selects conv2 row for tap t of output q."""
    g = np.zeros((9 * 32, 32), np.float32)
    for qh in range(5):
        for qw in range(5):
            q = 5 * qh + qw
            for i in range(3):
                for j in range(3):
                    t = 3 * i + j
                    sh = qh + i - 1
                    sw = qw + j - 1
                    if 0 <= sh < 5 and 0 <= sw < 5:
                        g[32 * t + q, 5 * sh + sw] = 1.0
    return g


# ----------------------------------------------------------------------------
# Fused forward kernel (one grid step == one batch sample)
# ----------------------------------------------------------------------------
def _net_kernel(col1_ref, w1_ref, b1_ref, gs2_ref, w2_ref, b2_ref,
                gs3_ref, w3_ref, b3_ref, wf1_ref, bf1_ref, wf2_ref, bf2_ref,
                feat_ref, read_ref):
    f32 = jnp.float32
    bf16 = jnp.bfloat16

    # ---- conv1 (im2col matmul) + bias + ReLU --------------------------------
    y1 = jnp.dot(col1_ref[0], w1_ref[...], preferred_element_type=f32)
    y1 = jnp.maximum(y1 + b1_ref[...], 0.0)                     # (512, 32)

    # ---- 2x2/2 max-pool: elementwise max of four aligned 128-row slabs ------
    p = jnp.maximum(jnp.maximum(y1[0:128], y1[128:256]),
                    jnp.maximum(y1[256:384], y1[384:512]))      # (128, 32)
    p = p.astype(bf16)  # rows 0..99 = pooled 10x10 map (row = 10*ph + pw)

    # ---- conv2: one gather matmul + 16 accumulating per-tap matmuls ---------
    cs2 = jnp.dot(gs2_ref[...], p, preferred_element_type=f32).astype(bf16)
    acc = jnp.zeros((32, 64), f32)
    for t in range(16):
        acc = acc + jnp.dot(cs2[32 * t:32 * t + 32], w2_ref[t],
                            preferred_element_type=f32)
    y2 = jnp.maximum(acc + b2_ref[...], 0.0).astype(bf16)       # (32, 64)

    # ---- conv3: one gather matmul + 9 accumulating per-tap matmuls ----------
    cs3 = jnp.dot(gs3_ref[...], y2, preferred_element_type=f32).astype(bf16)
    acc = jnp.zeros((32, 64), f32)
    for t in range(9):
        acc = acc + jnp.dot(cs3[32 * t:32 * t + 32], w3_ref[t],
                            preferred_element_type=f32)
    y3 = jnp.maximum(acc + b3_ref[...], 0.0)                    # (32, 64) f32

    # ---- fc1: contract over the 25 spatial positions (flatten folded into W)
    acc = jnp.zeros((1, 256), f32)
    for q in range(25):
        acc = acc + jnp.dot(y3[q:q + 1, :].astype(bf16), wf1_ref[q],
                            preferred_element_type=f32)
    h = jnp.maximum(acc + bf1_ref[...], 0.0)                    # (1, 256)
    feat_ref[...] = h.reshape(1, 1, 256)

    # ---- fc2 (output channels zero-padded to 128 lanes) ---------------------
    r = jnp.dot(h.astype(bf16), wf2_ref[...], preferred_element_type=f32)
    read_ref[...] = (r + bf2_ref[...]).reshape(1, 1, 128)


# ----------------------------------------------------------------------------
# conv1 im2col with a pool-friendly row order (XLA-side layout glue)
# ----------------------------------------------------------------------------
def build_col1(x_nchw):
    """Rows: 128*(2*(oh%2)+(ow%2)) + (10*(oh//2)+(ow//2)); cols: (ki*8+kj)*4+c."""
    B = x_nchw.shape[0]
    x = jnp.transpose(x_nchw, (0, 2, 3, 1))                     # NHWC (B,80,80,4)
    xp = jnp.pad(x, ((0, 0), (2, 2), (2, 2), (0, 0)))           # (B,84,84,4)
    taps = []
    for ki in range(8):
        for kj in range(8):
            taps.append(xp[:, ki:ki + 77:4, kj:kj + 77:4, :])   # (B,20,20,4)
    col = jnp.stack(taps, axis=3).reshape(B, 20, 20, 256)       # (B,oh,ow,k)
    col = col.reshape(B, 10, 2, 10, 2, 256).transpose(0, 2, 4, 1, 3, 5)
    col = col.reshape(B, 4, 100, 256)                           # (B,slab,rho,k)
    col = jnp.pad(col, ((0, 0), (0, 0), (0, 28), (0, 0)))       # rho -> 128
    return col.reshape(B, 512, 256).astype(jnp.bfloat16)


# ----------------------------------------------------------------------------
# Parameter init (mirrors Net.init()) and one-time kernel-layout preparation
# ----------------------------------------------------------------------------
def init_params(key):
    k1, k2, k3, k4, k5 = jax.random.split(key, 5)
    p = {}
    p["w1"] = jnp.abs(0.01 * jax.random.normal(k1, (32, 4, 8, 8), jnp.float32))
    p["b1"] = jnp.full((32,), 0.01, jnp.float32)
    p["w2"] = jnp.abs(0.01 * jax.random.normal(k2, (64, 32, 4, 4), jnp.float32))
    p["b2"] = jnp.full((64,), 0.01, jnp.float32)
    p["w3"] = jnp.abs(0.01 * jax.random.normal(k3, (64, 64, 3, 3), jnp.float32))
    p["b3"] = jnp.full((64,), 0.01, jnp.float32)
    p["fc1_w"] = jnp.abs(0.01 * jax.random.normal(k4, (256, 1600), jnp.float32))
    p["fc1_b"] = jnp.full((256,), 0.01, jnp.float32)
    p["fc2_w"] = jnp.abs(0.01 * jax.random.normal(k5, (ACTIONS_NUM, 256), jnp.float32))
    p["fc2_b"] = jnp.full((ACTIONS_NUM,), 0.01, jnp.float32)
    return p


def prepare_params(p):
    """One-time transform of PyTorch-layout params into kernel layout."""
    bf16, f32 = jnp.bfloat16, jnp.float32
    kp = {}
    kp["w1"] = jnp.transpose(p["w1"], (2, 3, 1, 0)).reshape(256, 32).astype(bf16)
    kp["b1"] = p["b1"].reshape(1, 32).astype(f32)
    kp["w2"] = jnp.transpose(p["w2"], (2, 3, 1, 0)).reshape(16, 32, 64).astype(bf16)
    kp["b2"] = p["b2"].reshape(1, 64).astype(f32)
    kp["w3"] = jnp.transpose(p["w3"], (2, 3, 1, 0)).reshape(9, 64, 64).astype(bf16)
    kp["b3"] = p["b3"].reshape(1, 64).astype(f32)
    # Fold the PyTorch NCHW flatten (index = c*25 + q) into fc1's row order:
    # wf1[q, c, n] = fc1_w[n, c*25 + q]
    kp["wf1"] = jnp.transpose(p["fc1_w"].reshape(256, 64, 25), (2, 1, 0)).astype(bf16)
    kp["bf1"] = p["fc1_b"].reshape(1, 256).astype(f32)
    # fc2: transpose + zero-pad N=2 -> 128 lanes (lane-dense stores)
    kp["wf2"] = jnp.zeros((256, 128), f32).at[:, :ACTIONS_NUM].set(p["fc2_w"].T).astype(bf16)
    kp["bf2"] = jnp.zeros((1, 128), f32).at[0, :ACTIONS_NUM].set(p["fc2_b"])
    kp["gs2"] = jnp.asarray(_build_gather_conv2(), bf16)
    kp["gs3"] = jnp.asarray(_build_gather_conv3(), bf16)
    return kp


# ----------------------------------------------------------------------------
# Forward pass
# ----------------------------------------------------------------------------
@jax.jit
def net_forward(x_nchw, kp):
    B = x_nchw.shape[0]
    col1 = build_col1(x_nchw)

    const2 = lambda b: (0, 0)
    const3 = lambda b: (0, 0, 0)

    feat3, read3 = pl.pallas_call(
        _net_kernel,
        out_shape=(
            jax.ShapeDtypeStruct((B, 1, 256), jnp.float32),   # fc1 features
            jax.ShapeDtypeStruct((B, 1, 128), jnp.float32),   # padded readout
        ),
        grid=(B,),
        in_specs=[
            pl.BlockSpec((1, 512, 256), lambda b: (b, 0, 0)),  # col1 (per sample)
            pl.BlockSpec((256, 32), const2),                   # w1
            pl.BlockSpec((1, 32), const2),                     # b1
            pl.BlockSpec((512, 128), const2),                  # gs2
            pl.BlockSpec((16, 32, 64), const3),                # w2
            pl.BlockSpec((1, 64), const2),                     # b2
            pl.BlockSpec((288, 32), const2),                   # gs3
            pl.BlockSpec((9, 64, 64), const3),                 # w3
            pl.BlockSpec((1, 64), const2),                     # b3
            pl.BlockSpec((25, 64, 256), const3),               # wf1
            pl.BlockSpec((1, 256), const2),                    # bf1
            pl.BlockSpec((256, 128), const2),                  # wf2
            pl.BlockSpec((1, 128), const2),                    # bf2
        ],
        out_specs=[
            pl.BlockSpec((1, 1, 256), lambda b: (b, 0, 0)),
            pl.BlockSpec((1, 1, 128), lambda b: (b, 0, 0)),
        ],
        compiler_params=pltpu.CompilerParams(
            dimension_semantics=("parallel",)),
    )(col1, kp["w1"], kp["b1"], kp["gs2"], kp["w2"], kp["b2"],
      kp["gs3"], kp["w3"], kp["b3"], kp["wf1"], kp["bf1"], kp["wf2"], kp["bf2"])

    feat = feat3.reshape(B, 256)
    readout = read3.reshape(B, 128)[:, :ACTIONS_NUM]
    return readout, feat


# ----------------------------------------------------------------------------
# Pure-JAX float32 reference (exact Net.forward semantics) for validation
# ----------------------------------------------------------------------------
def reference_forward(x_nchw, p):
    hi = jax.lax.Precision.HIGHEST
    x = jnp.transpose(x_nchw, (0, 2, 3, 1))

    def conv(inp, w, b, stride, pad):
        out = jax.lax.conv_general_dilated(
            inp, jnp.transpose(w, (2, 3, 1, 0)),
            window_strides=(stride, stride),
            padding=[(pad, pad), (pad, pad)],
            dimension_numbers=("NHWC", "HWIO", "NHWC"),
            precision=hi)
        return jax.nn.relu(out + b)

    y = conv(x, p["w1"], p["b1"], 4, 2)                         # (B,20,20,32)
    B, H, W, C = y.shape
    y = y.reshape(B, H // 2, 2, W // 2, 2, C).max(axis=(2, 4))  # 2x2 pool
    y = conv(y, p["w2"], p["b2"], 2, 1)                         # (B,5,5,64)
    y = conv(y, p["w3"], p["b3"], 1, 1)                         # (B,5,5,64)
    flat = jnp.transpose(y, (0, 3, 1, 2)).reshape(B, -1)        # NCHW flatten
    h = jax.nn.relu(jnp.dot(flat, p["fc1_w"].T, precision=hi) + p["fc1_b"])
    readout = jnp.dot(h, p["fc2_w"].T, precision=hi) + p["fc2_b"]
    return readout, h


if __name__ == "__main__":
    key = jax.random.PRNGKey(0)
    pkey, xkey = jax.random.split(key)
    params = init_params(pkey)          # PyTorch-layout parameters
    kparams = prepare_params(params)    # kernel-layout parameters (built once)

    # 80x80 is the only spatial size consistent with fc_sz == 1600.
    x = jax.random.uniform(xkey, (2, 4, 80, 80), jnp.float32)

    readout, feat = net_forward(x, kparams)
    jax.block_until_ready((readout, feat))

    assert readout.shape == (2, ACTIONS_NUM)
    assert feat.shape == (2, 256)
    assert bool(jnp.all(jnp.isfinite(readout))) and bool(jnp.all(jnp.isfinite(feat)))

    ref_read, ref_feat = reference_forward(x, params)
    assert np.allclose(np.asarray(readout), np.asarray(ref_read), rtol=0.1, atol=1.0)
    assert np.allclose(np.asarray(feat), np.asarray(ref_feat), rtol=0.1, atol=1.0)

    print("KERNEL_OK")
</pallas_src>

<mosaic_0001>
module attributes {stable_mosaic.version = 11 : i64} {
  func.func @_net_kernel(%arg0: i32, %arg1: memref<1x512x256xbf16, #tpu.memory_space<vmem>>, %arg2: memref<256x32xbf16, #tpu.memory_space<vmem>>, %arg3: memref<1x32xf32, #tpu.memory_space<vmem>>, %arg4: memref<512x128xbf16, #tpu.memory_space<vmem>>, %arg5: memref<16x32x64xbf16, #tpu.memory_space<vmem>>, %arg6: memref<1x64xf32, #tpu.memory_space<vmem>>, %arg7: memref<288x32xbf16, #tpu.memory_space<vmem>>, %arg8: memref<9x64x64xbf16, #tpu.memory_space<vmem>>, %arg9: memref<1x64xf32, #tpu.memory_space<vmem>>, %arg10: memref<25x64x256xbf16, #tpu.memory_space<vmem>>, %arg11: memref<1x256xf32, #tpu.memory_space<vmem>>, %arg12: memref<256x128xbf16, #tpu.memory_space<vmem>>, %arg13: memref<1x128xf32, #tpu.memory_space<vmem>>, %arg14: memref<1x1x256xf32, #tpu.memory_space<vmem>>, %arg15: memref<1x1x128xf32, #tpu.memory_space<vmem>>) attributes {dimension_semantics = [#tpu.dimension_semantics<parallel>], iteration_bounds = array<i64: 2>, scalar_prefetch = 0 : i64, scratch_operands = 0 : i64, tpu.core_type = #tpu.core_type<tc>, window_params = [{transform_indices = @transform_0, window_bounds = array<i64: 1, 512, 256>}, {pipeline_mode = #tpu.pipeline_mode<synchronous>, transform_indices = @transform_1, window_bounds = array<i64: 256, 32>}, {pipeline_mode = #tpu.pipeline_mode<synchronous>, transform_indices = @transform_2, window_bounds = array<i64: 1, 32>}, {pipeline_mode = #tpu.pipeline_mode<synchronous>, transform_indices = @transform_3, window_bounds = array<i64: 512, 128>}, {pipeline_mode = #tpu.pipeline_mode<synchronous>, transform_indices = @transform_4, window_bounds = array<i64: 16, 32, 64>}, {pipeline_mode = #tpu.pipeline_mode<synchronous>, transform_indices = @transform_5, window_bounds = array<i64: 1, 64>}, {pipeline_mode = #tpu.pipeline_mode<synchronous>, transform_indices = @transform_6, window_bounds = array<i64: 288, 32>}, {pipeline_mode = #tpu.pipeline_mode<synchronous>, transform_indices = @transform_7, window_bounds = array<i64: 9, 64, 64>}, {pipeline_mode = #tpu.pipeline_mode<synchronous>, transform_indices = @transform_8, window_bounds = array<i64: 1, 64>}, {pipeline_mode = #tpu.pipeline_mode<synchronous>, transform_indices = @transform_9, window_bounds = array<i64: 25, 64, 256>}, {pipeline_mode = #tpu.pipeline_mode<synchronous>, transform_indices = @transform_10, window_bounds = array<i64: 1, 256>}, {pipeline_mode = #tpu.pipeline_mode<synchronous>, transform_indices = @transform_11, window_bounds = array<i64: 256, 128>}, {pipeline_mode = #tpu.pipeline_mode<synchronous>, transform_indices = @transform_12, window_bounds = array<i64: 1, 128>}, {transform_indices = @transform_13, window_bounds = array<i64: 1, 1, 256>}, {transform_indices = @transform_14, window_bounds = array<i64: 1, 1, 128>}]} {
    %c0 = arith.constant 0 : index
    %c0_0 = arith.constant 0 : index
    %c0_1 = arith.constant 0 : index
    %0 = vector.load %arg1[%c0, %c0_0, %c0_1] : memref<1x512x256xbf16, #tpu.memory_space<vmem>>, vector<1x512x256xbf16>
    %1 = vector.shape_cast %0 : vector<1x512x256xbf16> to vector<512x256xbf16>
    %c0_2 = arith.constant 0 : index
    %c0_3 = arith.constant 0 : index
    %2 = vector.load %arg2[%c0_2, %c0_3] : memref<256x32xbf16, #tpu.memory_space<vmem>>, vector<256x32xbf16>
    %cst = arith.constant dense<0.000000e+00> : vector<512x32xf32>
    %3 = tpu.matmul %1, %2, %cst {dimension_numbers = #tpu.dot_dimension_numbers<[1], [0], [0], [1], [0, 0, 1, 1], [], []>} : vector<512x256xbf16>, vector<256x32xbf16>, vector<512x32xf32> -> vector<512x32xf32>
    %c0_4 = arith.constant 0 : index
    %c0_5 = arith.constant 0 : index
    %4 = vector.load %arg3[%c0_4, %c0_5] : memref<1x32xf32, #tpu.memory_space<vmem>>, vector<1x32xf32>
    %5 = vector.broadcast %4 : vector<1x32xf32> to vector<512x32xf32>
    %6 = arith.addf %3, %5 : vector<512x32xf32>
    %cst_6 = arith.constant 0.000000e+00 : f32
    %7 = vector.broadcast %cst_6 : f32 to vector<512x32xf32>
    %8 = arith.maximumf %6, %7 : vector<512x32xf32>
    %9 = vector.extract_strided_slice %8 {offsets = [0, 0], sizes = [128, 32], strides = [1, 1]} : vector<512x32xf32> to vector<128x32xf32>
    %10 = vector.extract_strided_slice %8 {offsets = [128, 0], sizes = [128, 32], strides = [1, 1]} : vector<512x32xf32> to vector<128x32xf32>
    %11 = arith.maximumf %9, %10 : vector<128x32xf32>
    %12 = vector.extract_strided_slice %8 {offsets = [256, 0], sizes = [128, 32], strides = [1, 1]} : vector<512x32xf32> to vector<128x32xf32>
    %13 = vector.extract_strided_slice %8 {offsets = [384, 0], sizes = [128, 32], strides = [1, 1]} : vector<512x32xf32> to vector<128x32xf32>
    %14 = arith.maximumf %12, %13 : vector<128x32xf32>
    %15 = arith.maximumf %11, %14 : vector<128x32xf32>
    %16 = arith.truncf %15 : vector<128x32xf32> to vector<128x32xbf16>
    %c0_7 = arith.constant 0 : index
    %c0_8 = arith.constant 0 : index
    %17 = vector.load %arg4[%c0_7, %c0_8] : memref<512x128xbf16, #tpu.memory_space<vmem>>, vector<512x128xbf16>
    %cst_9 = arith.constant dense<0.000000e+00> : vector<512x32xf32>
    %18 = tpu.matmul %17, %16, %cst_9 {dimension_numbers = #tpu.dot_dimension_numbers<[1], [0], [0], [1], [0, 0, 1, 1], [], []>} : vector<512x128xbf16>, vector<128x32xbf16>, vector<512x32xf32> -> vector<512x32xf32>
    %19 = arith.truncf %18 : vector<512x32xf32> to vector<512x32xbf16>
    %cst_10 = arith.constant 0.000000e+00 : f32
    %20 = vector.broadcast %cst_10 : f32 to vector<32x64xf32>
    %21 = vector.extract_strided_slice %19 {offsets = [0, 0], sizes = [32, 32], strides = [1, 1]} : vector<512x32xbf16> to vector<32x32xbf16>
    %c0_11 = arith.constant 0 : index
    %c0_12 = arith.constant 0 : index
    %c0_13 = arith.constant 0 : index
    %22 = vector.load %arg5[%c0_11, %c0_12, %c0_13] : memref<16x32x64xbf16, #tpu.memory_space<vmem>>, vector<1x32x64xbf16>
    %23 = vector.shape_cast %22 : vector<1x32x64xbf16> to vector<32x64xbf16>
    %cst_14 = arith.constant dense<0.000000e+00> : vector<32x64xf32>
    %24 = tpu.matmul %21, %23, %cst_14 {dimension_numbers = #tpu.dot_dimension_numbers<[1], [0], [0], [1], [0, 0, 1, 1], [], []>} : vector<32x32xbf16>, vector<32x64xbf16>, vector<32x64xf32> -> vector<32x64xf32>
    %25 = arith.addf %20, %24 : vector<32x64xf32>
    %26 = vector.extract_strided_slice %19 {offsets = [32, 0], sizes = [32, 32], strides = [1, 1]} : vector<512x32xbf16> to vector<32x32xbf16>
    %c1 = arith.constant 1 : index
    %c0_15 = arith.constant 0 : index
    %c0_16 = arith.constant 0 : index
    %27 = vector.load %arg5[%c1, %c0_15, %c0_16] : memref<16x32x64xbf16, #tpu.memory_space<vmem>>, vector<1x32x64xbf16>
    %28 = vector.shape_cast %27 : vector<1x32x64xbf16> to vector<32x64xbf16>
    %cst_17 = arith.constant dense<0.000000e+00> : vector<32x64xf32>
    %29 = tpu.matmul %26, %28, %cst_17 {dimension_numbers = #tpu.dot_dimension_numbers<[1], [0], [0], [1], [0, 0, 1, 1], [], []>} : vector<32x32xbf16>, vector<32x64xbf16>, vector<32x64xf32> -> vector<32x64xf32>
    %30 = arith.addf %25, %29 : vector<32x64xf32>
    %31 = vector.extract_strided_slice %19 {offsets = [64, 0], sizes = [32, 32], strides = [1, 1]} : vector<512x32xbf16> to vector<32x32xbf16>
    %c2 = arith.constant 2 : index
    %c0_18 = arith.constant 0 : index
    %c0_19 = arith.constant 0 : index
    %32 = vector.load %arg5[%c2, %c0_18, %c0_19] : memref<16x32x64xbf16, #tpu.memory_space<vmem>>, vector<1x32x64xbf16>
    %33 = vector.shape_cast %32 : vector<1x32x64xbf16> to vector<32x64xbf16>
    %cst_20 = arith.constant dense<0.000000e+00> : vector<32x64xf32>
    %34 = tpu.matmul %31, %33, %cst_20 {dimension_numbers = #tpu.dot_dimension_numbers<[1], [0], [0], [1], [0, 0, 1, 1], [], []>} : vector<32x32xbf16>, vector<32x64xbf16>, vector<32x64xf32> -> vector<32x64xf32>
    %35 = arith.addf %30, %34 : vector<32x64xf32>
    %36 = vector.extract_strided_slice %19 {offsets = [96, 0], sizes = [32, 32], strides = [1, 1]} : vector<512x32xbf16> to vector<32x32xbf16>
    %c3 = arith.constant 3 : index
    %c0_21 = arith.constant 0 : index
    %c0_22 = arith.constant 0 : index
    %37 = vector.load %arg5[%c3, %c0_21, %c0_22] : memref<16x32x64xbf16, #tpu.memory_space<vmem>>, vector<1x32x64xbf16>
    %38 = vector.shape_cast %37 : vector<1x32x64xbf16> to vector<32x64xbf16>
    %cst_23 = arith.constant dense<0.000000e+00> : vector<32x64xf32>
    %39 = tpu.matmul %36, %38, %cst_23 {dimension_numbers = #tpu.dot_dimension_numbers<[1], [0], [0], [1], [0, 0, 1, 1], [], []>} : vector<32x32xbf16>, vector<32x64xbf16>, vector<32x64xf32> -> vector<32x64xf32>
    %40 = arith.addf %35, %39 : vector<32x64xf32>
    %41 = vector.extract_strided_slice %19 {offsets = [128, 0], sizes = [32, 32], strides = [1, 1]} : vector<512x32xbf16> to vector<32x32xbf16>
    %c4 = arith.constant 4 : index
    %c0_24 = arith.constant 0 : index
    %c0_25 = arith.constant 0 : index
    %42 = vector.load %arg5[%c4, %c0_24, %c0_25] : memref<16x32x64xbf16, #tpu.memory_space<vmem>>, vector<1x32x64xbf16>
    %43 = vector.shape_cast %42 : vector<1x32x64xbf16> to vector<32x64xbf16>
    %cst_26 = arith.constant dense<0.000000e+00> : vector<32x64xf32>
    %44 = tpu.matmul %41, %43, %cst_26 {dimension_numbers = #tpu.dot_dimension_numbers<[1], [0], [0], [1], [0, 0, 1, 1], [], []>} : vector<32x32xbf16>, vector<32x64xbf16>, vector<32x64xf32> -> vector<32x64xf32>
    %45 = arith.addf %40, %44 : vector<32x64xf32>
    %46 = vector.extract_strided_slice %19 {offsets = [160, 0], sizes = [32, 32], strides = [1, 1]} : vector<512x32xbf16> to vector<32x32xbf16>
    %c5 = arith.constant 5 : index
    %c0_27 = arith.constant 0 : index
    %c0_28 = arith.constant 0 : index
    %47 = vector.load %arg5[%c5, %c0_27, %c0_28] : memref<16x32x64xbf16, #tpu.memory_space<vmem>>, vector<1x32x64xbf16>
    %48 = vector.shape_cast %47 : vector<1x32x64xbf16> to vector<32x64xbf16>
    %cst_29 = arith.constant dense<0.000000e+00> : vector<32x64xf32>
    %49 = tpu.matmul %46, %48, %cst_29 {dimension_numbers = #tpu.dot_dimension_numbers<[1], [0], [0], [1], [0, 0, 1, 1], [], []>} : vector<32x32xbf16>, vector<32x64xbf16>, vector<32x64xf32> -> vector<32x64xf32>
    %50 = arith.addf %45, %49 : vector<32x64xf32>
    %51 = vector.extract_strided_slice %19 {offsets = [192, 0], sizes = [32, 32], strides = [1, 1]} : vector<512x32xbf16> to vector<32x32xbf16>
    %c6 = arith.constant 6 : index
    %c0_30 = arith.constant 0 : index
    %c0_31 = arith.constant 0 : index
    %52 = vector.load %arg5[%c6, %c0_30, %c0_31] : memref<16x32x64xbf16, #tpu.memory_space<vmem>>, vector<1x32x64xbf16>
    %53 = vector.shape_cast %52 : vector<1x32x64xbf16> to vector<32x64xbf16>
    %cst_32 = arith.constant dense<0.000000e+00> : vector<32x64xf32>
    %54 = tpu.matmul %51, %53, %cst_32 {dimension_numbers = #tpu.dot_dimension_numbers<[1], [0], [0], [1], [0, 0, 1, 1], [], []>} : vector<32x32xbf16>, vector<32x64xbf16>, vector<32x64xf32> -> vector<32x64xf32>
    %55 = arith.addf %50, %54 : vector<32x64xf32>
    %56 = vector.extract_strided_slice %19 {offsets = [224, 0], sizes = [32, 32], strides = [1, 1]} : vector<512x32xbf16> to vector<32x32xbf16>
    %c7 = arith.constant 7 : index
    %c0_33 = arith.constant 0 : index
    %c0_34 = arith.constant 0 : index
    %57 = vector.load %arg5[%c7, %c0_33, %c0_34] : memref<16x32x64xbf16, #tpu.memory_space<vmem>>, vector<1x32x64xbf16>
    %58 = vector.shape_cast %57 : vector<1x32x64xbf16> to vector<32x64xbf16>
    %cst_35 = arith.constant dense<0.000000e+00> : vector<32x64xf32>
    %59 = tpu.matmul %56, %58, %cst_35 {dimension_numbers = #tpu.dot_dimension_numbers<[1], [0], [0], [1], [0, 0, 1, 1], [], []>} : vector<32x32xbf16>, vector<32x64xbf16>, vector<32x64xf32> -> vector<32x64xf32>
    %60 = arith.addf %55, %59 : vector<32x64xf32>
    %61 = vector.extract_strided_slice %19 {offsets = [256, 0], sizes = [32, 32], strides = [1, 1]} : vector<512x32xbf16> to vector<32x32xbf16>
    %c8 = arith.constant 8 : index
    %c0_36 = arith.constant 0 : index
    %c0_37 = arith.constant 0 : index
    %62 = vector.load %arg5[%c8, %c0_36, %c0_37] : memref<16x32x64xbf16, #tpu.memory_space<vmem>>, vector<1x32x64xbf16>
    %63 = vector.shape_cast %62 : vector<1x32x64xbf16> to vector<32x64xbf16>
    %cst_38 = arith.constant dense<0.000000e+00> : vector<32x64xf32>
    %64 = tpu.matmul %61, %63, %cst_38 {dimension_numbers = #tpu.dot_dimension_numbers<[1], [0], [0], [1], [0, 0, 1, 1], [], []>} : vector<32x32xbf16>, vector<32x64xbf16>, vector<32x64xf32> -> vector<32x64xf32>
    %65 = arith.addf %60, %64 : vector<32x64xf32>
    %66 = vector.extract_strided_slice %19 {offsets = [288, 0], sizes = [32, 32], strides = [1, 1]} : vector<512x32xbf16> to vector<32x32xbf16>
    %c9 = arith.constant 9 : index
    %c0_39 = arith.constant 0 : index
    %c0_40 = arith.constant 0 : index
    %67 = vector.load %arg5[%c9, %c0_39, %c0_40] : memref<16x32x64xbf16, #tpu.memory_space<vmem>>, vector<1x32x64xbf16>
    %68 = vector.shape_cast %67 : vector<1x32x64xbf16> to vector<32x64xbf16>
    %cst_41 = arith.constant dense<0.000000e+00> : vector<32x64xf32>
    %69 = tpu.matmul %66, %68, %cst_41 {dimension_numbers = #tpu.dot_dimension_numbers<[1], [0], [0], [1], [0, 0, 1, 1], [], []>} : vector<32x32xbf16>, vector<32x64xbf16>, vector<32x64xf32> -> vector<32x64xf32>
    %70 = arith.addf %65, %69 : vector<32x64xf32>
    %71 = vector.extract_strided_slice %19 {offsets = [320, 0], sizes = [32, 32], strides = [1, 1]} : vector<512x32xbf16> to vector<32x32xbf16>
    %c10 = arith.constant 10 : index
    %c0_42 = arith.constant 0 : index
    %c0_43 = arith.constant 0 : index
    %72 = vector.load %arg5[%c10, %c0_42, %c0_43] : memref<16x32x64xbf16, #tpu.memory_space<vmem>>, vector<1x32x64xbf16>
    %73 = vector.shape_cast %72 : vector<1x32x64xbf16> to vector<32x64xbf16>
    %cst_44 = arith.constant dense<0.000000e+00> : vector<32x64xf32>
    %74 = tpu.matmul %71, %73, %cst_44 {dimension_numbers = #tpu.dot_dimension_numbers<[1], [0], [0], [1], [0, 0, 1, 1], [], []>} : vector<32x32xbf16>, vector<32x64xbf16>, vector<32x64xf32> -> vector<32x64xf32>
    %75 = arith.addf %70, %74 : vector<32x64xf32>
    %76 = vector.extract_strided_slice %19 {offsets = [352, 0], sizes = [32, 32], strides = [1, 1]} : vector<512x32xbf16> to vector<32x32xbf16>
    %c11 = arith.constant 11 : index
    %c0_45 = arith.constant 0 : index
    %c0_46 = arith.constant 0 : index
    %77 = vector.load %arg5[%c11, %c0_45, %c0_46] : memref<16x32x64xbf16, #tpu.memory_space<vmem>>, vector<1x32x64xbf16>
    %78 = vector.shape_cast %77 : vector<1x32x64xbf16> to vector<32x64xbf16>
    %cst_47 = arith.constant dense<0.000000e+00> : vector<32x64xf32>
    %79 = tpu.matmul %76, %78, %cst_47 {dimension_numbers = #tpu.dot_dimension_numbers<[1], [0], [0], [1], [0, 0, 1, 1], [], []>} : vector<32x32xbf16>, vector<32x64xbf16>, vector<32x64xf32> -> vector<32x64xf32>
    %80 = arith.addf %75, %79 : vector<32x64xf32>
    %81 = vector.extract_strided_slice %19 {offsets = [384, 0], sizes = [32, 32], strides = [1, 1]} : vector<512x32xbf16> to vector<32x32xbf16>
    %c12 = arith.constant 12 : index
    %c0_48 = arith.constant 0 : index
    %c0_49 = arith.constant 0 : index
    %82 = vector.load %arg5[%c12, %c0_48, %c0_49] : memref<16x32x64xbf16, #tpu.memory_space<vmem>>, vector<1x32x64xbf16>
    %83 = vector.shape_cast %82 : vector<1x32x64xbf16> to vector<32x64xbf16>
    %cst_50 = arith.constant dense<0.000000e+00> : vector<32x64xf32>
    %84 = tpu.matmul %81, %83, %cst_50 {dimension_numbers = #tpu.dot_dimension_numbers<[1], [0], [0], [1], [0, 0, 1, 1], [], []>} : vector<32x32xbf16>, vector<32x64xbf16>, vector<32x64xf32> -> vector<32x64xf32>
    %85 = arith.addf %80, %84 : vector<32x64xf32>
    %86 = vector.extract_strided_slice %19 {offsets = [416, 0], sizes = [32, 32], strides = [1, 1]} : vector<512x32xbf16> to vector<32x32xbf16>
    %c13 = arith.constant 13 : index
    %c0_51 = arith.constant 0 : index
    %c0_52 = arith.constant 0 : index
    %87 = vector.load %arg5[%c13, %c0_51, %c0_52] : memref<16x32x64xbf16, #tpu.memory_space<vmem>>, vector<1x32x64xbf16>
    %88 = vector.shape_cast %87 : vector<1x32x64xbf16> to vector<32x64xbf16>
    %cst_53 = arith.constant dense<0.000000e+00> : vector<32x64xf32>
    %89 = tpu.matmul %86, %88, %cst_53 {dimension_numbers = #tpu.dot_dimension_numbers<[1], [0], [0], [1], [0, 0, 1, 1], [], []>} : vector<32x32xbf16>, vector<32x64xbf16>, vector<32x64xf32> -> vector<32x64xf32>
    %90 = arith.addf %85, %89 : vector<32x64xf32>
    %91 = vector.extract_strided_slice %19 {offsets = [448, 0], sizes = [32, 32], strides = [1, 1]} : vector<512x32xbf16> to vector<32x32xbf16>
    %c14 = arith.constant 14 : index
    %c0_54 = arith.constant 0 : index
    %c0_55 = arith.constant 0 : index
    %92 = vector.load %arg5[%c14, %c0_54, %c0_55] : memref<16x32x64xbf16, #tpu.memory_space<vmem>>, vector<1x32x64xbf16>
    %93 = vector.shape_cast %92 : vector<1x32x64xbf16> to vector<32x64xbf16>
    %cst_56 = arith.constant dense<0.000000e+00> : vector<32x64xf32>
    %94 = tpu.matmul %91, %93, %cst_56 {dimension_numbers = #tpu.dot_dimension_numbers<[1], [0], [0], [1], [0, 0, 1, 1], [], []>} : vector<32x32xbf16>, vector<32x64xbf16>, vector<32x64xf32> -> vector<32x64xf32>
    %95 = arith.addf %90, %94 : vector<32x64xf32>
    %96 = vector.extract_strided_slice %19 {offsets = [480, 0], sizes = [32, 32], strides = [1, 1]} : vector<512x32xbf16> to vector<32x32xbf16>
    %c15 = arith.constant 15 : index
    %c0_57 = arith.constant 0 : index
    %c0_58 = arith.constant 0 : index
    %97 = vector.load %arg5[%c15, %c0_57, %c0_58] : memref<16x32x64xbf16, #tpu.memory_space<vmem>>, vector<1x32x64xbf16>
    %98 = vector.shape_cast %97 : vector<1x32x64xbf16> to vector<32x64xbf16>
    %cst_59 = arith.constant dense<0.000000e+00> : vector<32x64xf32>
    %99 = tpu.matmul %96, %98, %cst_59 {dimension_numbers = #tpu.dot_dimension_numbers<[1], [0], [0], [1], [0, 0, 1, 1], [], []>} : vector<32x32xbf16>, vector<32x64xbf16>, vector<32x64xf32> -> vector<32x64xf32>
    %100 = arith.addf %95, %99 : vector<32x64xf32>
    %c0_60 = arith.constant 0 : index
    %c0_61 = arith.constant 0 : index
    %101 = vector.load %arg6[%c0_60, %c0_61] : memref<1x64xf32, #tpu.memory_space<vmem>>, vector<1x64xf32>
    %102 = vector.broadcast %101 : vector<1x64xf32> to vector<32x64xf32>
    %103 = arith.addf %100, %102 : vector<32x64xf32>
    %cst_62 = arith.constant 0.000000e+00 : f32
    %104 = vector.broadcast %cst_62 : f32 to vector<32x64xf32>
    %105 = arith.maximumf %103, %104 : vector<32x64xf32>
    %106 = arith.truncf %105 : vector<32x64xf32> to vector<32x64xbf16>
    %c0_63 = arith.constant 0 : index
    %c0_64 = arith.constant 0 : index
    %107 = vector.load %arg7[%c0_63, %c0_64] : memref<288x32xbf16, #tpu.memory_space<vmem>>, vector<288x32xbf16>
    %cst_65 = arith.constant dense<0.000000e+00> : vector<288x64xf32>
    %108 = tpu.matmul %107, %106, %cst_65 {dimension_numbers = #tpu.dot_dimension_numbers<[1], [0], [0], [1], [0, 0, 1, 1], [], []>} : vector<288x32xbf16>, vector<32x64xbf16>, vector<288x64xf32> -> vector<288x64xf32>
    %109 = arith.truncf %108 : vector<288x64xf32> to vector<288x64xbf16>
    %cst_66 = arith.constant 0.000000e+00 : f32
    %110 = vector.broadcast %cst_66 : f32 to vector<32x64xf32>
    %111 = vector.extract_strided_slice %109 {offsets = [0, 0], sizes = [32, 64], strides = [1, 1]} : vector<288x64xbf16> to vector<32x64xbf16>
    %c0_67 = arith.constant 0 : index
    %c0_68 = arith.constant 0 : index
    %c0_69 = arith.constant 0 : index
    %112 = vector.load %arg8[%c0_67, %c0_68, %c0_69] : memref<9x64x64xbf16, #tpu.memory_space<vmem>>, vector<1x64x64xbf16>
    %113 = vector.shape_cast %112 : vector<1x64x64xbf16> to vector<64x64xbf16>
    %cst_70 = arith.constant dense<0.000000e+00> : vector<32x64xf32>
    %114 = tpu.matmul %111, %113, %cst_70 {dimension_numbers = #tpu.dot_dimension_numbers<[1], [0], [0], [1], [0, 0, 1, 1], [], []>} : vector<32x64xbf16>, vector<64x64xbf16>, vector<32x64xf32> -> vector<32x64xf32>
    %115 = arith.addf %110, %114 : vector<32x64xf32>
    %116 = vector.extract_strided_slice %109 {offsets = [32, 0], sizes = [32, 64], strides = [1, 1]} : vector<288x64xbf16> to vector<32x64xbf16>
    %c1_71 = arith.constant 1 : index
    %c0_72 = arith.constant 0 : index
    %c0_73 = arith.constant 0 : index
    %117 = vector.load %arg8[%c1_71, %c0_72, %c0_73] : memref<9x64x64xbf16, #tpu.memory_space<vmem>>, vector<1x64x64xbf16>
    %118 = vector.shape_cast %117 : vector<1x64x64xbf16> to vector<64x64xbf16>
    %cst_74 = arith.constant dense<0.000000e+00> : vector<32x64xf32>
    %119 = tpu.matmul %116, %118, %cst_74 {dimension_numbers = #tpu.dot_dimension_numbers<[1], [0], [0], [1], [0, 0, 1, 1], [], []>} : vector<32x64xbf16>, vector<64x64xbf16>, vector<32x64xf32> -> vector<32x64xf32>
    %120 = arith.addf %115, %119 : vector<32x64xf32>
    %121 = vector.extract_strided_slice %109 {offsets = [64, 0], sizes = [32, 64], strides = [1, 1]} : vector<288x64xbf16> to vector<32x64xbf16>
    %c2_75 = arith.constant 2 : index
    %c0_76 = arith.constant 0 : index
    %c0_77 = arith.constant 0 : index
    %122 = vector.load %arg8[%c2_75, %c0_76, %c0_77] : memref<9x64x64xbf16, #tpu.memory_space<vmem>>, vector<1x64x64xbf16>
    %123 = vector.shape_cast %122 : vector<1x64x64xbf16> to vector<64x64xbf16>
    %cst_78 = arith.constant dense<0.000000e+00> : vector<32x64xf32>
    %124 = tpu.matmul %121, %123, %cst_78 {dimension_numbers = #tpu.dot_dimension_numbers<[1], [0], [0], [1], [0, 0, 1, 1], [], []>} : vector<32x64xbf16>, vector<64x64xbf16>, vector<32x64xf32> -> vector<32x64xf32>
    %125 = arith.addf %120, %124 : vector<32x64xf32>
    %126 = vector.extract_strided_slice %109 {offsets = [96, 0], sizes = [32, 64], strides = [1, 1]} : vector<288x64xbf16> to vector<32x64xbf16>
    %c3_79 = arith.constant 3 : index
    %c0_80 = arith.constant 0 : index
    %c0_81 = arith.constant 0 : index
    %127 = vector.load %arg8[%c3_79, %c0_80, %c0_81] : memref<9x64x64xbf16, #tpu.memory_space<vmem>>, vector<1x64x64xbf16>
    %128 = vector.shape_cast %127 : vector<1x64x64xbf16> to vector<64x64xbf16>
    %cst_82 = arith.constant dense<0.000000e+00> : vector<32x64xf32>
    %129 = tpu.matmul %126, %128, %cst_82 {dimension_numbers = #tpu.dot_dimension_numbers<[1], [0], [0], [1], [0, 0, 1, 1], [], []>} : vector<32x64xbf16>, vector<64x64xbf16>, vector<32x64xf32> -> vector<32x64xf32>
    %130 = arith.addf %125, %129 : vector<32x64xf32>
    %131 = vector.extract_strided_slice %109 {offsets = [128, 0], sizes = [32, 64], strides = [1, 1]} : vector<288x64xbf16> to vector<32x64xbf16>
    %c4_83 = arith.constant 4 : index
    %c0_84 = arith.constant 0 : index
    %c0_85 = arith.constant 0 : index
    %132 = vector.load %arg8[%c4_83, %c0_84, %c0_85] : memref<9x64x64xbf16, #tpu.memory_space<vmem>>, vector<1x64x64xbf16>
    %133 = vector.shape_cast %132 : vector<1x64x64xbf16> to vector<64x64xbf16>
    %cst_86 = arith.constant dense<0.000000e+00> : vector<32x64xf32>
    %134 = tpu.matmul %131, %133, %cst_86 {dimension_numbers = #tpu.dot_dimension_numbers<[1], [0], [0], [1], [0, 0, 1, 1], [], []>} : vector<32x64xbf16>, vector<64x64xbf16>, vector<32x64xf32> -> vector<32x64xf32>
    %135 = arith.addf %130, %134 : vector<32x64xf32>
    %136 = vector.extract_strided_slice %109 {offsets = [160, 0], sizes = [32, 64], strides = [1, 1]} : vector<288x64xbf16> to vector<32x64xbf16>
    %c5_87 = arith.constant 5 : index
    %c0_88 = arith.constant 0 : index
    %c0_89 = arith.constant 0 : index
    %137 = vector.load %arg8[%c5_87, %c0_88, %c0_89] : memref<9x64x64xbf16, #tpu.memory_space<vmem>>, vector<1x64x64xbf16>
    %138 = vector.shape_cast %137 : vector<1x64x64xbf16> to vector<64x64xbf16>
    %cst_90 = arith.constant dense<0.000000e+00> : vector<32x64xf32>
    %139 = tpu.matmul %136, %138, %cst_90 {dimension_numbers = #tpu.dot_dimension_numbers<[1], [0], [0], [1], [0, 0, 1, 1], [], []>} : vector<32x64xbf16>, vector<64x64xbf16>, vector<32x64xf32> -> vector<32x64xf32>
    %140 = arith.addf %135, %139 : vector<32x64xf32>
    %141 = vector.extract_strided_slice %109 {offsets = [192, 0], sizes = [32, 64], strides = [1, 1]} : vector<288x64xbf16> to vector<32x64xbf16>
    %c6_91 = arith.constant 6 : index
    %c0_92 = arith.constant 0 : index
    %c0_93 = arith.constant 0 : index
    %142 = vector.load %arg8[%c6_91, %c0_92, %c0_93] : memref<9x64x64xbf16, #tpu.memory_space<vmem>>, vector<1x64x64xbf16>
    %143 = vector.shape_cast %142 : vector<1x64x64xbf16> to vector<64x64xbf16>
    %cst_94 = arith.constant dense<0.000000e+00> : vector<32x64xf32>
    %144 = tpu.matmul %141, %143, %cst_94 {dimension_numbers = #tpu.dot_dimension_numbers<[1], [0], [0], [1], [0, 0, 1, 1], [], []>} : vector<32x64xbf16>, vector<64x64xbf16>, vector<32x64xf32> -> vector<32x64xf32>
    %145 = arith.addf %140, %144 : vector<32x64xf32>
    %146 = vector.extract_strided_slice %109 {offsets = [224, 0], sizes = [32, 64], strides = [1, 1]} : vector<288x64xbf16> to vector<32x64xbf16>
    %c7_95 = arith.constant 7 : index
    %c0_96 = arith.constant 0 : index
    %c0_97 = arith.constant 0 : index
    %147 = vector.load %arg8[%c7_95, %c0_96, %c0_97] : memref<9x64x64xbf16, #tpu.memory_space<vmem>>, vector<1x64x64xbf16>
    %148 = vector.shape_cast %147 : vector<1x64x64xbf16> to vector<64x64xbf16>
    %cst_98 = arith.constant dense<0.000000e+00> : vector<32x64xf32>
    %149 = tpu.matmul %146, %148, %cst_98 {dimension_numbers = #tpu.dot_dimension_numbers<[1], [0], [0], [1], [0, 0, 1, 1], [], []>} : vector<32x64xbf16>, vector<64x64xbf16>, vector<32x64xf32> -> vector<32x64xf32>
    %150 = arith.addf %145, %149 : vector<32x64xf32>
    %151 = vector.extract_strided_slice %109 {offsets = [256, 0], sizes = [32, 64], strides = [1, 1]} : vector<288x64xbf16> to vector<32x64xbf16>
    %c8_99 = arith.constant 8 : index
    %c0_100 = arith.constant 0 : index
    %c0_101 = arith.constant 0 : index
    %152 = vector.load %arg8[%c8_99, %c0_100, %c0_101] : memref<9x64x64xbf16, #tpu.memory_space<vmem>>, vector<1x64x64xbf16>
    %153 = vector.shape_cast %152 : vector<1x64x64xbf16> to vector<64x64xbf16>
    %cst_102 = arith.constant dense<0.000000e+00> : vector<32x64xf32>
    %154 = tpu.matmul %151, %153, %cst_102 {dimension_numbers = #tpu.dot_dimension_numbers<[1], [0], [0], [1], [0, 0, 1, 1], [], []>} : vector<32x64xbf16>, vector<64x64xbf16>, vector<32x64xf32> -> vector<32x64xf32>
    %155 = arith.addf %150, %154 : vector<32x64xf32>
    %c0_103 = arith.constant 0 : index
    %c0_104 = arith.constant 0 : index
    %156 = vector.load %arg9[%c0_103, %c0_104] : memref<1x64xf32, #tpu.memory_space<vmem>>, vector<1x64xf32>
    %157 = vector.broadcast %156 : vector<1x64xf32> to vector<32x64xf32>
    %158 = arith.addf %155, %157 : vector<32x64xf32>
    %cst_105 = arith.constant 0.000000e+00 : f32
    %159 = vector.broadcast %cst_105 : f32 to vector<32x64xf32>
    %160 = arith.maximumf %158, %159 : vector<32x64xf32>
    %cst_106 = arith.constant 0.000000e+00 : f32
    %161 = vector.broadcast %cst_106 : f32 to vector<1x256xf32>
    %162 = vector.extract_strided_slice %160 {offsets = [0, 0], sizes = [1, 64], strides = [1, 1]} : vector<32x64xf32> to vector<1x64xf32>
    %163 = arith.truncf %162 : vector<1x64xf32> to vector<1x64xbf16>
    %c0_107 = arith.constant 0 : index
    %c0_108 = arith.constant 0 : index
    %c0_109 = arith.constant 0 : index
    %164 = vector.load %arg10[%c0_107, %c0_108, %c0_109] : memref<25x64x256xbf16, #tpu.memory_space<vmem>>, vector<1x64x256xbf16>
    %165 = vector.shape_cast %164 : vector<1x64x256xbf16> to vector<64x256xbf16>
    %cst_110 = arith.constant dense<0.000000e+00> : vector<1x256xf32>
    %166 = tpu.matmul %163, %165, %cst_110 {dimension_numbers = #tpu.dot_dimension_numbers<[1], [0], [0], [1], [0, 0, 1, 1], [], []>} : vector<1x64xbf16>, vector<64x256xbf16>, vector<1x256xf32> -> vector<1x256xf32>
    %167 = arith.addf %161, %166 : vector<1x256xf32>
    %168 = vector.extract_strided_slice %160 {offsets = [1, 0], sizes = [1, 64], strides = [1, 1]} : vector<32x64xf32> to vector<1x64xf32>
    %169 = arith.truncf %168 : vector<1x64xf32> to vector<1x64xbf16>
    %c1_111 = arith.constant 1 : index
    %c0_112 = arith.constant 0 : index
    %c0_113 = arith.constant 0 : index
    %170 = vector.load %arg10[%c1_111, %c0_112, %c0_113] : memref<25x64x256xbf16, #tpu.memory_space<vmem>>, vector<1x64x256xbf16>
    %171 = vector.shape_cast %170 : vector<1x64x256xbf16> to vector<64x256xbf16>
    %cst_114 = arith.constant dense<0.000000e+00> : vector<1x256xf32>
    %172 = tpu.matmul %169, %171, %cst_114 {dimension_numbers = #tpu.dot_dimension_numbers<[1], [0], [0], [1], [0, 0, 1, 1], [], []>} : vector<1x64xbf16>, vector<64x256xbf16>, vector<1x256xf32> -> vector<1x256xf32>
    %173 = arith.addf %167, %172 : vector<1x256xf32>
    %174 = vector.extract_strided_slice %160 {offsets = [2, 0], sizes = [1, 64], strides = [1, 1]} : vector<32x64xf32> to vector<1x64xf32>
    %175 = arith.truncf %174 : vector<1x64xf32> to vector<1x64xbf16>
    %c2_115 = arith.constant 2 : index
    %c0_116 = arith.constant 0 : index
    %c0_117 = arith.constant 0 : index
    %176 = vector.load %arg10[%c2_115, %c0_116, %c0_117] : memref<25x64x256xbf16, #tpu.memory_space<vmem>>, vector<1x64x256xbf16>
    %177 = vector.shape_cast %176 : vector<1x64x256xbf16> to vector<64x256xbf16>
    %cst_118 = arith.constant dense<0.000000e+00> : vector<1x256xf32>
    %178 = tpu.matmul %175, %177, %cst_118 {dimension_numbers = #tpu.dot_dimension_numbers<[1], [0], [0], [1], [0, 0, 1, 1], [], []>} : vector<1x64xbf16>, vector<64x256xbf16>, vector<1x256xf32> -> vector<1x256xf32>
    %179 = arith.addf %173, %178 : vector<1x256xf32>
    %180 = vector.extract_strided_slice %160 {offsets = [3, 0], sizes = [1, 64], strides = [1, 1]} : vector<32x64xf32> to vector<1x64xf32>
    %181 = arith.truncf %180 : vector<1x64xf32> to vector<1x64xbf16>
    %c3_119 = arith.constant 3 : index
    %c0_120 = arith.constant 0 : index
    %c0_121 = arith.constant 0 : index
    %182 = vector.load %arg10[%c3_119, %c0_120, %c0_121] : memref<25x64x256xbf16, #tpu.memory_space<vmem>>, vector<1x64x256xbf16>
    %183 = vector.shape_cast %182 : vector<1x64x256xbf16> to vector<64x256xbf16>
    %cst_122 = arith.constant dense<0.000000e+00> : vector<1x256xf32>
    %184 = tpu.matmul %181, %183, %cst_122 {dimension_numbers = #tpu.dot_dimension_numbers<[1], [0], [0], [1], [0, 0, 1, 1], [], []>} : vector<1x64xbf16>, vector<64x256xbf16>, vector<1x256xf32> -> vector<1x256xf32>
    %185 = arith.addf %179, %184 : vector<1x256xf32>
    %186 = vector.extract_strided_slice %160 {offsets = [4, 0], sizes = [1, 64], strides = [1, 1]} : vector<32x64xf32> to vector<1x64xf32>
    %187 = arith.truncf %186 : vector<1x64xf32> to vector<1x64xbf16>
    %c4_123 = arith.constant 4 : index
    %c0_124 = arith.constant 0 : index
    %c0_125 = arith.constant 0 : index
    %188 = vector.load %arg10[%c4_123, %c0_124, %c0_125] : memref<25x64x256xbf16, #tpu.memory_space<vmem>>, vector<1x64x256xbf16>
    %189 = vector.shape_cast %188 : vector<1x64x256xbf16> to vector<64x256xbf16>
    %cst_126 = arith.constant dense<0.000000e+00> : vector<1x256xf32>
    %190 = tpu.matmul %187, %189, %cst_126 {dimension_numbers = #tpu.dot_dimension_numbers<[1], [0], [0], [1], [0, 0, 1, 1], [], []>} : vector<1x64xbf16>, vector<64x256xbf16>, vector<1x256xf32> -> vector<1x256xf32>
    %191 = arith.addf %185, %190 : vector<1x256xf32>
    %192 = vector.extract_strided_slice %160 {offsets = [5, 0], sizes = [1, 64], strides = [1, 1]} : vector<32x64xf32> to vector<1x64xf32>
    %193 = arith.truncf %192 : vector<1x64xf32> to vector<1x64xbf16>
    %c5_127 = arith.constant 5 : index
    %c0_128 = arith.constant 0 : index
    %c0_129 = arith.constant 0 : index
    %194 = vector.load %arg10[%c5_127, %c0_128, %c0_129] : memref<25x64x256xbf16, #tpu.memory_space<vmem>>, vector<1x64x256xbf16>
    %195 = vector.shape_cast %194 : vector<1x64x256xbf16> to vector<64x256xbf16>
    %cst_130 = arith.constant dense<0.000000e+00> : vector<1x256xf32>
    %196 = tpu.matmul %193, %195, %cst_130 {dimension_numbers = #tpu.dot_dimension_numbers<[1], [0], [0], [1], [0, 0, 1, 1], [], []>} : vector<1x64xbf16>, vector<64x256xbf16>, vector<1x256xf32> -> vector<1x256xf32>
    %197 = arith.addf %191, %196 : vector<1x256xf32>
    %198 = vector.extract_strided_slice %160 {offsets = [6, 0], sizes = [1, 64], strides = [1, 1]} : vector<32x64xf32> to vector<1x64xf32>
    %199 = arith.truncf %198 : vector<1x64xf32> to vector<1x64xbf16>
    %c6_131 = arith.constant 6 : index
    %c0_132 = arith.constant 0 : index
    %c0_133 = arith.constant 0 : index
    %200 = vector.load %arg10[%c6_131, %c0_132, %c0_133] : memref<25x64x256xbf16, #tpu.memory_space<vmem>>, vector<1x64x256xbf16>
    %201 = vector.shape_cast %200 : vector<1x64x256xbf16> to vector<64x256xbf16>
    %cst_134 = arith.constant dense<0.000000e+00> : vector<1x256xf32>
    %202 = tpu.matmul %199, %201, %cst_134 {dimension_numbers = #tpu.dot_dimension_numbers<[1], [0], [0], [1], [0, 0, 1, 1], [], []>} : vector<1x64xbf16>, vector<64x256xbf16>, vector<1x256xf32> -> vector<1x256xf32>
    %203 = arith.addf %197, %202 : vector<1x256xf32>
    %204 = vector.extract_strided_slice %160 {offsets = [7, 0], sizes = [1, 64], strides = [1, 1]} : vector<32x64xf32> to vector<1x64xf32>
    %205 = arith.truncf %204 : vector<1x64xf32> to vector<1x64xbf16>
    %c7_135 = arith.constant 7 : index
    %c0_136 = arith.constant 0 : index
    %c0_137 = arith.constant 0 : index
    %206 = vector.load %arg10[%c7_135, %c0_136, %c0_137] : memref<25x64x256xbf16, #tpu.memory_space<vmem>>, vector<1x64x256xbf16>
    %207 = vector.shape_cast %206 : vector<1x64x256xbf16> to vector<64x256xbf16>
    %cst_138 = arith.constant dense<0.000000e+00> : vector<1x256xf32>
    %208 = tpu.matmul %205, %207, %cst_138 {dimension_numbers = #tpu.dot_dimension_numbers<[1], [0], [0], [1], [0, 0, 1, 1], [], []>} : vector<1x64xbf16>, vector<64x256xbf16>, vector<1x256xf32> -> vector<1x256xf32>
    %209 = arith.addf %203, %208 : vector<1x256xf32>
    %210 = vector.extract_strided_slice %160 {offsets = [8, 0], sizes = [1, 64], strides = [1, 1]} : vector<32x64xf32> to vector<1x64xf32>
    %211 = arith.truncf %210 : vector<1x64xf32> to vector<1x64xbf16>
    %c8_139 = arith.constant 8 : index
    %c0_140 = arith.constant 0 : index
    %c0_141 = arith.constant 0 : index
    %212 = vector.load %arg10[%c8_139, %c0_140, %c0_141] : memref<25x64x256xbf16, #tpu.memory_space<vmem>>, vector<1x64x256xbf16>
    %213 = vector.shape_cast %212 : vector<1x64x256xbf16> to vector<64x256xbf16>
    %cst_142 = arith.constant dense<0.000000e+00> : vector<1x256xf32>
    %214 = tpu.matmul %211, %213, %cst_142 {dimension_numbers = #tpu.dot_dimension_numbers<[1], [0], [0], [1], [0, 0, 1, 1], [], []>} : vector<1x64xbf16>, vector<64x256xbf16>, vector<1x256xf32> -> vector<1x256xf32>
    %215 = arith.addf %209, %214 : vector<1x256xf32>
    %216 = vector.extract_strided_slice %160 {offsets = [9, 0], sizes = [1, 64], strides = [1, 1]} : vector<32x64xf32> to vector<1x64xf32>
    %217 = arith.truncf %216 : vector<1x64xf32> to vector<1x64xbf16>
    %c9_143 = arith.constant 9 : index
    %c0_144 = arith.constant 0 : index
    %c0_145 = arith.constant 0 : index
    %218 = vector.load %arg10[%c9_143, %c0_144, %c0_145] : memref<25x64x256xbf16, #tpu.memory_space<vmem>>, vector<1x64x256xbf16>
    %219 = vector.shape_cast %218 : vector<1x64x256xbf16> to vector<64x256xbf16>
    %cst_146 = arith.constant dense<0.000000e+00> : vector<1x256xf32>
    %220 = tpu.matmul %217, %219, %cst_146 {dimension_numbers = #tpu.dot_dimension_numbers<[1], [0], [0], [1], [0, 0, 1, 1], [], []>} : vector<1x64xbf16>, vector<64x256xbf16>, vector<1x256xf32> -> vector<1x256xf32>
    %221 = arith.addf %215, %220 : vector<1x256xf32>
    %222 = vector.extract_strided_slice %160 {offsets = [10, 0], sizes = [1, 64], strides = [1, 1]} : vector<32x64xf32> to vector<1x64xf32>
    %223 = arith.truncf %222 : vector<1x64xf32> to vector<1x64xbf16>
    %c10_147 = arith.constant 10 : index
    %c0_148 = arith.constant 0 : index
    %c0_149 = arith.constant 0 : index
    %224 = vector.load %arg10[%c10_147, %c0_148, %c0_149] : memref<25x64x256xbf16, #tpu.memory_space<vmem>>, vector<1x64x256xbf16>
    %225 = vector.shape_cast %224 : vector<1x64x256xbf16> to vector<64x256xbf16>
    %cst_150 = arith.constant dense<0.000000e+00> : vector<1x256xf32>
    %226 = tpu.matmul %223, %225, %cst_150 {dimension_numbers = #tpu.dot_dimension_numbers<[1], [0], [0], [1], [0, 0, 1, 1], [], []>} : vector<1x64xbf16>, vector<64x256xbf16>, vector<1x256xf32> -> vector<1x256xf32>
    %227 = arith.addf %221, %226 : vector<1x256xf32>
    %228 = vector.extract_strided_slice %160 {offsets = [11, 0], sizes = [1, 64], strides = [1, 1]} : vector<32x64xf32> to vector<1x64xf32>
    %229 = arith.truncf %228 : vector<1x64xf32> to vector<1x64xbf16>
    %c11_151 = arith.constant 11 : index
    %c0_152 = arith.constant 0 : index
    %c0_153 = arith.constant 0 : index
    %230 = vector.load %arg10[%c11_151, %c0_152, %c0_153] : memref<25x64x256xbf16, #tpu.memory_space<vmem>>, vector<1x64x256xbf16>
    %231 = vector.shape_cast %230 : vector<1x64x256xbf16> to vector<64x256xbf16>
    %cst_154 = arith.constant dense<0.000000e+00> : vector<1x256xf32>
    %232 = tpu.matmul %229, %231, %cst_154 {dimension_numbers = #tpu.dot_dimension_numbers<[1], [0], [0], [1], [0, 0, 1, 1], [], []>} : vector<1x64xbf16>, vector<64x256xbf16>, vector<1x256xf32> -> vector<1x256xf32>
    %233 = arith.addf %227, %232 : vector<1x256xf32>
    %234 = vector.extract_strided_slice %160 {offsets = [12, 0], sizes = [1, 64], strides = [1, 1]} : vector<32x64xf32> to vector<1x64xf32>
    %235 = arith.truncf %234 : vector<1x64xf32> to vector<1x64xbf16>
    %c12_155 = arith.constant 12 : index
    %c0_156 = arith.constant 0 : index
    %c0_157 = arith.constant 0 : index
    %236 = vector.load %arg10[%c12_155, %c0_156, %c0_157] : memref<25x64x256xbf16, #tpu.memory_space<vmem>>, vector<1x64x256xbf16>
    %237 = vector.shape_cast %236 : vector<1x64x256xbf16> to vector<64x256xbf16>
    %cst_158 = arith.constant dense<0.000000e+00> : vector<1x256xf32>
    %238 = tpu.matmul %235, %237, %cst_158 {dimension_numbers = #tpu.dot_dimension_numbers<[1], [0], [0], [1], [0, 0, 1, 1], [], []>} : vector<1x64xbf16>, vector<64x256xbf16>, vector<1x256xf32> -> vector<1x256xf32>
    %239 = arith.addf %233, %238 : vector<1x256xf32>
    %240 = vector.extract_strided_slice %160 {offsets = [13, 0], sizes = [1, 64], strides = [1, 1]} : vector<32x64xf32> to vector<1x64xf32>
    %241 = arith.truncf %240 : vector<1x64xf32> to vector<1x64xbf16>
    %c13_159 = arith.constant 13 : index
    %c0_160 = arith.constant 0 : index
    %c0_161 = arith.constant 0 : index
    %242 = vector.load %arg10[%c13_159, %c0_160, %c0_161] : memref<25x64x256xbf16, #tpu.memory_space<vmem>>, vector<1x64x256xbf16>
    %243 = vector.shape_cast %242 : vector<1x64x256xbf16> to vector<64x256xbf16>
    %cst_162 = arith.constant dense<0.000000e+00> : vector<1x256xf32>
    %244 = tpu.matmul %241, %243, %cst_162 {dimension_numbers = #tpu.dot_dimension_numbers<[1], [0], [0], [1], [0, 0, 1, 1], [], []>} : vector<1x64xbf16>, vector<64x256xbf16>, vector<1x256xf32> -> vector<1x256xf32>
    %245 = arith.addf %239, %244 : vector<1x256xf32>
    %246 = vector.extract_strided_slice %160 {offsets = [14, 0], sizes = [1, 64], strides = [1, 1]} : vector<32x64xf32> to vector<1x64xf32>
    %247 = arith.truncf %246 : vector<1x64xf32> to vector<1x64xbf16>
    %c14_163 = arith.constant 14 : index
    %c0_164 = arith.constant 0 : index
    %c0_165 = arith.constant 0 : index
    %248 = vector.load %arg10[%c14_163, %c0_164, %c0_165] : memref<25x64x256xbf16, #tpu.memory_space<vmem>>, vector<1x64x256xbf16>
    %249 = vector.shape_cast %248 : vector<1x64x256xbf16> to vector<64x256xbf16>
    %cst_166 = arith.constant dense<0.000000e+00> : vector<1x256xf32>
    %250 = tpu.matmul %247, %249, %cst_166 {dimension_numbers = #tpu.dot_dimension_numbers<[1], [0], [0], [1], [0, 0, 1, 1], [], []>} : vector<1x64xbf16>, vector<64x256xbf16>, vector<1x256xf32> -> vector<1x256xf32>
    %251 = arith.addf %245, %250 : vector<1x256xf32>
    %252 = vector.extract_strided_slice %160 {offsets = [15, 0], sizes = [1, 64], strides = [1, 1]} : vector<32x64xf32> to vector<1x64xf32>
    %253 = arith.truncf %252 : vector<1x64xf32> to vector<1x64xbf16>
    %c15_167 = arith.constant 15 : index
    %c0_168 = arith.constant 0 : index
    %c0_169 = arith.constant 0 : index
    %254 = vector.load %arg10[%c15_167, %c0_168, %c0_169] : memref<25x64x256xbf16, #tpu.memory_space<vmem>>, vector<1x64x256xbf16>
    %255 = vector.shape_cast %254 : vector<1x64x256xbf16> to vector<64x256xbf16>
    %cst_170 = arith.constant dense<0.000000e+00> : vector<1x256xf32>
    %256 = tpu.matmul %253, %255, %cst_170 {dimension_numbers = #tpu.dot_dimension_numbers<[1], [0], [0], [1], [0, 0, 1, 1], [], []>} : vector<1x64xbf16>, vector<64x256xbf16>, vector<1x256xf32> -> vector<1x256xf32>
    %257 = arith.addf %251, %256 : vector<1x256xf32>
    %258 = vector.extract_strided_slice %160 {offsets = [16, 0], sizes = [1, 64], strides = [1, 1]} : vector<32x64xf32> to vector<1x64xf32>
    %259 = arith.truncf %258 : vector<1x64xf32> to vector<1x64xbf16>
    %c16 = arith.constant 16 : index
    %c0_171 = arith.constant 0 : index
    %c0_172 = arith.constant 0 : index
    %260 = vector.load %arg10[%c16, %c0_171, %c0_172] : memref<25x64x256xbf16, #tpu.memory_space<vmem>>, vector<1x64x256xbf16>
    %261 = vector.shape_cast %260 : vector<1x64x256xbf16> to vector<64x256xbf16>
    %cst_173 = arith.constant dense<0.000000e+00> : vector<1x256xf32>
    %262 = tpu.matmul %259, %261, %cst_173 {dimension_numbers = #tpu.dot_dimension_numbers<[1], [0], [0], [1], [0, 0, 1, 1], [], []>} : vector<1x64xbf16>, vector<64x256xbf16>, vector<1x256xf32> -> vector<1x256xf32>
    %263 = arith.addf %257, %262 : vector<1x256xf32>
    %264 = vector.extract_strided_slice %160 {offsets = [17, 0], sizes = [1, 64], strides = [1, 1]} : vector<32x64xf32> to vector<1x64xf32>
    %265 = arith.truncf %264 : vector<1x64xf32> to vector<1x64xbf16>
    %c17 = arith.constant 17 : index
    %c0_174 = arith.constant 0 : index
    %c0_175 = arith.constant 0 : index
    %266 = vector.load %arg10[%c17, %c0_174, %c0_175] : memref<25x64x256xbf16, #tpu.memory_space<vmem>>, vector<1x64x256xbf16>
    %267 = vector.shape_cast %266 : vector<1x64x256xbf16> to vector<64x256xbf16>
    %cst_176 = arith.constant dense<0.000000e+00> : vector<1x256xf32>
    %268 = tpu.matmul %265, %267, %cst_176 {dimension_numbers = #tpu.dot_dimension_numbers<[1], [0], [0], [1], [0, 0, 1, 1], [], []>} : vector<1x64xbf16>, vector<64x256xbf16>, vector<1x256xf32> -> vector<1x256xf32>
    %269 = arith.addf %263, %268 : vector<1x256xf32>
    %270 = vector.extract_strided_slice %160 {offsets = [18, 0], sizes = [1, 64], strides = [1, 1]} : vector<32x64xf32> to vector<1x64xf32>
    %271 = arith.truncf %270 : vector<1x64xf32> to vector<1x64xbf16>
    %c18 = arith.constant 18 : index
    %c0_177 = arith.constant 0 : index
    %c0_178 = arith.constant 0 : index
    %272 = vector.load %arg10[%c18, %c0_177, %c0_178] : memref<25x64x256xbf16, #tpu.memory_space<vmem>>, vector<1x64x256xbf16>
    %273 = vector.shape_cast %272 : vector<1x64x256xbf16> to vector<64x256xbf16>
    %cst_179 = arith.constant dense<0.000000e+00> : vector<1x256xf32>
    %274 = tpu.matmul %271, %273, %cst_179 {dimension_numbers = #tpu.dot_dimension_numbers<[1], [0], [0], [1], [0, 0, 1, 1], [], []>} : vector<1x64xbf16>, vector<64x256xbf16>, vector<1x256xf32> -> vector<1x256xf32>
    %275 = arith.addf %269, %274 : vector<1x256xf32>
    %276 = vector.extract_strided_slice %160 {offsets = [19, 0], sizes = [1, 64], strides = [1, 1]} : vector<32x64xf32> to vector<1x64xf32>
    %277 = arith.truncf %276 : vector<1x64xf32> to vector<1x64xbf16>
    %c19 = arith.constant 19 : index
    %c0_180 = arith.constant 0 : index
    %c0_181 = arith.constant 0 : index
    %278 = vector.load %arg10[%c19, %c0_180, %c0_181] : memref<25x64x256xbf16, #tpu.memory_space<vmem>>, vector<1x64x256xbf16>
    %279 = vector.shape_cast %278 : vector<1x64x256xbf16> to vector<64x256xbf16>
    %cst_182 = arith.constant dense<0.000000e+00> : vector<1x256xf32>
    %280 = tpu.matmul %277, %279, %cst_182 {dimension_numbers = #tpu.dot_dimension_numbers<[1], [0], [0], [1], [0, 0, 1, 1], [], []>} : vector<1x64xbf16>, vector<64x256xbf16>, vector<1x256xf32> -> vector<1x256xf32>
    %281 = arith.addf %275, %280 : vector<1x256xf32>
    %282 = vector.extract_strided_slice %160 {offsets = [20, 0], sizes = [1, 64], strides = [1, 1]} : vector<32x64xf32> to vector<1x64xf32>
    %283 = arith.truncf %282 : vector<1x64xf32> to vector<1x64xbf16>
    %c20 = arith.constant 20 : index
    %c0_183 = arith.constant 0 : index
    %c0_184 = arith.constant 0 : index
    %284 = vector.load %arg10[%c20, %c0_183, %c0_184] : memref<25x64x256xbf16, #tpu.memory_space<vmem>>, vector<1x64x256xbf16>
    %285 = vector.shape_cast %284 : vector<1x64x256xbf16> to vector<64x256xbf16>
    %cst_185 = arith.constant dense<0.000000e+00> : vector<1x256xf32>
    %286 = tpu.matmul %283, %285, %cst_185 {dimension_numbers = #tpu.dot_dimension_numbers<[1], [0], [0], [1], [0, 0, 1, 1], [], []>} : vector<1x64xbf16>, vector<64x256xbf16>, vector<1x256xf32> -> vector<1x256xf32>
    %287 = arith.addf %281, %286 : vector<1x256xf32>
    %288 = vector.extract_strided_slice %160 {offsets = [21, 0], sizes = [1, 64], strides = [1, 1]} : vector<32x64xf32> to vector<1x64xf32>
    %289 = arith.truncf %288 : vector<1x64xf32> to vector<1x64xbf16>
    %c21 = arith.constant 21 : index
    %c0_186 = arith.constant 0 : index
    %c0_187 = arith.constant 0 : index
    %290 = vector.load %arg10[%c21, %c0_186, %c0_187] : memref<25x64x256xbf16, #tpu.memory_space<vmem>>, vector<1x64x256xbf16>
    %291 = vector.shape_cast %290 : vector<1x64x256xbf16> to vector<64x256xbf16>
    %cst_188 = arith.constant dense<0.000000e+00> : vector<1x256xf32>
    %292 = tpu.matmul %289, %291, %cst_188 {dimension_numbers = #tpu.dot_dimension_numbers<[1], [0], [0], [1], [0, 0, 1, 1], [], []>} : vector<1x64xbf16>, vector<64x256xbf16>, vector<1x256xf32> -> vector<1x256xf32>
    %293 = arith.addf %287, %292 : vector<1x256xf32>
    %294 = vector.extract_strided_slice %160 {offsets = [22, 0], sizes = [1, 64], strides = [1, 1]} : vector<32x64xf32> to vector<1x64xf32>
    %295 = arith.truncf %294 : vector<1x64xf32> to vector<1x64xbf16>
    %c22 = arith.constant 22 : index
    %c0_189 = arith.constant 0 : index
    %c0_190 = arith.constant 0 : index
    %296 = vector.load %arg10[%c22, %c0_189, %c0_190] : memref<25x64x256xbf16, #tpu.memory_space<vmem>>, vector<1x64x256xbf16>
    %297 = vector.shape_cast %296 : vector<1x64x256xbf16> to vector<64x256xbf16>
    %cst_191 = arith.constant dense<0.000000e+00> : vector<1x256xf32>
    %298 = tpu.matmul %295, %297, %cst_191 {dimension_numbers = #tpu.dot_dimension_numbers<[1], [0], [0], [1], [0, 0, 1, 1], [], []>} : vector<1x64xbf16>, vector<64x256xbf16>, vector<1x256xf32> -> vector<1x256xf32>
    %299 = arith.addf %293, %298 : vector<1x256xf32>
    %300 = vector.extract_strided_slice %160 {offsets = [23, 0], sizes = [1, 64], strides = [1, 1]} : vector<32x64xf32> to vector<1x64xf32>
    %301 = arith.truncf %300 : vector<1x64xf32> to vector<1x64xbf16>
    %c23 = arith.constant 23 : index
    %c0_192 = arith.constant 0 : index
    %c0_193 = arith.constant 0 : index
    %302 = vector.load %arg10[%c23, %c0_192, %c0_193] : memref<25x64x256xbf16, #tpu.memory_space<vmem>>, vector<1x64x256xbf16>
    %303 = vector.shape_cast %302 : vector<1x64x256xbf16> to vector<64x256xbf16>
    %cst_194 = arith.constant dense<0.000000e+00> : vector<1x256xf32>
    %304 = tpu.matmul %301, %303, %cst_194 {dimension_numbers = #tpu.dot_dimension_numbers<[1], [0], [0], [1], [0, 0, 1, 1], [], []>} : vector<1x64xbf16>, vector<64x256xbf16>, vector<1x256xf32> -> vector<1x256xf32>
    %305 = arith.addf %299, %304 : vector<1x256xf32>
    %306 = vector.extract_strided_slice %160 {offsets = [24, 0], sizes = [1, 64], strides = [1, 1]} : vector<32x64xf32> to vector<1x64xf32>
    %307 = arith.truncf %306 : vector<1x64xf32> to vector<1x64xbf16>
    %c24 = arith.constant 24 : index
    %c0_195 = arith.constant 0 : index
    %c0_196 = arith.constant 0 : index
    %308 = vector.load %arg10[%c24, %c0_195, %c0_196] : memref<25x64x256xbf16, #tpu.memory_space<vmem>>, vector<1x64x256xbf16>
    %309 = vector.shape_cast %308 : vector<1x64x256xbf16> to vector<64x256xbf16>
    %cst_197 = arith.constant dense<0.000000e+00> : vector<1x256xf32>
    %310 = tpu.matmul %307, %309, %cst_197 {dimension_numbers = #tpu.dot_dimension_numbers<[1], [0], [0], [1], [0, 0, 1, 1], [], []>} : vector<1x64xbf16>, vector<64x256xbf16>, vector<1x256xf32> -> vector<1x256xf32>
    %311 = arith.addf %305, %310 : vector<1x256xf32>
    %c0_198 = arith.constant 0 : index
    %c0_199 = arith.constant 0 : index
    %312 = vector.load %arg11[%c0_198, %c0_199] : memref<1x256xf32, #tpu.memory_space<vmem>>, vector<1x256xf32>
    %313 = arith.addf %311, %312 : vector<1x256xf32>
    %cst_200 = arith.constant 0.000000e+00 : f32
    %314 = vector.broadcast %cst_200 : f32 to vector<1x256xf32>
    %315 = arith.maximumf %313, %314 : vector<1x256xf32>
    %316 = vector.shape_cast %315 : vector<1x256xf32> to vector<1x1x256xf32>
    %c0_201 = arith.constant 0 : index
    %c0_202 = arith.constant 0 : index
    %c0_203 = arith.constant 0 : index
    %317 = vector.load %arg14[%c0_201, %c0_202, %c0_203] : memref<1x1x256xf32, #tpu.memory_space<vmem>>, vector<1x1x256xf32>
    tpu.vector_store %arg14[%c0_201, %c0_202, %c0_203], %316 {strides = array<i32>} : memref<1x1x256xf32, #tpu.memory_space<vmem>>, vector<1x1x256xf32>,
    %318 = arith.truncf %315 : vector<1x256xf32> to vector<1x256xbf16>
    %c0_204 = arith.constant 0 : index
    %c0_205 = arith.constant 0 : index
    %319 = vector.load %arg12[%c0_204, %c0_205] : memref<256x128xbf16, #tpu.memory_space<vmem>>, vector<256x128xbf16>
    %cst_206 = arith.constant dense<0.000000e+00> : vector<1x128xf32>
    %320 = tpu.matmul %318, %319, %cst_206 {dimension_numbers = #tpu.dot_dimension_numbers<[1], [0], [0], [1], [0, 0, 1, 1], [], []>} : vector<1x256xbf16>, vector<256x128xbf16>, vector<1x128xf32> -> vector<1x128xf32>
    %c0_207 = arith.constant 0 : index
    %c0_208 = arith.constant 0 : index
    %321 = vector.load %arg13[%c0_207, %c0_208] : memref<1x128xf32, #tpu.memory_space<vmem>>, vector<1x128xf32>
    %322 = arith.addf %320, %321 : vector<1x128xf32>
    %323 = vector.shape_cast %322 : vector<1x128xf32> to vector<1x1x128xf32>
    %c0_209 = arith.constant 0 : index
    %c0_210 = arith.constant 0 : index
    %c0_211 = arith.constant 0 : index
    %324 = vector.load %arg15[%c0_209, %c0_210, %c0_211] : memref<1x1x128xf32, #tpu.memory_space<vmem>>, vector<1x1x128xf32>
    tpu.vector_store %arg15[%c0_209, %c0_210, %c0_211], %323 {strides = array<i32>} : memref<1x1x128xf32, #tpu.memory_space<vmem>>, vector<1x1x128xf32>,
    return
  }
  func.func @transform_0(%arg0: i32) -> (i32, i32, i32) {
    %c0_i32 = arith.constant 0 : i32
    %c0_i32_0 = arith.constant 0 : i32
    %c0_i32_1 = arith.constant 0 : i32
    return %arg0, %c0_i32, %c0_i32_0 : i32, i32, i32
  }
  func.func @transform_1(%arg0: i32) -> (i32, i32) {
    %c0_i32 = arith.constant 0 : i32
    %c0_i32_0 = arith.constant 0 : i32
    %c0_i32_1 = arith.constant 0 : i32
    return %c0_i32, %c0_i32_0 : i32, i32
  }
  func.func @transform_2(%arg0: i32) -> (i32, i32) {
    %c0_i32 = arith.constant 0 : i32
    %c0_i32_0 = arith.constant 0 : i32
    %c0_i32_1 = arith.constant 0 : i32
    return %c0_i32, %c0_i32_0 : i32, i32
  }
  func.func @transform_3(%arg0: i32) -> (i32, i32) {
    %c0_i32 = arith.constant 0 : i32
    %c0_i32_0 = arith.constant 0 : i32
    %c0_i32_1 = arith.constant 0 : i32
    return %c0_i32, %c0_i32_0 : i32, i32
  }
  func.func @transform_4(%arg0: i32) -> (i32, i32, i32) {
    %c0_i32 = arith.constant 0 : i32
    %c0_i32_0 = arith.constant 0 : i32
    %c0_i32_1 = arith.constant 0 : i32
    %c0_i32_2 = arith.constant 0 : i32
    return %c0_i32, %c0_i32_0, %c0_i32_1 : i32, i32, i32
  }
  func.func @transform_5(%arg0: i32) -> (i32, i32) {
    %c0_i32 = arith.constant 0 : i32
    %c0_i32_0 = arith.constant 0 : i32
    %c0_i32_1 = arith.constant 0 : i32
    return %c0_i32, %c0_i32_0 : i32, i32
  }
  func.func @transform_6(%arg0: i32) -> (i32, i32) {
    %c0_i32 = arith.constant 0 : i32
    %c0_i32_0 = arith.constant 0 : i32
    %c0_i32_1 = arith.constant 0 : i32
    return %c0_i32, %c0_i32_0 : i32, i32
  }
  func.func @transform_7(%arg0: i32) -> (i32, i32, i32) {
    %c0_i32 = arith.constant 0 : i32
    %c0_i32_0 = arith.constant 0 : i32
    %c0_i32_1 = arith.constant 0 : i32
    %c0_i32_2 = arith.constant 0 : i32
    return %c0_i32, %c0_i32_0, %c0_i32_1 : i32, i32, i32
  }
  func.func @transform_8(%arg0: i32) -> (i32, i32) {
    %c0_i32 = arith.constant 0 : i32
    %c0_i32_0 = arith.constant 0 : i32
    %c0_i32_1 = arith.constant 0 : i32
    return %c0_i32, %c0_i32_0 : i32, i32
  }
  func.func @transform_9(%arg0: i32) -> (i32, i32, i32) {
    %c0_i32 = arith.constant 0 : i32
    %c0_i32_0 = arith.constant 0 : i32
    %c0_i32_1 = arith.constant 0 : i32
    %c0_i32_2 = arith.constant 0 : i32
    return %c0_i32, %c0_i32_0, %c0_i32_1 : i32, i32, i32
  }
  func.func @transform_10(%arg0: i32) -> (i32, i32) {
    %c0_i32 = arith.constant 0 : i32
    %c0_i32_0 = arith.constant 0 : i32
    %c0_i32_1 = arith.constant 0 : i32
    return %c0_i32, %c0_i32_0 : i32, i32
  }
  func.func @transform_11(%arg0: i32) -> (i32, i32) {
    %c0_i32 = arith.constant 0 : i32
    %c0_i32_0 = arith.constant 0 : i32
    %c0_i32_1 = arith.constant 0 : i32
    return %c0_i32, %c0_i32_0 : i32, i32
  }
  func.func @transform_12(%arg0: i32) -> (i32, i32) {
    %c0_i32 = arith.constant 0 : i32
    %c0_i32_0 = arith.constant 0 : i32
    %c0_i32_1 = arith.constant 0 : i32
    return %c0_i32, %c0_i32_0 : i32, i32
  }
  func.func @transform_13(%arg0: i32) -> (i32, i32, i32) {
    %c0_i32 = arith.constant 0 : i32
    %c0_i32_0 = arith.constant 0 : i32
    %c0_i32_1 = arith.constant 0 : i32
    return %arg0, %c0_i32, %c0_i32_0 : i32, i32, i32
  }
  func.func @transform_14(%arg0: i32) -> (i32, i32, i32) {
    %c0_i32 = arith.constant 0 : i32
    %c0_i32_0 = arith.constant 0 : i32
    %c0_i32_1 = arith.constant 0 : i32
    return %arg0, %c0_i32, %c0_i32_0 : i32, i32, i32
  }
}

</mosaic_0001>

<bundles_post_ra>
// kernel: net_forward.1
= control target key start
LH: loop header
LB: loop body
LE: loop exit
PB: predicated region body
PF: predicated region fallthrough
CT: control target
= control target key end

     0   :  { %20 = vsyncpa [#allocation3], 0  ;;  %s11246_s0 = inlined_call_operand.vmem [shape: bf16[2,512,256], index: 0, kind: input, shape index: {}]   ;;  %s11247_s1 = inlined_call_operand.vmem [shape: bf16[256,32], index: 1, kind: input, shape index: {}]   ;;  %s11248_s2 = inlined_call_operand.vmem [shape: f32[1,32], index: 2, kind: input, shape index: {}]   ;;  %s11249_s3 = inlined_call_operand.vmem [shape: bf16[512,128], index: 3, kind: input, shape index: {}]   ;;  %s11250_s4 = inlined_call_operand.vmem [shape: bf16[16,32,64], index: 4, kind: input, shape index: {}]   ;;  %s11251_s5 = inlined_call_operand.vmem [shape: f32[1,64], index: 5, kind: input, shape index: {}]   ;;  %s11252_s6 = inlined_call_operand.vmem [shape: bf16[288,32], index: 6, kind: input, shape index: {}]   ;;  %s11253_s7 = inlined_call_operand.vmem [shape: bf16[9,64,64], index: 7, kind: input, shape index: {}]   ;;  %s11254_s8 = inlined_call_operand.vmem [shape: f32[1,64], index: 8, kind: input, shape index: {}]   ;;  %s11255_s9 = inlined_call_operand.vmem [shape: bf16[25,64,256], index: 9, kind: input, shape index: {}]   ;;  %s11256_s10 = inlined_call_operand.vmem [shape: f32[1,256], index: 10, kind: input, shape index: {}]   ;;  %s11257_s11 = inlined_call_operand.vmem [shape: bf16[256,128], index: 11, kind: input, shape index: {}]   ;;  %s11258_s12 = inlined_call_operand.vmem [shape: f32[1,128], index: 12, kind: input, shape index: {}]   ;;  %s11259_s13 = inlined_call_operand.vmem [shape: f32[2,1,256], index: 13, kind: output, shape index: {0}]   ;;  %s11260_s14 = inlined_call_operand.hbm [shape: f32[2,1,128], index: 14, kind: output, shape index: {1}]  }
   0x1   :  { %22 = vsyncpa [#allocation3 + $0x1], 0  ;;  %s8817_s29 = smov 0   ;;  %s8819_s30 = smov 0  }
   0x2   :  { %s8821_s15 = smov 0   ;;  %s8823_s16 = smov 0  }
   0x3 LB: > { %11267 = sst [smem:[#allocation5_spill]] %s8728_s29  ;;  %s8838_s17 = sadd.s32 4294967295, %s8740_s16   ;;  %s8740_s16 = sphi %s8823_s16, %s11278_s16   ;;  %s8736_s15 = sphi %s8821_s15, %s11280_s15   ;;  %s8732_s30 = sphi %s8819_s30, %s11282_s30   ;;  %s8728_s29 = sphi %s8817_s29, %s11281_s29  }
   0x4   : > { %11268 = sst [smem:[#allocation6_spill]] %s8736_s15  ;;  %s6113_s18 = sadd.s32 4294967294, %s8740_s16  }
   0x5   : > { %11269 = sst [smem:[#allocation7_spill]] %s8740_s16  ;;  %s8842_s19 = sadd.s32 1, %s8740_s16  }
   0x6   : > { %11270 = sst [smem:[#allocation8_spill]] %s8842_s19  ;;  %s339_s20 = sadd.s32 1, %s8736_s15 }
   0x7   : > { %s336_s21 = ssub.s32 %s8740_s16, %s8842_s19  ;;  %p349_p0 = scmp.ne.s32.totalorder %s8736_s15, %s8732_s30 }
   0x8   : > { %p337_p1 = scmp.eq.s32.totalorder %s336_s21, 0  ;;  %p350_p2 = scmp.eq.s32.totalorder %s8838_s17, 1 }
   0x9   : > { %p355_p3 = scmp.ne.s32.totalorder %s8732_s30, %s8728_s29  ;;  %p356_p4 = scmp.eq.s32.totalorder %s6113_s18, 1 }
   0xa   : > { %s8853_s22 = scalar_select %p337_p1, %s8736_s15, %s339_s20  }
   0xb   : > { %p8855_p5 = por %p350_p2, %p349_p0  ;;  %p8859_p6 = por %p356_p4, %p355_p3 }
   0xc   : > { %11271 = sst [smem:[#allocation9_spill]] %s8853_s22  ;;  %p6116_p7 = scmp.ge.s32.totalorder %s8740_s16, 1 }
   0xd   : > { %s11273_s24 = scalar_select %p8859_p6, 1, 0 }
   0xe   : > { %p418_p8 = scmp.lt.s32.totalorder %s8740_s16, 3 }
   0xf   : > { %11274 = sst [smem:[#allocation10_spill]] %s11273_s24 }
  0x10   : > { %p419_p9 = pnand %p6116_p7, %p418_p8 }
  0x11   : > { %p467_p10 = scmp.lt.s32.totalorder (!%p419_p9), %s8838_s17, 1  ;;  %s6030_s22 = scalar_lea.hbm (!%p419_p9), %s11260_s14, %s8838_s17 }
  0x12   : > { %422 = sbr.rel (%p419_p9) target bundleno = 2597 (0xa25), region = 72  ;;  %s6034_s28 = sshll.u32 (!%p419_p9), %s6030_s22, 4  ;;  %s6035_s28 = int_to_ptr.hbm [resolvable:$true] %s6034_s28 }
  0x13   : > { %s8692_s18 = sshra.s32 (!%p419_p9), %s6035_s28, 4  ;;  %s8698_s24 = scalar_lea.hbm (!%p419_p9), %s11260_s14, 2  ;;  %s8693_s18 = int_to_ptr.hbm [resolvable:$true] %s8692_s18 }
  0x14   : > { %p8699_p0 = scmp.lt.s32.totalorder (!%p419_p9), %s8693_s18, %s11260_s14 }
  0x17   : > { %v8284_v0 = vld [vmem:[%s11247_s1 + $0x38] sm:$0xff]  ;;  %v8283_v2 = vld [vmem:[%s11247_s1 + $0x30] sm:$0xff]  ;;  %v8282_v4 = vld [vmem:[%s11247_s1 + $0x28] sm:$0xff]  ;;  %s8897_s26 = scalar_select %p467_p10, %s8838_s17, 1  ;;  %vm1971_vm0 = vcmask 261120   ;;  %vm3208_vm1 = vcmask 523264  }
  0x18   : > { %v8292_v1 = vld [vmem:[%s11247_s1 + $0x78] sm:$0xff]  ;;  %993 = vmatpush.bf16.msra.mxu0 %v8284_v0  ;;  %v8291_v3 = vld [vmem:[%s11247_s1 + $0x70] sm:$0xff]  ;;  %v8290_v5 = vld [vmem:[%s11247_s1 + $0x68] sm:$0xff]  ;;  %vm5848_vm2 = vcmask 1040384   ;;  %s8694_s17 = scalar_lea.hbm %s8693_s18, 1 }
  0x19   : > { %1162 = vmatpush.bf16.msra.mxu1 %v8292_v1  ;;  %v8281_v6 = vld [vmem:[%s11247_s1 + $0x20] sm:$0xff]  ;;  %v8280_v8 = vld [vmem:[%s11247_s1 + $0x18] sm:$0xff]  ;;  %v8279_v10 = vld [vmem:[%s11247_s1 + $0x10] sm:$0xff]  ;;  %s8212_s20 = sshll.u32 %s8897_s26, 9  ;;  %s6119_s19 = sshll.u32 %s8897_s26, 1 }
  0x1a   : > { %v8289_v7 = vld [vmem:[%s11247_s1 + $0x60] sm:$0xff]  ;;  %v8288_v9 = vld [vmem:[%s11247_s1 + $0x58] sm:$0xff]  ;;  %v8287_v11 = vld [vmem:[%s11247_s1 + $0x50] sm:$0xff]  ;;  %s8915_s27 = scalar_lea.vmem %s11246_s0, %s8212_s20  ;;  %s475_s16 = scalar_lea.vmem %s11259_s13, %s6119_s19 }
  0x1b   : > { %v8278_v12 = vld [vmem:[%s11247_s1 + $0x8] sm:$0xff]  ;;  %v8277_v14 = vld [vmem:[%s11247_s1] sm:$0xff]  ;;  %v6130_v22 = vld [vmem:[%s8915_s27 + $0x10] sm:$0xf]  ;;  %s465_s26 = sand.u32 1, %s8732_s30   ;;  %p8695_p11 = scmp.ne.s32.totalorder %s8693_s18, %s8694_s17 }
  0x1c   : > { %994 = vmatpush.bf16.msra.mxu0 %v8283_v2  ;;  %v8286_v13 = vld [vmem:[%s11247_s1 + $0x48] sm:$0xff]  ;;  %v8285_v15 = vld [vmem:[%s11247_s1 + $0x40] sm:$0xff]  ;;  %v8216_v23 = vld [vmem:[%s8915_s27 + $0x14] sm:$0xf0]  ;;  %s466_s15 = scalar_lea.vmem [#allocation2], %s465_s26  ;;  %s6019_s19 = scalar_lea.sflag [#allocation3], %s465_s26 }
  0x1d   : > { %1163 = vmatpush.bf16.msra.mxu1 %v8291_v3  ;;  %v6122_v16 = vld [vmem:[%s8915_s27] sm:$0xf]  ;;  %v8214_v17 = vld [vmem:[%s8915_s27 + $0x4] sm:$0xf0]  ;;  %v8213_v18 = vld [vmem:[%s8915_s27 + $0x4] sm:$0xf]  ;;  %v6131_v26 = vor.u32 %v8216_v23, %v6130_v22  ;;  %p8696_p12 = pnand %p8695_p11, %p8855_p5  ;;  %p8700_p1 = scmp.lt.s32.totalorder %s8698_s24, %s8694_s17 }
  0x1e   : > { %v6124_v19 = vld [vmem:[%s8915_s27 + $0x8] sm:$0xf0]  ;;  %v6123_v20 = vor.u32 %v8214_v17, %v6122_v16  ;;  %v8215_v24 = vld [vmem:[%s8915_s27 + $0x14] sm:$0xf]  ;;  %v6132_v25 = vld [vmem:[%s8915_s27 + $0x18] sm:$0xf0] }
  0x1f   : > { %v6127_v21 = vor.u32 %v8213_v18, %v6124_v19  ;;  %v6135_v27 = vor.u32 %v8215_v24, %v6132_v25  ;;  %v6138_v28 = vld [vmem:[%s8915_s27 + $0x20] sm:$0xf]  ;;  %v8218_v29 = vld [vmem:[%s8915_s27 + $0x24] sm:$0xf0]  ;;  %v8217_v30 = vld [vmem:[%s8915_s27 + $0x24] sm:$0xf]  ;;  %p8697_p13 = pneg %p8696_p12  ;;  %p8701_p2 = por %p8700_p1, %p8699_p0 }
  0x20   : > { %995 = vmatpush.bf16.msra.mxu0 %v8282_v4  ;;  %v6140_v31 = vld [vmem:[%s8915_s27 + $0x28] sm:$0xf0]  ;;  %v6139_v32 = vor.u32 %v8218_v29, %v6138_v28  ;;  %v6146_v34 = vld [vmem:[%s8915_s27 + $0x30] sm:$0xf]  ;;  %v8220_v35 = vld [vmem:[%s8915_s27 + $0x34] sm:$0xf0] }
  0x21   : > { %1164 = vmatpush.bf16.msra.mxu1 %v8290_v5  ;;  %v6143_v33 = vor.u32 %v8217_v30, %v6140_v31  ;;  %v8219_v36 = vld [vmem:[%s8915_s27 + $0x34] sm:$0xf]  ;;  %v6148_v37 = vld [vmem:[%s8915_s27 + $0x38] sm:$0xf0]  ;;  %v6147_v38 = vor.u32 %v8220_v35, %v6146_v34  ;;  %v6154_v40 = vld [vmem:[%s8915_s27 + $0x40] sm:$0xf]  ;;  %p8702_p3 = pnand %p8701_p2, %p8697_p13 }
  0x22   : > { %v6151_v39 = vor.u32 %v8219_v36, %v6148_v37  ;;  %v8222_v41 = vld [vmem:[%s8915_s27 + $0x44] sm:$0xf0]  ;;  %v8221_v42 = vld [vmem:[%s8915_s27 + $0x44] sm:$0xf]  ;;  %v6156_v43 = vld [vmem:[%s8915_s27 + $0x48] sm:$0xf0] }
  0x23   : > { %v6155_v44 = vor.u32 %v8222_v41, %v6154_v40  ;;  %v6159_v45 = vor.u32 %v8221_v42, %v6156_v43  ;;  %v6162_v46 = vld [vmem:[%s8915_s27 + $0x50] sm:$0xf]  ;;  %v8224_v47 = vld [vmem:[%s8915_s27 + $0x54] sm:$0xf0]  ;;  %v8223_v48 = vld [vmem:[%s8915_s27 + $0x54] sm:$0xf] }
  0x24   : > { %996 = vmatpush.bf16.msra.mxu0 %v8281_v6  ;;  %v6164_v49 = vld [vmem:[%s8915_s27 + $0x58] sm:$0xf0]  ;;  %v6163_v50 = vor.u32 %v8224_v47, %v6162_v46  ;;  %v6170_v52 = vld [vmem:[%s8915_s27 + $0x60] sm:$0xf]  ;;  %v8226_v53 = vld [vmem:[%s8915_s27 + $0x64] sm:$0xf0] }
  0x25   : > { %1165 = vmatpush.bf16.msra.mxu1 %v8289_v7  ;;  %v6167_v51 = vor.u32 %v8223_v48, %v6164_v49  ;;  %v8225_v54 = vld [vmem:[%s8915_s27 + $0x64] sm:$0xf]  ;;  %v6172_v55 = vld [vmem:[%s8915_s27 + $0x68] sm:$0xf0]  ;;  %v6171_v56 = vor.u32 %v8226_v53, %v6170_v52  ;;  %v6178_v58 = vld [vmem:[%s8915_s27 + $0x70] sm:$0xf] }
  0x26   : > { %v6175_v57 = vor.u32 %v8225_v54, %v6172_v55  ;;  %v8228_v59 = vld [vmem:[%s8915_s27 + $0x74] sm:$0xf0]  ;;  %v8227_v60 = vld [vmem:[%s8915_s27 + $0x74] sm:$0xf]  ;;  %v6180_v61 = vld [vmem:[%s8915_s27 + $0x78] sm:$0xf0] }
  0x27   : > { %v6179_v62 = vor.u32 %v8228_v59, %v6178_v58  ;;  %v6183_v63 = vor.u32 %v8227_v60, %v6180_v61  ;;  %v6186_v0 = vld [vmem:[%s8915_s27 + $0x80] sm:$0xf]  ;;  %v8230_v1 = vld [vmem:[%s8915_s27 + $0x84] sm:$0xf0]  ;;  %v8229_v2 = vld [vmem:[%s8915_s27 + $0x84] sm:$0xf] }
  0x28   : > { %997 = vmatpush.bf16.msra.mxu0 %v8280_v8  ;;  %v6188_v3 = vld [vmem:[%s8915_s27 + $0x88] sm:$0xf0]  ;;  %v8962_v4 = vld [vmem:[%s11248_s2] ss:$0 sm:$0xff]  ;;  %v6187_v5 = vor.u32 %v8230_v1, %v6186_v0  ;;  %v8232_v16 = vld [vmem:[%s8915_s27 + $0x94] sm:$0xf0] }
  0x29   : > { %1166 = vmatpush.bf16.msra.mxu1 %v8288_v9  ;;  %v6191_v6 = vor.u32 %v8229_v2, %v6188_v3  ;;  %v8231_v17 = vld [vmem:[%s8915_s27 + $0x94] sm:$0xf]  ;;  %v6196_v18 = vld [vmem:[%s8915_s27 + $0x98] sm:$0xf0]  ;;  %v6202_v29 = vld [vmem:[%s8915_s27 + $0xa0] sm:$0xf] }
  0x2a   : > { %v8234_v30 = vld [vmem:[%s8915_s27 + $0xa4] sm:$0xf0]  ;;  %v8233_v31 = vld [vmem:[%s8915_s27 + $0xa4] sm:$0xf]  ;;  %v6210_v43 = vld [vmem:[%s8915_s27 + $0xb0] sm:$0xf] }
  0x2b   : > { %v6212_v46 = vld [vmem:[%s8915_s27 + $0xb8] sm:$0xf0]  ;;  %v8238_v58 = vld [vmem:[%s8915_s27 + $0xc4] sm:$0xf0]  ;;  %v8237_v59 = vld [vmem:[%s8915_s27 + $0xc4] sm:$0xf] }
  0x2c   : > { %998 = vmatpush.bf16.msra.mxu0 %v8279_v10  ;;  %v6220_v60 = vld [vmem:[%s8915_s27 + $0xc8] sm:$0xf0] }
  0x2d   : > { %1167 = vmatpush.bf16.msra.mxu1 %v8287_v11 }
  0x30   : > { %999 = vmatpush.bf16.msra.mxu0 %v8278_v12 }
  0x31   : > { %1168 = vmatpush.bf16.msra.mxu1 %v8286_v13 }
  0x34   : > { %1000 = vmatpush.bf16.msra.mxu0 %v8277_v14 }
  0x35   : > { %1169 = vmatpush.bf16.msra.mxu1 %v8285_v15  ;;  %v6194_v15 = vld [vmem:[%s8915_s27 + $0x90] sm:$0xf] }
  0x36   : > { %v6195_v19 = vor.u32 %v8232_v16, %v6194_v15 }
  0x37   : > { %1001 = vmatmul.bf16.vlgmr.msra.gmra.mxu0 %v6123_v20  ;;  %v6199_v20 = vor.u32 %v8231_v17, %v6196_v18 }
  0x38   : > { %1170 = vmatmul.bf16.vlgmr.msra.gmra.mxu1 %v6127_v21 }
  0x47   : > { %1006 = vmatmul.bf16.gmra.mxu0 %v6131_v26 }
  0x48   : > { %1175 = vmatmul.bf16.gmra.mxu1 %v6135_v27 }
  0x57   : > { %1011 = vmatmul.bf16.gmra.mxu0 %v6139_v32  ;;  %v6204_v32 = vld [vmem:[%s8915_s27 + $0xa8] sm:$0xf0] }
  0x58   : > { %1180 = vmatmul.bf16.gmra.mxu1 %v6143_v33  ;;  %v6203_v33 = vor.u32 %v8234_v30, %v6202_v29  ;;  %v6207_v34 = vor.u32 %v8233_v31, %v6204_v32  ;;  %v6236_v29 = vld [vmem:[%s8915_s27 + $0xe8] sm:$0xf0] }
  0x67   : > { %1016 = vmatmul.bf16.gmra.mxu0 %v6147_v38 }
  0x68   : > { %1185 = vmatmul.bf16.gmra.mxu1 %v6151_v39 }
  0x77   : > { %1021 = vmatmul.bf16.gmra.mxu0 %v6155_v44  ;;  %v8236_v44 = vld [vmem:[%s8915_s27 + $0xb4] sm:$0xf0] }
  0x78   : > { %1190 = vmatmul.bf16.gmra.mxu1 %v6159_v45  ;;  %v8235_v45 = vld [vmem:[%s8915_s27 + $0xb4] sm:$0xf]  ;;  %v6211_v47 = vor.u32 %v8236_v44, %v6210_v43  ;;  %v8244_v43 = vld [vmem:[%s8915_s27 + $0xf4] sm:$0xf0] }
  0x79   : > { %v6215_v48 = vor.u32 %v8235_v45, %v6212_v46  ;;  %v8243_v44 = vld [vmem:[%s8915_s27 + $0xf4] sm:$0xf]  ;;  %v6244_v45 = vld [vmem:[%s8915_s27 + $0xf8] sm:$0xf0] }
  0x87   : > { %1026 = vmatmul.bf16.gmra.mxu0 %v6163_v50 }
  0x88   : > { %1195 = vmatmul.bf16.gmra.mxu1 %v6167_v51 }
  0x97   : > { %1031 = vmatmul.bf16.gmra.mxu0 %v6171_v56 }
  0x98   : > { %1200 = vmatmul.bf16.gmra.mxu1 %v6175_v57  ;;  %v6218_v57 = vld [vmem:[%s8915_s27 + $0xc0] sm:$0xf] }
  0x99   : > { %v6219_v61 = vor.u32 %v8238_v58, %v6218_v57  ;;  %v6250_v58 = vld [vmem:[%s8915_s27 + $0x100] sm:$0xf] }
  0xa7   : > { %1036 = vmatmul.bf16.gmra.mxu0 %v6179_v62  ;;  %v6223_v62 = vor.u32 %v8237_v59, %v6220_v60  ;;  %v8246_v59 = vld [vmem:[%s8915_s27 + $0x104] sm:$0xf0]  ;;  %v8245_v60 = vld [vmem:[%s8915_s27 + $0x104] sm:$0xf] }
  0xa8   : > { %1205 = vmatmul.bf16.gmra.mxu1 %v6183_v63 }
  0xb4   : > { %v1002_v7 = vpop.f32.mrf.mxu0 }
  0xb5   : > { %v1171_v8 = vpop.f32.mrf.mxu1  ;;  %v1003_v9 = vadd.f32 %v8962_v4, %v1002_v7 }
  0xb7   : > { %v8965_v10 = vadd.f32 %v1171_v8, %v1003_v9  ;;  %1041 = vmatmul.bf16.gmra.mxu0 %v6187_v5  ;;  %v6226_v8 = vld [vmem:[%s8915_s27 + $0xd0] sm:$0xf]  ;;  %v8240_v9 = vld [vmem:[%s8915_s27 + $0xd4] sm:$0xf0] }
  0xb8   : > { %1210 = vmatmul.bf16.gmra.mxu1 %v6191_v6 }
  0xbc   : > { %v1004_v11 = vpop.f32.mrf.mxu0 }
  0xbd   : > { %v1173_v12 = vpop.f32.mrf.mxu1  ;;  %v1005_v13 = vadd.f32 %v8962_v4, %v1004_v11  ;;  %v8239_v11 = vld [vmem:[%s8915_s27 + $0xd4] sm:$0xf] }
  0xbf   : > { %v8968_v14 = vadd.f32 %v1173_v12, %v1005_v13  ;;  %v6228_v12 = vld [vmem:[%s8915_s27 + $0xd8] sm:$0xf0]  ;;  %v6227_v13 = vor.u32 %v8240_v9, %v6226_v8 }
  0xc0   : > { %v6231_v15 = vor.u32 %v8239_v11, %v6228_v12 }
  0xc4   : > { %v1007_v21 = vpop.f32.mrf.mxu0 }
  0xc5   : > { %v1176_v22 = vpop.f32.mrf.mxu1  ;;  %v1008_v23 = vadd.f32 %v8962_v4, %v1007_v21 }
  0xc7   : > { %v8975_v24 = vadd.f32 %v1176_v22, %v1008_v23  ;;  %1046 = vmatmul.bf16.gmra.mxu0 %v6195_v19 }
  0xc8   : > { %1215 = vmatmul.bf16.gmra.mxu1 %v6199_v20 }
  0xcc   : > { %v1009_v25 = vpop.f32.mrf.mxu0 }
  0xcd   : > { %v1178_v26 = vpop.f32.mrf.mxu1  ;;  %v1010_v27 = vadd.f32 %v8962_v4, %v1009_v25  ;;  %v6234_v25 = vld [vmem:[%s8915_s27 + $0xe0] sm:$0xf] }
  0xcf   : > { %v8978_v28 = vadd.f32 %v1178_v26, %v1010_v27  ;;  %v8242_v26 = vld [vmem:[%s8915_s27 + $0xe4] sm:$0xf0]  ;;  %v8241_v27 = vld [vmem:[%s8915_s27 + $0xe4] sm:$0xf] }
  0xd0   : > { %v6235_v30 = vor.u32 %v8242_v26, %v6234_v25  ;;  %v6239_v31 = vor.u32 %v8241_v27, %v6236_v29 }
  0xd4   : > { %v1012_v35 = vpop.f32.mrf.mxu0 }
  0xd5   : > { %v1181_v36 = vpop.f32.mrf.mxu1  ;;  %v1013_v37 = vadd.f32 %v8962_v4, %v1012_v35 }
  0xd7   : > { %v8985_v38 = vadd.f32 %v1181_v36, %v1013_v37  ;;  %1051 = vmatmul.bf16.gmra.mxu0 %v6203_v33 }
  0xd8   : > { %1220 = vmatmul.bf16.gmra.mxu1 %v6207_v34 }
  0xdc   : > { %v1014_v39 = vpop.f32.mrf.mxu0 }
  0xdd   : > { %v1183_v40 = vpop.f32.mrf.mxu1  ;;  %v1015_v41 = vadd.f32 %v8962_v4, %v1014_v39 }
  0xdf   : > { %v8988_v42 = vadd.f32 %v1183_v40, %v1015_v41  ;;  %v6242_v41 = vld [vmem:[%s8915_s27 + $0xf0] sm:$0xf] }
  0xe0   : > { %v6243_v46 = vor.u32 %v8244_v43, %v6242_v41  ;;  %v6266_v41 = vld [vmem:[%s8915_s27 + $0x120] sm:$0xf]  ;;  %v8250_v43 = vld [vmem:[%s8915_s27 + $0x124] sm:$0xf0] }
  0xe4   : > { %v1017_v49 = vpop.f32.mrf.mxu0 }
  0xe5   : > { %v1186_v50 = vpop.f32.mrf.mxu1  ;;  %v1018_v51 = vadd.f32 %v8962_v4, %v1017_v49 }
  0xe7   : > { %v8995_v52 = vadd.f32 %v1186_v50, %v1018_v51  ;;  %1056 = vmatmul.bf16.gmra.mxu0 %v6211_v47  ;;  %v6247_v47 = vor.u32 %v8243_v44, %v6244_v45  ;;  %v8249_v44 = vld [vmem:[%s8915_s27 + $0x124] sm:$0xf]  ;;  %v6268_v45 = vld [vmem:[%s8915_s27 + $0x128] sm:$0xf0] }
  0xe8   : > { %1225 = vmatmul.bf16.gmra.mxu1 %v6215_v48 }
  0xec   : > { %v1019_v53 = vpop.f32.mrf.mxu0 }
  0xed   : > { %v1188_v54 = vpop.f32.mrf.mxu1  ;;  %v1020_v55 = vadd.f32 %v8962_v4, %v1019_v53 }
  0xef   : > { %v8998_v56 = vadd.f32 %v1188_v54, %v1020_v55 }
  0xf4   : > { %v1022_v63 = vpop.f32.mrf.mxu0 }
  0xf5   : > { %v1191_v0 = vpop.f32.mrf.mxu1  ;;  %v1023_v1 = vadd.f32 %v8962_v4, %v1022_v63 }
  0xf7   : > { %v9005_v2 = vadd.f32 %v1191_v0, %v1023_v1  ;;  %1061 = vmatmul.bf16.gmra.mxu0 %v6219_v61  ;;  %v6252_v61 = vld [vmem:[%s8915_s27 + $0x108] sm:$0xf0] }
  0xf8   : > { %1230 = vmatmul.bf16.gmra.mxu1 %v6223_v62  ;;  %v6251_v62 = vor.u32 %v8246_v59, %v6250_v58  ;;  %v6255_v63 = vor.u32 %v8245_v60, %v6252_v61  ;;  %v1335_v58 = vmax.f32 %v8985_v38, 0.0 }
  0xfc   : > { %v1024_v3 = vpop.f32.mrf.mxu0 }
  0xfd   : > { %v1193_v5 = vpop.f32.mrf.mxu1  ;;  %v1025_v6 = vadd.f32 %v8962_v4, %v1024_v3 }
  0xff   : > { %v9008_v7 = vadd.f32 %v1193_v5, %v1025_v6  ;;  %v1331_v6 = vmax.f32 %v8965_v10, 0.0 }
 0x104   : > { %v1027_v16 = vpop.f32.mrf.mxu0 }
 0x105   : > { %v1196_v17 = vpop.f32.mrf.mxu1  ;;  %v1028_v18 = vadd.f32 %v8962_v4, %v1027_v16  ;;  %v6258_v16 = vld [vmem:[%s8915_s27 + $0x110] sm:$0xf] }
 0x107   : > { %v9015_v19 = vadd.f32 %v1196_v17, %v1028_v18  ;;  %1066 = vmatmul.bf16.gmra.mxu0 %v6227_v13  ;;  %v8248_v17 = vld [vmem:[%s8915_s27 + $0x114] sm:$0xf0]  ;;  %v8247_v18 = vld [vmem:[%s8915_s27 + $0x114] sm:$0xf] }
 0x108   : > { %1235 = vmatmul.bf16.gmra.mxu1 %v6231_v15  ;;  %v6259_v26 = vor.u32 %v8248_v17, %v6258_v16 }
 0x10c   : > { %v1029_v20 = vpop.f32.mrf.mxu0 }
 0x10d   : > { %v1198_v21 = vpop.f32.mrf.mxu1  ;;  %v1030_v22 = vadd.f32 %v8962_v4, %v1029_v20  ;;  %v6260_v20 = vld [vmem:[%s8915_s27 + $0x118] sm:$0xf0] }
 0x10e   : > { %v6263_v10 = vor.u32 %v8247_v18, %v6260_v20  ;;  %v1337_v18 = vmax.f32 %v8995_v52, 0.0 }
 0x10f   : > { %v9018_v23 = vadd.f32 %v1198_v21, %v1030_v22  ;;  %v1332_v21 = vmax.f32 %v8968_v14, 0.0 }
 0x114   : > { %v1032_v32 = vpop.f32.mrf.mxu0 }
 0x115   : > { %v1201_v33 = vpop.f32.mrf.mxu1  ;;  %v1033_v34 = vadd.f32 %v8962_v4, %v1032_v32  ;;  %v1333_v32 = vmax.f32 %v8975_v24, 0.0  ;;  %v6271_v24 = vor.u32 %v8249_v44, %v6268_v45  ;;  %v1339_v44 = vmax.f32 %v9005_v2, 0.0 }
 0x117   : > { %v9025_v35 = vadd.f32 %v1201_v33, %v1033_v34  ;;  %1071 = vmatmul.bf16.gmra.mxu0 %v6235_v30 }
 0x118   : > { %1240 = vmatmul.bf16.gmra.mxu1 %v6239_v31 }
 0x11c   : > { %v1034_v36 = vpop.f32.mrf.mxu0 }
 0x11d   : > { %v1203_v37 = vpop.f32.mrf.mxu1  ;;  %v1035_v39 = vadd.f32 %v8962_v4, %v1034_v36 }
 0x11f   : > { %v9028_v40 = vadd.f32 %v1203_v37, %v1035_v39 }
 0x124   : > { %v1037_v48 = vpop.f32.mrf.mxu0 }
 0x125   : > { %v1206_v49 = vpop.f32.mrf.mxu1  ;;  %v1038_v50 = vadd.f32 %v8962_v4, %v1037_v48 }
 0x127   : > { %v9035_v51 = vadd.f32 %v1206_v49, %v1038_v50  ;;  %1076 = vmatmul.bf16.gmra.mxu0 %v6243_v46  ;;  %v1334_v46 = vmax.f32 %v8978_v28, 0.0  ;;  %v6267_v49 = vor.u32 %v8250_v43, %v6266_v41 }
 0x128   : > { %1245 = vmatmul.bf16.gmra.mxu1 %v6247_v47 }
 0x12c   : > { %v1039_v53 = vpop.f32.mrf.mxu0 }
 0x12d   : > { %v1208_v54 = vpop.f32.mrf.mxu1  ;;  %v1040_v55 = vadd.f32 %v8962_v4, %v1039_v53 }
 0x12f   : > { %v9038_v57 = vadd.f32 %v1208_v54, %v1040_v55 }
 0x134   : > { %v1042_v0 = vpop.f32.mrf.mxu0 }
 0x135   : > { %v1211_v1 = vpop.f32.mrf.mxu1  ;;  %v1043_v3 = vadd.f32 %v8962_v4, %v1042_v0  ;;  %v6274_v0 = vld [vmem:[%s8915_s27 + $0x130] sm:$0xf] }
 0x137   : > { %v1212_v5 = vadd.f32 %v1211_v1, %v1043_v3  ;;  %1081 = vmatmul.bf16.gmra.mxu0 %v6251_v62  ;;  %v8252_v1 = vld [vmem:[%s8915_s27 + $0x134] sm:$0xf0]  ;;  %v8251_v3 = vld [vmem:[%s8915_s27 + $0x134] sm:$0xf] }
 0x138   : > { %1250 = vmatmul.bf16.gmra.mxu1 %v6255_v63 }
 0x139   : > { %v1347_v8 = vmax.f32 %v1212_v5, 0.0  ;;  %v6276_v5 = vld [vmem:[%s8915_s27 + $0x138] sm:$0xf0] }
 0x13a   : > { %v6279_v38 = vor.u32 %v8251_v3, %v6276_v5  ;;  %v1341_v3 = vmax.f32 %v9015_v19, 0.0 }
 0x13b   : > { %v9046_v9 = vmax.f32 %v1331_v6, %v1347_v8  ;;  %v1336_v6 = vmax.f32 %v8988_v42, 0.0 }
 0x13c   : > { %v1044_v11 = vpop.f32.mrf.mxu0 }
 0x13d   : > { %v1213_v12 = vpop.f32.mrf.mxu1  ;;  %v1045_v13 = vadd.f32 %v8962_v4, %v1044_v11 }
 0x13f   : > { %v1214_v15 = vadd.f32 %v1213_v12, %v1045_v13  ;;  %v6275_v12 = vor.u32 %v8252_v1, %v6274_v0 }
 0x141   : > { %v1348_v22 = vmax.f32 %v1214_v15, 0.0 }
 0x143   : > { %v9054_v25 = vmax.f32 %v1332_v21, %v1348_v22 }
 0x144   : > { %v1047_v27 = vpop.f32.mrf.mxu0 }
 0x145   : > { %v1216_v29 = vpop.f32.mrf.mxu1  ;;  %v1048_v30 = vadd.f32 %v8962_v4, %v1047_v27  ;;  %v6282_v27 = vld [vmem:[%s8915_s27 + $0x140] sm:$0xf] }
 0x147   : > { %v1217_v31 = vadd.f32 %v1216_v29, %v1048_v30  ;;  %1086 = vmatmul.bf16.gmra.mxu0 %v6259_v26  ;;  %v8254_v29 = vld [vmem:[%s8915_s27 + $0x144] sm:$0xf0]  ;;  %v8253_v30 = vld [vmem:[%s8915_s27 + $0x144] sm:$0xf] }
 0x148   : > { %1255 = vmatmul.bf16.gmra.mxu1 %v6263_v10 }
 0x149   : > { %v1349_v33 = vmax.f32 %v1217_v31, 0.0  ;;  %v6284_v31 = vld [vmem:[%s8915_s27 + $0x148] sm:$0xf0] }
 0x14a   : > { %v6287_v52 = vor.u32 %v8253_v30, %v6284_v31  ;;  %v1343_v30 = vmax.f32 %v9025_v35, 0.0 }
 0x14b   : > { %v9058_v14 = vmax.f32 %v1333_v32, %v1349_v33  ;;  %v1338_v32 = vmax.f32 %v8998_v56, 0.0 }
 0x14c   : > { %v1049_v34 = vpop.f32.mrf.mxu0 }
 0x14d   : > { %v1218_v36 = vpop.f32.mrf.mxu1  ;;  %v1050_v37 = vadd.f32 %v8962_v4, %v1049_v34 }
 0x14f   : > { %v1219_v39 = vadd.f32 %v1218_v36, %v1050_v37  ;;  %v6283_v36 = vor.u32 %v8254_v29, %v6282_v27 }
 0x151   : > { %v1350_v47 = vmax.f32 %v1219_v39, 0.0 }
 0x153   : > { %v9066_v48 = vmax.f32 %v1334_v46, %v1350_v47 }
 0x154   : > { %v1052_v50 = vpop.f32.mrf.mxu0 }
 0x155   : > { %v1221_v53 = vpop.f32.mrf.mxu1  ;;  %v1053_v54 = vadd.f32 %v8962_v4, %v1052_v50  ;;  %v6290_v50 = vld [vmem:[%s8915_s27 + $0x150] sm:$0xf] }
 0x157   : > { %v1222_v55 = vadd.f32 %v1221_v53, %v1053_v54  ;;  %1091 = vmatmul.bf16.gmra.mxu0 %v6267_v49  ;;  %v8256_v53 = vld [vmem:[%s8915_s27 + $0x154] sm:$0xf0]  ;;  %v8255_v54 = vld [vmem:[%s8915_s27 + $0x154] sm:$0xf] }
 0x158   : > { %1260 = vmatmul.bf16.gmra.mxu1 %v6271_v24 }
 0x159   : > { %v1351_v59 = vmax.f32 %v1222_v55, 0.0  ;;  %v6292_v55 = vld [vmem:[%s8915_s27 + $0x158] sm:$0xf0] }
 0x15a   : > { %v6295_v2 = vor.u32 %v8255_v54, %v6292_v55  ;;  %v1345_v54 = vmax.f32 %v9035_v51, 0.0 }
 0x15b   : > { %v9070_v28 = vmax.f32 %v1335_v58, %v1351_v59  ;;  %v1340_v58 = vmax.f32 %v9008_v7, 0.0 }
 0x15c   : > { %v1054_v60 = vpop.f32.mrf.mxu0 }
 0x15d   : > { %v1223_v61 = vpop.f32.mrf.mxu1  ;;  %v1055_v62 = vadd.f32 %v8962_v4, %v1054_v60 }
 0x15f   : > { %v1224_v63 = vadd.f32 %v1223_v61, %v1055_v62  ;;  %v6291_v61 = vor.u32 %v8256_v53, %v6290_v50 }
 0x161   : > { %v1352_v8 = vmax.f32 %v1224_v63, 0.0 }
 0x163   : > { %v9078_v11 = vmax.f32 %v1336_v6, %v1352_v8 }
 0x164   : > { %v1057_v13 = vpop.f32.mrf.mxu0 }
 0x165   : > { %v1226_v15 = vpop.f32.mrf.mxu1  ;;  %v1058_v16 = vadd.f32 %v8962_v4, %v1057_v13  ;;  %v6298_v13 = vld [vmem:[%s8915_s27 + $0x160] sm:$0xf] }
 0x167   : > { %v1227_v17 = vadd.f32 %v1226_v15, %v1058_v16  ;;  %1096 = vmatmul.bf16.gmra.mxu0 %v6275_v12  ;;  %v8258_v15 = vld [vmem:[%s8915_s27 + $0x164] sm:$0xf0]  ;;  %v8257_v16 = vld [vmem:[%s8915_s27 + $0x164] sm:$0xf] }
 0x168   : > { %1265 = vmatmul.bf16.gmra.mxu1 %v6279_v38 }
 0x169   : > { %v1353_v20 = vmax.f32 %v1227_v17, 0.0  ;;  %v6300_v17 = vld [vmem:[%s8915_s27 + $0x168] sm:$0xf0] }
 0x16a   : > { %v6303_v19 = vor.u32 %v8257_v16, %v6300_v17 }
 0x16b   : > { %v9082_v42 = vmax.f32 %v1337_v18, %v1353_v20  ;;  %v1342_v18 = vmax.f32 %v9018_v23, 0.0 }
 0x16c   : > { %v1059_v21 = vpop.f32.mrf.mxu0 }
 0x16d   : > { %v1228_v22 = vpop.f32.mrf.mxu1  ;;  %v1060_v26 = vadd.f32 %v8962_v4, %v1059_v21 }
 0x16f   : > { %v1229_v10 = vadd.f32 %v1228_v22, %v1060_v26  ;;  %v6299_v22 = vor.u32 %v8258_v15, %v6298_v13 }
 0x171   : > { %v1354_v33 = vmax.f32 %v1229_v10, 0.0 }
 0x173   : > { %v9090_v34 = vmax.f32 %v1338_v32, %v1354_v33 }
 0x174   : > { %v1062_v37 = vpop.f32.mrf.mxu0 }
 0x175   : > { %v1231_v39 = vpop.f32.mrf.mxu1  ;;  %v1063_v41 = vadd.f32 %v8962_v4, %v1062_v37  ;;  %v6306_v37 = vld [vmem:[%s8915_s27 + $0x170] sm:$0xf] }
 0x177   : > { %v1232_v43 = vadd.f32 %v1231_v39, %v1063_v41  ;;  %1101 = vmatmul.bf16.gmra.mxu0 %v6283_v36  ;;  %v8260_v39 = vld [vmem:[%s8915_s27 + $0x174] sm:$0xf0]  ;;  %v8259_v41 = vld [vmem:[%s8915_s27 + $0x174] sm:$0xf] }
 0x178   : > { %1270 = vmatmul.bf16.gmra.mxu1 %v6287_v52 }
 0x179   : > { %v1355_v45 = vmax.f32 %v1232_v43, 0.0  ;;  %v6308_v43 = vld [vmem:[%s8915_s27 + $0x178] sm:$0xf0] }
 0x17a   : > { %v6311_v35 = vor.u32 %v8259_v41, %v6308_v43  ;;  %v8266_v41 = vld [vmem:[%s8915_s27 + $0x1a4] sm:$0xf0]  ;;  %v8265_v43 = vld [vmem:[%s8915_s27 + $0x1a4] sm:$0xf] }
 0x17b   : > { %v9094_v56 = vmax.f32 %v1339_v44, %v1355_v45  ;;  %v1344_v44 = vmax.f32 %v9028_v40, 0.0 }
 0x17c   : > { %v1064_v46 = vpop.f32.mrf.mxu0 }
 0x17d   : > { %v1233_v47 = vpop.f32.mrf.mxu1  ;;  %v1065_v49 = vadd.f32 %v8962_v4, %v1064_v46 }
 0x17f   : > { %v1234_v24 = vadd.f32 %v1233_v47, %v1065_v49  ;;  %v6307_v47 = vor.u32 %v8260_v39, %v6306_v37  ;;  %v6330_v39 = vld [vmem:[%s8915_s27 + $0x1a0] sm:$0xf] }
 0x181   : > { %v1356_v59 = vmax.f32 %v1234_v24, 0.0 }
 0x183   : > { %v9102_v60 = vmax.f32 %v1340_v58, %v1356_v59 }
 0x184   : > { %v1067_v62 = vpop.f32.mrf.mxu0 }
 0x185   : > { %v1236_v63 = vpop.f32.mrf.mxu1  ;;  %v1068_v0 = vadd.f32 %v8962_v4, %v1067_v62  ;;  %v6314_v62 = vld [vmem:[%s8915_s27 + $0x180] sm:$0xf] }
 0x187   : > { %v1237_v1 = vadd.f32 %v1236_v63, %v1068_v0  ;;  %1106 = vmatmul.bf16.gmra.mxu0 %v6291_v61  ;;  %v8262_v63 = vld [vmem:[%s8915_s27 + $0x184] sm:$0xf0]  ;;  %v8261_v0 = vld [vmem:[%s8915_s27 + $0x184] sm:$0xf] }
 0x188   : > { %1275 = vmatmul.bf16.gmra.mxu1 %v6295_v2 }
 0x189   : > { %v1357_v5 = vmax.f32 %v1237_v1, 0.0  ;;  %v6316_v1 = vld [vmem:[%s8915_s27 + $0x188] sm:$0xf0] }
 0x18a   : > { %v6319_v51 = vor.u32 %v8261_v0, %v6316_v1 }
 0x18b   : > { %v9106_v7 = vmax.f32 %v1341_v3, %v1357_v5  ;;  %v1346_v3 = vmax.f32 %v9038_v57, 0.0 }
 0x18c   : > { %v1069_v6 = vpop.f32.mrf.mxu0 }
 0x18d   : > { %v1238_v8 = vpop.f32.mrf.mxu1  ;;  %v1070_v12 = vadd.f32 %v8962_v4, %v1069_v6  ;;  %v6315_v6 = vor.u32 %v8262_v63, %v6314_v62  ;;  %v6340_v62 = vld [vmem:[%s8915_s27 + $0x1b8] sm:$0xf0] }
 0x18f   : > { %v1239_v38 = vadd.f32 %v1238_v8, %v1070_v12 }
 0x191   : > { %v1358_v20 = vmax.f32 %v1239_v38, 0.0 }
 0x193   : > { %v9114_v21 = vmax.f32 %v1342_v18, %v1358_v20  ;;  %v6322_v20 = vld [vmem:[%s8915_s27 + $0x190] sm:$0xf] }
 0x194   : > { %v1072_v26 = vpop.f32.mrf.mxu0 }
 0x195   : > { %v1241_v10 = vpop.f32.mrf.mxu1  ;;  %v1073_v27 = vadd.f32 %v8962_v4, %v1072_v26  ;;  %v6324_v26 = vld [vmem:[%s8915_s27 + $0x198] sm:$0xf0] }
 0x197   : > { %v1242_v29 = vadd.f32 %v1241_v10, %v1073_v27  ;;  %1111 = vmatmul.bf16.gmra.mxu0 %v6299_v22  ;;  %v8264_v22 = vld [vmem:[%s8915_s27 + $0x194] sm:$0xf0] }
 0x198   : > { %1280 = vmatmul.bf16.gmra.mxu1 %v6303_v19  ;;  %v8263_v19 = vld [vmem:[%s8915_s27 + $0x194] sm:$0xf]  ;;  %v6323_v10 = vor.u32 %v8264_v22, %v6322_v20  ;;  %v6348_v20 = vld [vmem:[%s8915_s27 + $0x1c8] sm:$0xf0] }
 0x199   : > { %v1359_v31 = vmax.f32 %v1242_v29, 0.0  ;;  %v6327_v27 = vor.u32 %v8263_v19, %v6324_v26 }
 0x19b   : > { %v9118_v23 = vmax.f32 %v1343_v30, %v1359_v31 }
 0x19c   : > { %v1074_v32 = vpop.f32.mrf.mxu0 }
 0x19d   : > { %v1243_v33 = vpop.f32.mrf.mxu1  ;;  %v1075_v36 = vadd.f32 %v8962_v4, %v1074_v32 }
 0x19f   : > { %v1244_v52 = vadd.f32 %v1243_v33, %v1075_v36 }
 0x1a1   : > { %v1360_v45 = vmax.f32 %v1244_v52, 0.0 }
 0x1a3   : > { %v9126_v46 = vmax.f32 %v1344_v44, %v1360_v45  ;;  %v6332_v44 = vld [vmem:[%s8915_s27 + $0x1a8] sm:$0xf0]  ;;  %v6331_v45 = vor.u32 %v8266_v41, %v6330_v39  ;;  %v6356_v39 = vld [vmem:[%s8915_s27 + $0x1d8] sm:$0xf0] }
 0x1a4   : > { %v1077_v49 = vpop.f32.mrf.mxu0 }
 0x1a5   : > { %v1246_v24 = vpop.f32.mrf.mxu1  ;;  %v1078_v50 = vadd.f32 %v8962_v4, %v1077_v49 }
 0x1a7   : > { %v1247_v53 = vadd.f32 %v1246_v24, %v1078_v50  ;;  %1116 = vmatmul.bf16.gmra.mxu0 %v6307_v47  ;;  %v6335_v47 = vor.u32 %v8265_v43, %v6332_v44 }
 0x1a8   : > { %1285 = vmatmul.bf16.gmra.mxu1 %v6311_v35 }
 0x1a9   : > { %v1361_v55 = vmax.f32 %v1247_v53, 0.0 }
 0x1ab   : > { %v9130_v40 = vmax.f32 %v1345_v54, %v1361_v55 }
 0x1ac   : > { %v1079_v58 = vpop.f32.mrf.mxu0 }
 0x1ad   : > { %v1248_v59 = vpop.f32.mrf.mxu1  ;;  %v1080_v61 = vadd.f32 %v8962_v4, %v1079_v58 }
 0x1af   : > { %v1249_v2 = vadd.f32 %v1248_v59, %v1080_v61  ;;  %v6338_v59 = vld [vmem:[%s8915_s27 + $0x1b0] sm:$0xf]  ;;  %v8268_v61 = vld [vmem:[%s8915_s27 + $0x1b4] sm:$0xf0] }
 0x1b0   : > { %v6339_v63 = vor.u32 %v8268_v61, %v6338_v59  ;;  %v6364_v59 = vld [vmem:[%s8915_s27 + $0x1e8] sm:$0xf0] }
 0x1b1   : > { %v1362_v5 = vmax.f32 %v1249_v2, 0.0  ;;  %v8267_v2 = vld [vmem:[%s8915_s27 + $0x1b4] sm:$0xf] }
 0x1b2   : > { %v6343_v0 = vor.u32 %v8267_v2, %v6340_v62 }
 0x1b3   : > { %v9138_v8 = vmax.f32 %v1346_v3, %v1362_v5 }
 0x1b4   : > { %v1082_v12 = vpop.f32.mrf.mxu0 }
 0x1b5   : > { %v1251_v38 = vpop.f32.mrf.mxu1  ;;  %v1083_v13 = vadd.f32 %v8962_v4, %v1082_v12 }
 0x1b7   : > { %v9141_v15 = vadd.f32 %v1251_v38, %v1083_v13  ;;  %1121 = vmatmul.bf16.gmra.mxu0 %v6315_v6 }
 0x1b8   : > { %1290 = vmatmul.bf16.gmra.mxu1 %v6319_v51 }
 0x1bc   : > { %v1084_v16 = vpop.f32.mrf.mxu0 }
 0x1bd   : > { %v1253_v17 = vpop.f32.mrf.mxu1  ;;  %v1085_v57 = vadd.f32 %v8962_v4, %v1084_v16  ;;  %v6346_v16 = vld [vmem:[%s8915_s27 + $0x1c0] sm:$0xf] }
 0x1bf   : > { %v9144_v18 = vadd.f32 %v1253_v17, %v1085_v57  ;;  %v8270_v17 = vld [vmem:[%s8915_s27 + $0x1c4] sm:$0xf0]  ;;  %v8269_v57 = vld [vmem:[%s8915_s27 + $0x1c4] sm:$0xf] }
 0x1c0   : > { %v6347_v22 = vor.u32 %v8270_v17, %v6346_v16  ;;  %v6351_v19 = vor.u32 %v8269_v57, %v6348_v20  ;;  %v6372_v16 = vld [vmem:[%s8915_s27 + $0x1f8] sm:$0xf0] }
 0x1c4   : > { %v1087_v29 = vpop.f32.mrf.mxu0 }
 0x1c5   : > { %v1256_v30 = vpop.f32.mrf.mxu1  ;;  %v1088_v31 = vadd.f32 %v8962_v4, %v1087_v29 }
 0x1c7   : > { %v9151_v32 = vadd.f32 %v1256_v30, %v1088_v31  ;;  %1126 = vmatmul.bf16.gmra.mxu0 %v6323_v10 }
 0x1c8   : > { %1295 = vmatmul.bf16.gmra.mxu1 %v6327_v27 }
 0x1cc   : > { %v1089_v33 = vpop.f32.mrf.mxu0 }
 0x1cd   : > { %v1258_v36 = vpop.f32.mrf.mxu1  ;;  %v1090_v52 = vadd.f32 %v8962_v4, %v1089_v33  ;;  %v6354_v33 = vld [vmem:[%s8915_s27 + $0x1d0] sm:$0xf] }
 0x1cf   : > { %v9154_v37 = vadd.f32 %v1258_v36, %v1090_v52  ;;  %v8272_v36 = vld [vmem:[%s8915_s27 + $0x1d4] sm:$0xf0]  ;;  %v8271_v52 = vld [vmem:[%s8915_s27 + $0x1d4] sm:$0xf] }
 0x1d0   : > { %v6355_v41 = vor.u32 %v8272_v36, %v6354_v33  ;;  %v6359_v43 = vor.u32 %v8271_v52, %v6356_v39 }
 0x1d4   : > { %v1092_v35 = vpop.f32.mrf.mxu0 }
 0x1d5   : > { %v1261_v49 = vpop.f32.mrf.mxu1  ;;  %v1093_v24 = vadd.f32 %v8962_v4, %v1092_v35 }
 0x1d7   : > { %v9161_v50 = vadd.f32 %v1261_v49, %v1093_v24  ;;  %1131 = vmatmul.bf16.gmra.mxu0 %v6331_v45 }
 0x1d8   : > { %1300 = vmatmul.bf16.gmra.mxu1 %v6335_v47 }
 0x1dc   : > { %v1094_v53 = vpop.f32.mrf.mxu0 }
 0x1dd   : > { %v1263_v54 = vpop.f32.mrf.mxu1  ;;  %v1095_v55 = vadd.f32 %v8962_v4, %v1094_v53  ;;  %v6362_v53 = vld [vmem:[%s8915_s27 + $0x1e0] sm:$0xf] }
 0x1df   : > { %v9164_v58 = vadd.f32 %v1263_v54, %v1095_v55  ;;  %v8274_v54 = vld [vmem:[%s8915_s27 + $0x1e4] sm:$0xf0]  ;;  %v8273_v55 = vld [vmem:[%s8915_s27 + $0x1e4] sm:$0xf] }
 0x1e0   : > { %v6363_v61 = vor.u32 %v8274_v54, %v6362_v53  ;;  %v6367_v2 = vor.u32 %v8273_v55, %v6364_v59  ;;  %v1364_v59 = vmax.f32 %v9144_v18, 0.0 }
 0x1e4   : > { %v1097_v1 = vpop.f32.mrf.mxu0 }
 0x1e5   : > { %v1266_v3 = vpop.f32.mrf.mxu1  ;;  %v1098_v5 = vadd.f32 %v8962_v4, %v1097_v1 }
 0x1e7   : > { %v9171_v6 = vadd.f32 %v1266_v3, %v1098_v5  ;;  %1136 = vmatmul.bf16.gmra.mxu0 %v6339_v63 }
 0x1e8   : > { %1305 = vmatmul.bf16.gmra.mxu1 %v6343_v0 }
 0x1ec   : > { %v1099_v51 = vpop.f32.mrf.mxu0 }
 0x1ed   : > { %v1268_v12 = vpop.f32.mrf.mxu1  ;;  %v1100_v38 = vadd.f32 %v8962_v4, %v1099_v51  ;;  %v6370_v51 = vld [vmem:[%s8915_s27 + $0x1f0] sm:$0xf] }
 0x1ef   : > { %v9174_v13 = vadd.f32 %v1268_v12, %v1100_v38  ;;  %v8276_v12 = vld [vmem:[%s8915_s27 + $0x1f4] sm:$0xf0]  ;;  %v8275_v38 = vld [vmem:[%s8915_s27 + $0x1f4] sm:$0xf]  ;;  %s6032_s27 = sshll.u32 %s466_s15, 4  ;;  %s6033_s27 = int_to_ptr.vmem [resolvable:$true] %s6032_s27 }
 0x1f0   : > { %v6371_v17 = vor.u32 %v8276_v12, %v6370_v51  ;;  %v6375_v57 = vor.u32 %v8275_v38, %v6372_v16  ;;  %v1365_v38 = vmax.f32 %v9151_v32, 0.0 }
 0x1f4   : > { %v1102_v26 = vpop.f32.mrf.mxu0 }
 0x1f5   : > { %v1271_v10 = vpop.f32.mrf.mxu1  ;;  %v1103_v27 = vadd.f32 %v8962_v4, %v1102_v26 }
 0x1f7   : > { %v9181_v29 = vadd.f32 %v1271_v10, %v1103_v27  ;;  %1141 = vmatmul.bf16.gmra.mxu0 %v6347_v22 }
 0x1f8   : > { %1310 = vmatmul.bf16.gmra.mxu1 %v6351_v19 }
 0x1fc   : > { %v9183_v30 = vpop.f32.mrf.mxu0 }
 0x1fd   : > { %v9185_v31 = vpop.f32.mrf.mxu1 }
 0x204   : > { %v1107_v44 = vpop.f32.mrf.mxu0 }
 0x205   : > { %v1276_v45 = vpop.f32.mrf.mxu1  ;;  %v1108_v47 = vadd.f32 %v8962_v4, %v1107_v44 }
 0x207   : > { %v9192_v35 = vadd.f32 %v1276_v45, %v1108_v47  ;;  %1146 = vmatmul.bf16.gmra.mxu0 %v6355_v41  ;;  %v1363_v41 = vmax.f32 %v9141_v15, 0.0 }
 0x208   : > { %1315 = vmatmul.bf16.gmra.mxu1 %v6359_v43 }
 0x20c   : > { %v9194_v49 = vpop.f32.mrf.mxu0 }
 0x20d   : > { %v9196_v24 = vpop.f32.mrf.mxu1 }
 0x214   : > { %v1112_v62 = vpop.f32.mrf.mxu0 }
 0x215   : > { %v1281_v63 = vpop.f32.mrf.mxu1  ;;  %v1113_v0 = vadd.f32 %v8962_v4, %v1112_v62 }
 0x217   : > { %v9203_v1 = vadd.f32 %v1281_v63, %v1113_v0  ;;  %1151 = vmatmul.bf16.gmra.mxu0 %v6363_v61 }
 0x218   : > { %1320 = vmatmul.bf16.gmra.mxu1 %v6367_v2 }
 0x21c   : > { %v9205_v3 = vpop.f32.mrf.mxu0 }
 0x21d   : > { %v9207_v5 = vpop.f32.mrf.mxu1 }
 0x224   : > { %v1117_v20 = vpop.f32.mrf.mxu0 }
 0x225   : > { %v1286_v22 = vpop.f32.mrf.mxu1  ;;  %v1118_v19 = vadd.f32 %v8962_v4, %v1117_v20 }
 0x227   : > { %v9214_v26 = vadd.f32 %v1286_v22, %v1118_v19  ;;  %1156 = vmatmul.bf16.gmra.mxu0 %v6371_v17  ;;  %v1366_v19 = vmax.f32 %v9154_v37, 0.0 }
 0x228   : > { %1325 = vmatmul.bf16.gmra.mxu1 %v6375_v57 }
 0x22c   : > { %v9216_v10 = vpop.f32.mrf.mxu0 }
 0x22d   : > { %v9218_v27 = vpop.f32.mrf.mxu1 }
 0x234   : > { %v1122_v33 = vpop.f32.mrf.mxu0 }
 0x235   : > { %v1291_v36 = vpop.f32.mrf.mxu1  ;;  %v1123_v52 = vadd.f32 %v8962_v4, %v1122_v33 }
 0x237   : > { %v1292_v39 = vadd.f32 %v1291_v36, %v1123_v52 }
 0x239   : > { %v1379_v43 = vmax.f32 %v1292_v39, 0.0 }
 0x23b   : > { %v1411_v44 = vmax.f32 %v1363_v41, %v1379_v43 }
 0x23c   : > { %v1124_v45 = vpop.f32.mrf.mxu0 }
 0x23d   : > { %v1293_v47 = vpop.f32.mrf.mxu1  ;;  %v1125_v53 = vadd.f32 %v8962_v4, %v1124_v45  ;;  %v1427_v54 = vmax.f32 %v9046_v9, %v1411_v44  ;;  %v1367_v44 = vmax.f32 %v9161_v50, 0.0 }
 0x23f   : > { %v1294_v55 = vadd.f32 %v1293_v47, %v1125_v53 }
 0x241   : > { %v1380_v61 = vmax.f32 %v1294_v55, 0.0 }
 0x243   : > { %v1412_v2 = vmax.f32 %v1364_v59, %v1380_v61  ;;  %v1368_v59 = vmax.f32 %v9164_v58, 0.0 }
 0x244   : > { %v1127_v62 = vpop.f32.mrf.mxu0 }
 0x245   : > { %v1296_v63 = vpop.f32.mrf.mxu1  ;;  %v1128_v0 = vadd.f32 %v8962_v4, %v1127_v62  ;;  %v1428_v51 = vmax.f32 %v9054_v25, %v1412_v2 }
 0x247   : > { %v1297_v15 = vadd.f32 %v1296_v63, %v1128_v0  ;;  %v9227_v12 = vpack.c.bf16 %v1428_v51, %v1427_v54 }
 0x249   : > { %v1381_v16 = vmax.f32 %v1297_v15, 0.0  ;;  %v1369_v15 = vmax.f32 %v9171_v6, 0.0 }
 0x24b   : > { %v1413_v17 = vmax.f32 %v1365_v38, %v1381_v16 }
 0x24c   : > { %v1129_v57 = vpop.f32.mrf.mxu0 }
 0x24d   : > { %v1298_v9 = vpop.f32.mrf.mxu1  ;;  %v1130_v20 = vadd.f32 %v8962_v4, %v1129_v57  ;;  %v1429_v18 = vmax.f32 %v9058_v14, %v1413_v17 }
 0x24f   : > { %v1299_v22 = vadd.f32 %v1298_v9, %v1130_v20  ;;  %v1370_v20 = vmax.f32 %v9174_v13, 0.0 }
 0x251   : > { %v1382_v33 = vmax.f32 %v1299_v22, 0.0 }
 0x253   : > { %v1414_v36 = vmax.f32 %v1366_v19, %v1382_v33 }
 0x254   : > { %v1132_v52 = vpop.f32.mrf.mxu0 }
 0x255   : > { %v1301_v25 = vpop.f32.mrf.mxu1  ;;  %v1133_v39 = vadd.f32 %v8962_v4, %v1132_v52  ;;  %v1430_v41 = vmax.f32 %v9066_v48, %v1414_v36 }
 0x257   : > { %v1302_v32 = vadd.f32 %v1301_v25, %v1133_v39  ;;  %v9235_v43 = vpack.c.bf16 %v1430_v41, %v1429_v18  ;;  %v1371_v25 = vmax.f32 %v9181_v29, 0.0  ;;  %v1105_v39 = vadd.f32 %v8962_v4, %v9183_v30 }
 0x259   : > { %v1383_v45 = vmax.f32 %v1302_v32, 0.0 }
 0x25b   : > { %v1415_v47 = vmax.f32 %v1367_v44, %v1383_v45  ;;  %v1274_v44 = vadd.f32 %v9185_v31, %v1105_v39  ;;  %v8677_v31 = vld [vmem:[%s11248_s2] ss:$0 sm:$0xff] }
 0x25c   : > { %v1134_v53 = vpop.f32.mrf.mxu0 }
 0x25d   : > { %v1303_v14 = vpop.f32.mrf.mxu1  ;;  %v1135_v54 = vadd.f32 %v8962_v4, %v1134_v53  ;;  %v1431_v37 = vmax.f32 %v9070_v28, %v1415_v47 }
 0x25f   : > { %v1304_v55 = vadd.f32 %v1303_v14, %v1135_v54 }
 0x261   : > { %v1384_v61 = vmax.f32 %v1304_v55, 0.0 }
 0x263   : > { %v1416_v2 = vmax.f32 %v1368_v59, %v1384_v61 }
 0x264   : > { %v1137_v62 = vpop.f32.mrf.mxu0 }
 0x265   : > { %v1306_v48 = vpop.f32.mrf.mxu1  ;;  %v1138_v63 = vadd.f32 %v8962_v4, %v1137_v62  ;;  %v1432_v0 = vmax.f32 %v9078_v11, %v1416_v2  ;;  %v1373_v2 = vmax.f32 %v9192_v35, 0.0 }
 0x267   : > { %v1307_v50 = vadd.f32 %v1306_v48, %v1138_v63  ;;  %v9243_v51 = vpack.c.bf16 %v1432_v0, %v1431_v37 }
 0x269   : > { %v1385_v38 = vmax.f32 %v1307_v50, 0.0 }
 0x26b   : > { %v1417_v16 = vmax.f32 %v1369_v15, %v1385_v38 }
 0x26c   : > { %v1139_v17 = vpop.f32.mrf.mxu0 }
 0x26d   : > { %v1308_v28 = vpop.f32.mrf.mxu1  ;;  %v1140_v57 = vadd.f32 %v8962_v4, %v1139_v17  ;;  %v1433_v58 = vmax.f32 %v9082_v42, %v1417_v16 }
 0x26f   : > { %v1309_v9 = vadd.f32 %v1308_v28, %v1140_v57 }
 0x271   : > { %v1386_v18 = vmax.f32 %v1309_v9, 0.0 }
 0x273   : > { %v1418_v22 = vmax.f32 %v1370_v20, %v1386_v18  ;;  %v1375_v20 = vmax.f32 %v9203_v1, 0.0  ;;  %v1115_v18 = vadd.f32 %v8677_v31, %v9205_v3 }
 0x274   : > { %v1142_v19 = vpop.f32.mrf.mxu0 }
 0x275   : > { %v1311_v11 = vpop.f32.mrf.mxu1  ;;  %v1143_v33 = vadd.f32 %v8962_v4, %v1142_v19  ;;  %v1434_v36 = vmax.f32 %v9090_v34, %v1418_v22  ;;  %v1372_v34 = vmax.f32 %v1274_v44, 0.0  ;;  %v1377_v44 = vmax.f32 %v9214_v26, 0.0  ;;  %v8295_v26 = vld [vmem:[%s11249_s3 + $0x10] sm:$0xff] }
 0x277   : > { %v1312_v6 = vadd.f32 %v1311_v11, %v1143_v33  ;;  %v9251_v52 = vpack.c.bf16 %v1434_v36, %v1433_v58 }
 0x279   : > { %v1387_v42 = vmax.f32 %v1312_v6, 0.0 }
 0x27b   : > { %v1419_v41 = vmax.f32 %v1371_v25, %v1387_v42 }
 0x27c   : > { %v1144_v32 = vpop.f32.mrf.mxu0 }
 0x27d   : > { %v1313_v13 = vpop.f32.mrf.mxu1  ;;  %v1145_v45 = vadd.f32 %v8962_v4, %v1144_v32  ;;  %v1435_v47 = vmax.f32 %v9094_v56, %v1419_v41  ;;  %v1110_v56 = vadd.f32 %v8677_v31, %v9194_v49 }
 0x27f   : > { %v1314_v53 = vadd.f32 %v1313_v13, %v1145_v45  ;;  %v1279_v50 = vadd.f32 %v9196_v24, %v1110_v56  ;;  %v1120_v45 = vadd.f32 %v8677_v31, %v9216_v10  ;;  %v8296_v10 = vld [vmem:[%s11249_s3 + $0x18] sm:$0xff] }
 0x281   : > { %v1388_v14 = vmax.f32 %v1314_v53, 0.0  ;;  %v1374_v38 = vmax.f32 %v1279_v50, 0.0 }
 0x283   : > { %v1420_v54 = vmax.f32 %v1372_v34, %v1388_v14 }
 0x284   : > { %v1147_v37 = vpop.f32.mrf.mxu0 }
 0x285   : > { %v1316_v55 = vpop.f32.mrf.mxu1  ;;  %v1148_v29 = vadd.f32 %v8962_v4, %v1147_v37  ;;  %v1436_v30 = vmax.f32 %v9102_v60, %v1420_v54 }
 0x287   : > { %v1317_v59 = vadd.f32 %v1316_v55, %v1148_v29  ;;  %v1447_v61 = vpack.c.bf16 %v1436_v30, %v1435_v47 }
 0x289   : > { %v1389_v62 = vmax.f32 %v1317_v59, 0.0 }
 0x28b   : > { %v1421_v48 = vmax.f32 %v1373_v2, %v1389_v62  ;;  %v8328_v2 = vld [vmem:[%s11250_s4 + $0x18] sm:$0xff] }
 0x28c   : > { %v1149_v63 = vpop.f32.mrf.mxu0  ;;  %1984 = vmatpush.bf16.msra.mxu3 %v8328_v2 }
 0x28d   : > { %v1318_v0 = vpop.f32.mrf.mxu1  ;;  %v1150_v15 = vadd.f32 %v8677_v31, %v1149_v63  ;;  %v1437_v4 = vmax.f32 %v9106_v7, %v1421_v48  ;;  %v1284_v7 = vadd.f32 %v9207_v5, %v1115_v18  ;;  %v8302_v48 = vld [vmem:[%s11249_s3 + $0x48] sm:$0xff]  ;;  %v8327_v63 = vld [vmem:[%s11250_s4 + $0x10] sm:$0xff] }
 0x28f   : > { %v1319_v60 = vadd.f32 %v1318_v0, %v1150_v15  ;;  %v1376_v25 = vmax.f32 %v1284_v7, 0.0 }
 0x290   : > { %1985 = vmatpush.bf16.msra.mxu3 %v8327_v63  ;;  %v8310_v63 = vld [vmem:[%s11249_s3 + $0x88] sm:$0xff] }
 0x291   : > { %v1390_v16 = vmax.f32 %v1319_v60, 0.0 }
 0x293   : > { %v1422_v17 = vmax.f32 %v1374_v38, %v1390_v16 }
 0x294   : > { %v1152_v35 = vpop.f32.mrf.mxu0 }
 0x295   : > { %v1321_v28 = vpop.f32.mrf.mxu1  ;;  %v1153_v57 = vadd.f32 %v8677_v31, %v1152_v35  ;;  %v1438_v58 = vmax.f32 %v9114_v21, %v1422_v17  ;;  %v8303_v17 = vld [vmem:[%s11249_s3 + $0x50] sm:$0xff] }
 0x297   : > { %v1322_v9 = vadd.f32 %v1321_v28, %v1153_v57  ;;  %v1448_v49 = vpack.c.bf16 %v1438_v58, %v1437_v4  ;;  %v8326_v58 = vld [vmem:[%s11250_s4 + $0x8] sm:$0xff] }
 0x298   : > { %2031 = vmatpush.bf16.msrb.mxu3 %v8326_v58 }
 0x299   : > { %v1391_v22 = vmax.f32 %v1322_v9, 0.0 }
 0x29b   : > { %v1423_v24 = vmax.f32 %v1375_v20, %v1391_v22 }
 0x29c   : > { %v1154_v19 = vpop.f32.mrf.mxu0 }
 0x29d   : > { %v1323_v11 = vpop.f32.mrf.mxu1  ;;  %v1155_v33 = vadd.f32 %v8677_v31, %v1154_v19  ;;  %v1439_v36 = vmax.f32 %v9118_v23, %v1423_v24  ;;  %v1289_v23 = vadd.f32 %v9218_v27, %v1120_v45  ;;  %v8297_v27 = vld [vmem:[%s11249_s3 + $0x20] sm:$0xff]  ;;  %v8304_v24 = vld [vmem:[%s11249_s3 + $0x58] sm:$0xff] }
 0x29f   : > { %v1324_v6 = vadd.f32 %v1323_v11, %v1155_v33  ;;  %v1378_v55 = vmax.f32 %v1289_v23, 0.0 }
 0x2a1   : > { %v1392_v39 = vmax.f32 %v1324_v6, 0.0 }
 0x2a3   : > { %v1424_v42 = vmax.f32 %v1376_v25, %v1392_v39  ;;  %v8305_v39 = vld [vmem:[%s11249_s3 + $0x60] sm:$0xff] }
 0x2a4   : > { %v1157_v21 = vpop.f32.mrf.mxu0 }
 0x2a5   : > { %v1326_v41 = vpop.f32.mrf.mxu1  ;;  %v1158_v32 = vadd.f32 %v8677_v31, %v1157_v21  ;;  %v1440_v1 = vmax.f32 %v9126_v46, %v1424_v42 }
 0x2a7   : > { %v1327_v13 = vadd.f32 %v1326_v41, %v1158_v32  ;;  %v1449_v3 = vpack.c.bf16 %v1440_v1, %v1439_v36  ;;  %v8330_v32 = vld [vmem:[%s11250_s4 + $0x28] sm:$0xff] }
 0x2a9   : > { %v1393_v47 = vmax.f32 %v1327_v13, 0.0  ;;  %v8329_v13 = vld [vmem:[%s11250_s4 + $0x20] sm:$0xff] }
 0x2ab   : > { %v1425_v5 = vmax.f32 %v1377_v44, %v1393_v47  ;;  %v8306_v44 = vld [vmem:[%s11249_s3 + $0x68] sm:$0xff] }
 0x2ac   : > { %v1159_v53 = vpop.f32.mrf.mxu0 }
 0x2ad   : > { %v1160_v34 = vadd.f32 %v8677_v31, %v1159_v53  ;;  %v1441_v14 = vmax.f32 %v9130_v40, %v1425_v5  ;;  %v1328_v54 = vpop.f32.mrf.mxu1  ;;  %v8293_v40 = vld [vmem:[%s11249_s3] sm:$0xff]  ;;  %v8307_v5 = vld [vmem:[%s11249_s3 + $0x70] sm:$0xff]  ;;  %v8332_v53 = vld [vmem:[%s11250_s4 + $0x38] sm:$0xff] }
 0x2af   : > { %v1329_v37 = vadd.f32 %v1328_v54, %v1160_v34  ;;  %v8331_v34 = vld [vmem:[%s11250_s4 + $0x30] sm:$0xff] }
 0x2b1   : > { %v1394_v29 = vmax.f32 %v1329_v37, 0.0 }
 0x2b3   : > { %v1426_v30 = vmax.f32 %v1378_v55, %v1394_v29 }
 0x2b5   : > { %v1442_v46 = vmax.f32 %v9138_v8, %v1426_v30  ;;  %v8294_v8 = vld [vmem:[%s11249_s3 + $0x8] sm:$0xff]  ;;  %v8308_v30 = vld [vmem:[%s11249_s3 + $0x78] sm:$0xff] }
 0x2b7   : > { %v1450_v59 = vpack.c.bf16 %v1442_v46, %v1441_v14 }
 0x2b9   : > { %1707 = vmatpush.bf16.msra.mxu2 %v1450_v59 }
 0x2bd   : > { %1708 = vmatpush.bf16.msra.mxu2 %v1449_v3 }
 0x2c1   : > { %1709 = vmatpush.bf16.msra.mxu2 %v1448_v49  ;;  %v8325_v49 = vld [vmem:[%s11250_s4] sm:$0xff] }
 0x2c2   : > { %2032 = vmatpush.bf16.msrb.mxu3 %v8325_v49 }
 0x2c5   : > { %1710 = vmatpush.bf16.msra.mxu2 %v1447_v61 }
 0x2c9   : > { %1711 = vmatpush.bf16.msra.mxu2 %v9251_v52  ;;  %v8301_v52 = vld [vmem:[%s11249_s3 + $0x40] sm:$0xff] }
 0x2cd   : > { %1712 = vmatpush.bf16.msra.mxu2 %v9243_v51  ;;  %v8300_v51 = vld [vmem:[%s11249_s3 + $0x38] sm:$0xff] }
 0x2d1   : > { %1713 = vmatpush.bf16.msra.mxu2 %v9235_v43  ;;  %v8299_v43 = vld [vmem:[%s11249_s3 + $0x30] sm:$0xff] }
 0x2d5   : > { %1714 = vmatpush.bf16.msra.mxu2 %v9227_v12  ;;  %v8298_v12 = vld [vmem:[%s11249_s3 + $0x28] sm:$0xff] }
 0x2d8   : > { %1715 = vmatmul.bf16.vlgmr.msra.gmra.mxu2 %v8293_v40 }
 0x2e8   : > { %1720 = vmatmul.bf16.gmra.mxu2 %v8294_v8 }
 0x2f8   : > { %1725 = vmatmul.bf16.gmra.mxu2 %v8295_v26 }
 0x308   : > { %1730 = vmatmul.bf16.gmra.mxu2 %v8296_v10 }
 0x318   : > { %1735 = vmatmul.bf16.gmra.mxu2 %v8297_v27 }
 0x328   : > { %1740 = vmatmul.bf16.gmra.mxu2 %v8298_v12  ;;  %v8309_v12 = vld [vmem:[%s11249_s3 + $0x80] sm:$0xff] }
 0x338   : > { %1745 = vmatmul.bf16.gmra.mxu2 %v8299_v43 }
 0x348   : > { %1750 = vmatmul.bf16.gmra.mxu2 %v8300_v51  ;;  %v8334_v51 = vld [vmem:[%s11250_s4 + $0x48] sm:$0xff] }
 0x358   : > { %1755 = vmatmul.bf16.gmra.mxu2 %v8301_v52 }
 0x35b   : > { %v1716_v61 = vpop.f32.mrf.mxu2 }
 0x35c   : > { %v1876_v31 = vpack.c.bf16 %v1716_v61, %v1716_v61  ;;  %v8333_v61 = vld [vmem:[%s11250_s4 + $0x40] sm:$0xff] }
 0x35e   : > { %v2001_v0 = vunpack.c.l.b16 %v1876_v31 }
 0x363   : > { %v1718_v56 = vpop.f32.mrf.mxu2 }
 0x364   : > { %v1877_v62 = vpack.c.bf16 %v1718_v56, %v1718_v56 }
 0x366   : > { %v2002_v50 = vunpack.c.l.b16 %v1877_v62 }
 0x368   : > { %v2005_v15 = vpack.c.b16 %v2002_v50, %v2001_v0  ;;  %1760 = vmatmul.bf16.gmra.mxu2 %v8302_v48 }
 0x36b   : > { %v1721_v4 = vpop.f32.mrf.mxu2 }
 0x36c   : > { %v1878_v60 = vpack.c.bf16 %v1721_v4, %v1721_v4 }
 0x36e   : > { %v2003_v35 = vunpack.c.l.b16 %v1878_v60 }
 0x373   : > { %v1723_v38 = vpop.f32.mrf.mxu2 }
 0x374   : > { %v1879_v16 = vpack.c.bf16 %v1723_v38, %v1723_v38 }
 0x376   : > { %v2004_v28 = vunpack.c.l.b16 %v1879_v16 }
 0x378   : > { %1765 = vmatmul.bf16.gmra.mxu2 %v8303_v17  ;;  %v2006_v57 = vpack.c.b16 %v2004_v28, %v2003_v35  ;;  %v8311_v17 = vld [vmem:[%s11249_s3 + $0x90] sm:$0xff] }
 0x37b   : > { %v1726_v9 = vpop.f32.mrf.mxu2 }
 0x37c   : > { %v1880_v20 = vpack.c.bf16 %v1726_v9, %v1726_v9 }
 0x37e   : > { %v1953_v19 = vunpack.c.l.b16 %v1880_v20 }
 0x383   : > { %v1728_v18 = vpop.f32.mrf.mxu2 }
 0x384   : > { %v1881_v22 = vpack.c.bf16 %v1728_v18, %v1728_v18 }
 0x386   : > { %v1954_v11 = vunpack.c.l.b16 %v1881_v22  ;;  %v8312_v22 = vld [vmem:[%s11249_s3 + $0x98] sm:$0xff] }
 0x388   : > { %v1957_v7 = vpack.c.b16 %v1954_v11, %v1953_v19  ;;  %1770 = vmatmul.bf16.gmra.mxu2 %v8304_v24  ;;  %v8335_v24 = vld [vmem:[%s11250_s4 + $0x50] sm:$0xff] }
 0x38a   : > { %6580 = vmatmul.msk.bf16.vlgmr.msra.gmra.mxu3 %vm1971_vm0, %v1957_v7 }
 0x38b   : > { %v1731_v33 = vpop.f32.mrf.mxu2  ;;  %2083 = vmatpush.bf16.msra.mxu3 %v8330_v32 }
 0x38c   : > { %v1882_v36 = vpack.c.bf16 %v1731_v33, %v1731_v33 }
 0x38e   : > { %v1955_v42 = vunpack.c.l.b16 %v1882_v36 }
 0x38f   : > { %2084 = vmatpush.bf16.msra.mxu3 %v8329_v13  ;;  %v8338_v13 = vld [vmem:[%s11250_s4 + $0x68] sm:$0xff] }
 0x393   : > { %v1733_v6 = vpop.f32.mrf.mxu2 }
 0x394   : > { %v1883_v25 = vpack.c.bf16 %v1733_v6, %v1733_v6 }
 0x396   : > { %v1956_v21 = vunpack.c.l.b16 %v1883_v25 }
 0x398   : > { %v1958_v41 = vpack.c.b16 %v1956_v21, %v1955_v42  ;;  %1775 = vmatmul.bf16.gmra.mxu2 %v8305_v39  ;;  %v8313_v42 = vld [vmem:[%s11249_s3 + $0xa0] sm:$0xff] }
 0x39a   : > { %6581 = vmatmul.msk.bf16.gmra.mxu3 %vm1971_vm0, %v1958_v41 }
 0x39b   : > { %v1736_v1 = vpop.f32.mrf.mxu2 }
 0x39c   : > { %v1884_v14 = vpack.c.bf16 %v1736_v1, %v1736_v1 }
 0x39e   : > { %v2053_v55 = vunpack.c.l.b16 %v1884_v14 }
 0x3a3   : > { %v1738_v3 = vpop.f32.mrf.mxu2 }
 0x3a4   : > { %v1885_v54 = vpack.c.bf16 %v1738_v3, %v1738_v3 }
 0x3a6   : > { %v2054_v29 = vunpack.c.l.b16 %v1885_v54 }
 0x3a8   : > { %1780 = vmatmul.bf16.gmra.mxu2 %v8306_v44  ;;  %v2057_v46 = vpack.c.b16 %v2054_v29, %v2053_v55 }
 0x3aa   : > { %6590 = vmatmul.msk.bf16.vlgmr.msrb.gmra.mxu3 %vm1971_vm0, %v2005_v15 }
 0x3ab   : > { %v1741_v45 = vpop.f32.mrf.mxu2  ;;  %2139 = vmatpush.bf16.msrb.mxu3 %v8332_v53  ;;  %v8314_v53 = vld [vmem:[%s11249_s3 + $0xa8] sm:$0xff] }
 0x3ac   : > { %v1886_v40 = vpack.c.bf16 %v1741_v45, %v1741_v45 }
 0x3ae   : > { %v2055_v10 = vunpack.c.l.b16 %v1886_v40 }
 0x3af   : > { %2140 = vmatpush.bf16.msrb.mxu3 %v8331_v34  ;;  %v8337_v34 = vld [vmem:[%s11250_s4 + $0x60] sm:$0xff] }
 0x3b3   : > { %v1743_v47 = vpop.f32.mrf.mxu2 }
 0x3b4   : > { %v1887_v8 = vpack.c.bf16 %v1743_v47, %v1743_v47 }
 0x3b6   : > { %v2056_v27 = vunpack.c.l.b16 %v1887_v8  ;;  %v8315_v8 = vld [vmem:[%s11249_s3 + $0xb0] sm:$0xff] }
 0x3b8   : > { %1785 = vmatmul.bf16.gmra.mxu2 %v8307_v5  ;;  %v2058_v43 = vpack.c.b16 %v2056_v27, %v2055_v10 }
 0x3ba   : > { %6591 = vmatmul.msk.bf16.gmra.mxu3 %vm1971_vm0, %v2006_v57  ;;  %v8336_v57 = vld [vmem:[%s11250_s4 + $0x58] sm:$0xff] }
 0x3bb   : > { %v1746_v23 = vpop.f32.mrf.mxu2 }
 0x3bc   : > { %v1888_v2 = vpack.c.bf16 %v1746_v23, %v1746_v23 }
 0x3be   : > { %v2109_v62 = vunpack.c.l.b16 %v1888_v2 }
 0x3c3   : > { %v1748_v37 = vpop.f32.mrf.mxu2 }
 0x3c4   : > { %v1889_v31 = vpack.c.bf16 %v1748_v37, %v1748_v37 }
 0x3c6   : > { %v2110_v48 = vunpack.c.l.b16 %v1889_v31 }
 0x3c8   : > { %1790 = vmatmul.bf16.gmra.mxu2 %v8308_v30  ;;  %v2113_v0 = vpack.c.b16 %v2110_v48, %v2109_v62  ;;  %v8316_v48 = vld [vmem:[%s11249_s3 + $0xb8] sm:$0xff] }
 0x3ca   : > { %6604 = vmatmul.msk.bf16.vlgmr.msra.gmra.mxu3 %vm1971_vm0, %v2057_v46 }
 0x3cb   : > { %v1751_v59 = vpop.f32.mrf.mxu2  ;;  %2195 = vmatpush.bf16.msra.mxu3 %v8334_v51 }
 0x3cc   : > { %v1890_v15 = vpack.c.bf16 %v1751_v59, %v1751_v59 }
 0x3ce   : > { %v2111_v38 = vunpack.c.l.b16 %v1890_v15 }
 0x3cf   : > { %2196 = vmatpush.bf16.msra.mxu3 %v8333_v61 }
 0x3d3   : > { %v1753_v26 = vpop.f32.mrf.mxu2 }
 0x3d4   : > { %v1891_v4 = vpack.c.bf16 %v1753_v26, %v1753_v26 }
 0x3d6   : > { %v2112_v16 = vunpack.c.l.b16 %v1891_v4 }
 0x3d8   : > { %1795 = vmatmul.bf16.gmra.mxu2 %v8309_v12  ;;  %v2114_v35 = vpack.c.b16 %v2112_v16, %v2111_v38 }
 0x3da   : > { %6605 = vmatmul.msk.bf16.gmra.mxu3 %vm1971_vm0, %v2058_v43 }
 0x3db   : > { %v1756_v52 = vpop.f32.mrf.mxu2 }
 0x3dc   : > { %v1892_v58 = vpack.c.bf16 %v1756_v52, %v1756_v52  ;;  %v8340_v52 = vld [vmem:[%s11250_s4 + $0x78] sm:$0xff] }
 0x3de   : > { %v2165_v20 = vunpack.c.l.b16 %v1892_v58  ;;  %v8317_v58 = vld [vmem:[%s11249_s3 + $0xc0] sm:$0xff] }
 0x3e3   : > { %v1758_v56 = vpop.f32.mrf.mxu2 }
 0x3e4   : > { %v1893_v9 = vpack.c.bf16 %v1758_v56, %v1758_v56 }
 0x3e6   : > { %v2166_v18 = vunpack.c.l.b16 %v1893_v9 }
 0x3e8   : > { %1800 = vmatmul.bf16.gmra.mxu2 %v8310_v63  ;;  %v2169_v19 = vpack.c.b16 %v2166_v18, %v2165_v20 }
 0x3ea   : > { %6618 = vmatmul.msk.bf16.vlgmr.msrb.gmra.mxu3 %vm1971_vm0, %v2113_v0  ;;  %v8339_v0 = vld [vmem:[%s11250_s4 + $0x70] sm:$0xff] }
 0x3eb   : > { %v1761_v50 = vpop.f32.mrf.mxu2  ;;  %2251 = vmatpush.bf16.msrb.mxu3 %v8336_v57 }
 0x3ec   : > { %v1894_v33 = vpack.c.bf16 %v1761_v50, %v1761_v50 }
 0x3ee   : > { %v2167_v25 = vunpack.c.l.b16 %v1894_v33 }
 0x3ef   : > { %2252 = vmatpush.bf16.msrb.mxu3 %v8335_v24 }
 0x3f3   : > { %v1763_v60 = vpop.f32.mrf.mxu2 }
 0x3f4   : > { %v1895_v36 = vpack.c.bf16 %v1763_v60, %v1763_v60 }
 0x3f6   : > { %v2168_v39 = vunpack.c.l.b16 %v1895_v36 }
 0x3f8   : > { %1805 = vmatmul.bf16.gmra.mxu2 %v8311_v17  ;;  %v2170_v41 = vpack.c.b16 %v2168_v39, %v2167_v25  ;;  %v8318_v25 = vld [vmem:[%s11249_s3 + $0xc8] sm:$0xff] }
 0x3fa   : > { %6619 = vmatmul.msk.bf16.gmra.mxu3 %vm1971_vm0, %v2114_v35 }
 0x3fb   : > { %v1766_v28 = vpop.f32.mrf.mxu2 }
 0x3fc   : > { %v1896_v3 = vpack.c.bf16 %v1766_v28, %v1766_v28 }
 0x3fe   : > { %v2221_v47 = vunpack.c.l.b16 %v1896_v3 }
 0x403   : > { %v1768_v49 = vpop.f32.mrf.mxu2 }
 0x404   : > { %v1897_v44 = vpack.c.bf16 %v1768_v49, %v1768_v49 }
 0x406   : > { %v2222_v5 = vunpack.c.l.b16 %v1897_v44 }
 0x408   : > { %1810 = vmatmul.bf16.gmra.mxu2 %v8312_v22  ;;  %v2225_v14 = vpack.c.b16 %v2222_v5, %v2221_v47 }
 0x40a   : > { %6632 = vmatmul.msk.bf16.vlgmr.msra.gmra.mxu3 %vm1971_vm0, %v2169_v19  ;;  %v8342_v19 = vld [vmem:[%s11250_s4 + $0x88] sm:$0xff] }
 0x40b   : > { %v1771_v11 = vpop.f32.mrf.mxu2  ;;  %2307 = vmatpush.bf16.msra.mxu3 %v8338_v13 }
 0x40c   : > { %v1898_v29 = vpack.c.bf16 %v1771_v11, %v1771_v11 }
 0x40d   : > { %v1987_v7 = vpop.f32.mrf.mxu3 }
 0x40e   : > { %v2223_v59 = vunpack.c.l.b16 %v1898_v29  ;;  %v8344_v29 = vld [vmem:[%s11250_s4 + $0x98] sm:$0xff] }
 0x40f   : > { %2308 = vmatpush.bf16.msra.mxu3 %v8337_v34 }
 0x413   : > { %v1773_v6 = vpop.f32.mrf.mxu2 }
 0x414   : > { %v1899_v30 = vpack.c.bf16 %v1773_v6, %v1773_v6 }
 0x415   : > { %v1989_v21 = vpop.f32.mrf.mxu3 }
 0x416   : > { %v2224_v40 = vunpack.c.l.b16 %v1899_v30 }
 0x418   : > { %1815 = vmatmul.bf16.gmra.mxu2 %v8313_v42  ;;  %v2226_v27 = vpack.c.b16 %v2224_v40, %v2223_v59  ;;  %v8341_v42 = vld [vmem:[%s11250_s4 + $0x80] sm:$0xff] }
 0x41a   : > { %6633 = vmatmul.msk.bf16.gmra.mxu3 %vm1971_vm0, %v2170_v41 }
 0x41b   : > { %v1776_v32 = vpop.f32.mrf.mxu2 }
 0x41c   : > { %v1900_v61 = vpack.c.bf16 %v1776_v32, %v1776_v32 }
 0x41d   : > { %v1992_v1 = vpop.f32.mrf.mxu3 }
 0x41e   : > { %v2277_v56 = vunpack.c.l.b16 %v1900_v61 }
 0x423   : > { %v1778_v45 = vpop.f32.mrf.mxu2 }
 0x424   : > { %v1901_v2 = vpack.c.bf16 %v1778_v45, %v1778_v45 }
 0x425   : > { %v1994_v23 = vpop.f32.mrf.mxu3 }
 0x426   : > { %v2278_v62 = vunpack.c.l.b16 %v1901_v2 }
 0x428   : > { %1820 = vmatmul.bf16.gmra.mxu2 %v8314_v53  ;;  %v2281_v15 = vpack.c.b16 %v2278_v62, %v2277_v56  ;;  %v8319_v53 = vld [vmem:[%s11249_s3 + $0xd0] sm:$0xff] }
 0x42a   : > { %6646 = vmatmul.msk.bf16.vlgmr.msrb.gmra.mxu3 %vm1971_vm0, %v2225_v14 }
 0x42b   : > { %v1781_v54 = vpop.f32.mrf.mxu2  ;;  %2363 = vmatpush.bf16.msrb.mxu3 %v8340_v52 }
 0x42c   : > { %v1902_v16 = vpack.c.bf16 %v1781_v54, %v1781_v54 }
 0x42d   : > { %v2034_v37 = vpop.f32.mrf.mxu3 }
 0x42e   : > { %v2035_v55 = vadd.f32 %v2034_v37, %v1987_v7  ;;  %v2279_v28 = vunpack.c.l.b16 %v1902_v16  ;;  %v8346_v16 = vld [vmem:[%s11250_s4 + $0xa8] sm:$0xff] }
 0x42f   : > { %2364 = vmatpush.bf16.msrb.mxu3 %v8339_v0 }
 0x433   : > { %v1783_v46 = vpop.f32.mrf.mxu2 }
 0x434   : > { %v1903_v17 = vpack.c.bf16 %v1783_v46, %v1783_v46 }
 0x435   : > { %v2036_v26 = vpop.f32.mrf.mxu3 }
 0x436   : > { %v2037_v10 = vadd.f32 %v2036_v26, %v1989_v21  ;;  %v2280_v57 = vunpack.c.l.b16 %v1903_v17  ;;  %v8320_v26 = vld [vmem:[%s11249_s3 + $0xd8] sm:$0xff] }
 0x438   : > { %1825 = vmatmul.bf16.gmra.mxu2 %v8315_v8  ;;  %v2282_v20 = vpack.c.b16 %v2280_v57, %v2279_v28 }
 0x43a   : > { %6647 = vmatmul.msk.bf16.gmra.mxu3 %vm1971_vm0, %v2226_v27  ;;  %v8343_v27 = vld [vmem:[%s11250_s4 + $0x90] sm:$0xff] }
 0x43b   : > { %v1786_v12 = vpop.f32.mrf.mxu2 }
 0x43c   : > { %v1904_v11 = vpack.c.bf16 %v1786_v12, %v1786_v12 }
 0x43d   : > { %v2039_v43 = vpop.f32.mrf.mxu3 }
 0x43e   : > { %v2040_v51 = vadd.f32 %v2039_v43, %v1992_v1  ;;  %v2333_v36 = vunpack.c.l.b16 %v1904_v11 }
 0x443   : > { %v1788_v31 = vpop.f32.mrf.mxu2 }
 0x444   : > { %v1905_v7 = vpack.c.bf16 %v1788_v31, %v1788_v31 }
 0x445   : > { %v2041_v63 = vpop.f32.mrf.mxu3 }
 0x446   : > { %v2042_v50 = vadd.f32 %v2041_v63, %v1994_v23  ;;  %v2334_v6 = vunpack.c.l.b16 %v1905_v7  ;;  %v8321_v63 = vld [vmem:[%s11249_s3 + $0xe0] sm:$0xff] }
 0x448   : > { %1830 = vmatmul.bf16.gmra.mxu2 %v8316_v48  ;;  %v2337_v41 = vpack.c.b16 %v2334_v6, %v2333_v36 }
 0x44a   : > { %6660 = vmatmul.msk.bf16.vlgmr.msra.gmra.mxu3 %vm1971_vm0, %v2281_v15 }
 0x44b   : > { %v1791_v4 = vpop.f32.mrf.mxu2  ;;  %2419 = vmatpush.bf16.msra.mxu3 %v8342_v19 }
 0x44c   : > { %v1906_v3 = vpack.c.bf16 %v1791_v4, %v1791_v4 }
 0x44d   : > { %v2086_v60 = vpop.f32.mrf.mxu3 }
 0x44e   : > { %v2096_v38 = vadd.f32 %v2086_v60, %v2035_v55  ;;  %v2335_v47 = vunpack.c.l.b16 %v1906_v3  ;;  %v8348_v3 = vld [vmem:[%s11250_s4 + $0xb8] sm:$0xff] }
 0x44f   : > { %2420 = vmatpush.bf16.msra.mxu3 %v8341_v42 }
 0x453   : > { %v1793_v35 = vpop.f32.mrf.mxu2 }
 0x454   : > { %v1907_v44 = vpack.c.bf16 %v1793_v35, %v1793_v35 }
 0x455   : > { %v2088_v9 = vpop.f32.mrf.mxu3 }
 0x456   : > { %v2097_v49 = vadd.f32 %v2088_v9, %v2037_v10  ;;  %v2336_v5 = vunpack.c.l.b16 %v1907_v44  ;;  %v8322_v9 = vld [vmem:[%s11249_s3 + $0xe8] sm:$0xff] }
 0x458   : > { %1835 = vmatmul.bf16.gmra.mxu2 %v8317_v58  ;;  %v2338_v14 = vpack.c.b16 %v2336_v5, %v2335_v47 }
 0x45a   : > { %6661 = vmatmul.msk.bf16.gmra.mxu3 %vm1971_vm0, %v2282_v20  ;;  %v8345_v20 = vld [vmem:[%s11250_s4 + $0xa0] sm:$0xff] }
 0x45b   : > { %v1796_v18 = vpop.f32.mrf.mxu2 }
 0x45c   : > { %v1908_v30 = vpack.c.bf16 %v1796_v18, %v1796_v18 }
 0x45d   : > { %v2091_v22 = vpop.f32.mrf.mxu3 }
 0x45e   : > { %v2098_v24 = vadd.f32 %v2091_v22, %v2040_v51  ;;  %v2389_v40 = vunpack.c.l.b16 %v1908_v30 }
 0x463   : > { %v1798_v33 = vpop.f32.mrf.mxu2 }
 0x464   : > { %v1909_v46 = vpack.c.bf16 %v1798_v33, %v1798_v33 }
 0x465   : > { %v2093_v39 = vpop.f32.mrf.mxu3 }
 0x466   : > { %v2099_v21 = vadd.f32 %v2093_v39, %v2042_v50  ;;  %v2390_v8 = vunpack.c.l.b16 %v1909_v46  ;;  %v8323_v39 = vld [vmem:[%s11249_s3 + $0xf0] sm:$0xff] }
 0x468   : > { %1840 = vmatmul.bf16.gmra.mxu2 %v8318_v25  ;;  %v2393_v43 = vpack.c.b16 %v2390_v8, %v2389_v40 }
 0x46a   : > { %6674 = vmatmul.msk.bf16.vlgmr.msrb.gmra.mxu3 %vm1971_vm0, %v2337_v41 }
 0x46b   : > { %v1801_v32 = vpop.f32.mrf.mxu2  ;;  %2475 = vmatpush.bf16.msrb.mxu3 %v8344_v29 }
 0x46c   : > { %v1910_v2 = vpack.c.bf16 %v1801_v32, %v1801_v32 }
 0x46d   : > { %v2142_v1 = vpop.f32.mrf.mxu3 }
 0x46e   : > { %v2152_v13 = vadd.f32 %v2142_v1, %v2096_v38  ;;  %v2391_v62 = vunpack.c.l.b16 %v1910_v2 }
 0x46f   : > { %2476 = vmatpush.bf16.msrb.mxu3 %v8343_v27 }
 0x473   : > { %v1803_v45 = vpop.f32.mrf.mxu2 }
 0x474   : > { %v1911_v31 = vpack.c.bf16 %v1803_v45, %v1803_v45 }
 0x475   : > { %v2144_v23 = vpop.f32.mrf.mxu3 }
 0x476   : > { %v2153_v34 = vadd.f32 %v2144_v23, %v2097_v49  ;;  %v2392_v48 = vunpack.c.l.b16 %v1911_v31  ;;  %v8324_v23 = vld [vmem:[%s11249_s3 + $0xf8] sm:$0xff] }
 0x478   : > { %1845 = vmatmul.bf16.gmra.mxu2 %v8319_v53  ;;  %v2394_v15 = vpack.c.b16 %v2392_v48, %v2391_v62 }
 0x47a   : > { %6675 = vmatmul.msk.bf16.gmra.mxu3 %vm1971_vm0, %v2338_v14  ;;  %v8347_v14 = vld [vmem:[%s11250_s4 + $0xb0] sm:$0xff] }
 0x47b   : > { %v1806_v54 = vpop.f32.mrf.mxu2 }
 0x47c   : > { %v1912_v17 = vpack.c.bf16 %v1806_v54, %v1806_v54 }
 0x47d   : > { %v2147_v37 = vpop.f32.mrf.mxu3 }
 0x47e   : > { %v2154_v55 = vadd.f32 %v2147_v37, %v2098_v24  ;;  %v2445_v57 = vunpack.c.l.b16 %v1912_v17 }
 0x483   : > { %v1808_v59 = vpop.f32.mrf.mxu2 }
 0x484   : > { %v1913_v35 = vpack.c.bf16 %v1808_v59, %v1808_v59 }
 0x485   : > { %v2149_v10 = vpop.f32.mrf.mxu3 }
 0x486   : > { %v2155_v12 = vadd.f32 %v2149_v10, %v2099_v21  ;;  %v2446_v58 = vunpack.c.l.b16 %v1913_v35 }
 0x488   : > { %1850 = vmatmul.bf16.gmra.mxu2 %v8320_v26  ;;  %v2449_v22 = vpack.c.b16 %v2446_v58, %v2445_v57 }
 0x48a   : > { %6688 = vmatmul.msk.bf16.vlgmr.msra.gmra.mxu3 %vm1971_vm0, %v2393_v43 }
 0x48b   : > { %v1811_v51 = vpop.f32.mrf.mxu2  ;;  %2531 = vmatpush.bf16.msra.mxu3 %v8346_v16 }
 0x48c   : > { %v1914_v7 = vpack.c.bf16 %v1811_v51, %v1811_v51 }
 0x48d   : > { %v2198_v52 = vpop.f32.mrf.mxu3 }
 0x48e   : > { %v2208_v61 = vadd.f32 %v2198_v52, %v2152_v13  ;;  %v2447_v6 = vunpack.c.l.b16 %v1914_v7 }
 0x48f   : > { %2532 = vmatpush.bf16.msra.mxu3 %v8345_v20 }
 0x493   : > { %v1813_v56 = vpop.f32.mrf.mxu2 }
 0x494   : > { %v1915_v33 = vpack.c.bf16 %v1813_v56, %v1813_v56 }
 0x495   : > { %v2200_v0 = vpop.f32.mrf.mxu3 }
 0x496   : > { %v2209_v50 = vadd.f32 %v2200_v0, %v2153_v34  ;;  %v2448_v25 = vunpack.c.l.b16 %v1915_v33  ;;  %v8349_v0 = vld [vmem:[%s11250_s4 + $0xc0] sm:$0xff] }
 0x498   : > { %1855 = vmatmul.bf16.gmra.mxu2 %v8321_v63  ;;  %v2450_v41 = vpack.c.b16 %v2448_v25, %v2447_v6  ;;  %v8351_v6 = vld [vmem:[%s11250_s4 + $0xd0] sm:$0xff] }
 0x49a   : > { %6689 = vmatmul.msk.bf16.gmra.mxu3 %vm1971_vm0, %v2394_v15 }
 0x49b   : > { %v1816_v4 = vpop.f32.mrf.mxu2 }
 0x49c   : > { %v1916_v44 = vpack.c.bf16 %v1816_v4, %v1816_v4 }
 0x49d   : > { %v2203_v60 = vpop.f32.mrf.mxu3 }
 0x49e   : > { %v2210_v38 = vadd.f32 %v2203_v60, %v2154_v55  ;;  %v2501_v5 = vunpack.c.l.b16 %v1916_v44 }
 0x4a3   : > { %v1818_v28 = vpop.f32.mrf.mxu2 }
 0x4a4   : > { %v1917_v45 = vpack.c.bf16 %v1818_v28, %v1818_v28 }
 0x4a5   : > { %v2205_v49 = vpop.f32.mrf.mxu3 }
 0x4a6   : > { %v2211_v18 = vadd.f32 %v2205_v49, %v2155_v12  ;;  %v2502_v53 = vunpack.c.l.b16 %v1917_v45 }
 0x4a8   : > { %1860 = vmatmul.bf16.gmra.mxu2 %v8322_v9  ;;  %v2505_v37 = vpack.c.b16 %v2502_v53, %v2501_v5 }
 0x4aa   : > { %6702 = vmatmul.msk.bf16.vlgmr.msrb.gmra.mxu3 %vm1971_vm0, %v2449_v22  ;;  %v8352_v22 = vld [vmem:[%s11250_s4 + $0xd8] sm:$0xff] }
 0x4ab   : > { %v1821_v24 = vpop.f32.mrf.mxu2  ;;  %2587 = vmatpush.bf16.msrb.mxu3 %v8348_v3 }
 0x4ac   : > { %v1918_v46 = vpack.c.bf16 %v1821_v24, %v1821_v24 }
 0x4ad   : > { %v2254_v19 = vpop.f32.mrf.mxu3 }
 0x4ae   : > { %v2264_v11 = vadd.f32 %v2254_v19, %v2208_v61  ;;  %v2503_v8 = vunpack.c.l.b16 %v1918_v46  ;;  %v8350_v61 = vld [vmem:[%s11250_s4 + $0xc8] sm:$0xff]  ;;  %v8353_v46 = vld [vmem:[%s11250_s4 + $0xe0] sm:$0xff] }
 0x4af   : > { %2588 = vmatpush.bf16.msrb.mxu3 %v8347_v14  ;;  %v8354_v14 = vld [vmem:[%s11250_s4 + $0xe8] sm:$0xff] }
 0x4b3   : > { %v1823_v36 = vpop.f32.mrf.mxu2 }
 0x4b4   : > { %v1919_v59 = vpack.c.bf16 %v1823_v36, %v1823_v36 }
 0x4b5   : > { %v2256_v42 = vpop.f32.mrf.mxu3 }
 0x4b6   : > { %v2265_v21 = vadd.f32 %v2256_v42, %v2209_v50  ;;  %v2504_v26 = vunpack.c.l.b16 %v1919_v59 }
 0x4b8   : > { %1865 = vmatmul.bf16.gmra.mxu2 %v8323_v39  ;;  %v2506_v12 = vpack.c.b16 %v2504_v26, %v2503_v8 }
 0x4ba   : > { %6703 = vmatmul.msk.bf16.gmra.mxu3 %vm1971_vm0, %v2450_v41 }
 0x4bb   : > { %v1826_v32 = vpop.f32.mrf.mxu2 }
 0x4bc   : > { %v1920_v2 = vpack.c.bf16 %v1826_v32, %v1826_v32 }
 0x4bd   : > { %v2259_v1 = vpop.f32.mrf.mxu3 }
 0x4be   : > { %v2266_v13 = vadd.f32 %v2259_v1, %v2210_v38  ;;  %v2557_v62 = vunpack.c.l.b16 %v1920_v2 }
 0x4c3   : > { %v1828_v47 = vpop.f32.mrf.mxu2 }
 0x4c4   : > { %v1921_v31 = vpack.c.bf16 %v1828_v47, %v1828_v47 }
 0x4c5   : > { %v2261_v34 = vpop.f32.mrf.mxu3 }
 0x4c6   : > { %v2267_v54 = vadd.f32 %v2261_v34, %v2211_v18  ;;  %v2558_v48 = vunpack.c.l.b16 %v1921_v31 }
 0x4c8   : > { %1870 = vmatmul.bf16.gmra.mxu2 %v8324_v23  ;;  %v2561_v15 = vpack.c.b16 %v2558_v48, %v2557_v62 }
 0x4ca   : > { %6716 = vmatmul.msk.bf16.vlgmr.msra.gmra.mxu3 %vm1971_vm0, %v2505_v37 }
 0x4cb   : > { %v1831_v55 = vpop.f32.mrf.mxu2  ;;  %2643 = vmatpush.bf16.msra.mxu3 %v8350_v61 }
 0x4cc   : > { %v1922_v16 = vpack.c.bf16 %v1831_v55, %v1831_v55 }
 0x4cd   : > { %v2310_v29 = vpop.f32.mrf.mxu3 }
 0x4ce   : > { %v2320_v30 = vadd.f32 %v2310_v29, %v2264_v11  ;;  %v2559_v35 = vunpack.c.l.b16 %v1922_v16  ;;  %v8355_v16 = vld [vmem:[%s11250_s4 + $0xf0] sm:$0xff] }
 0x4cf   : > { %2644 = vmatpush.bf16.msra.mxu3 %v8349_v0 }
 0x4d3   : > { %v1833_v40 = vpop.f32.mrf.mxu2 }
 0x4d4   : > { %v1923_v17 = vpack.c.bf16 %v1833_v40, %v1833_v40 }
 0x4d5   : > { %v2312_v10 = vpop.f32.mrf.mxu3 }
 0x4d6   : > { %v2321_v27 = vadd.f32 %v2312_v10, %v2265_v21  ;;  %v2560_v28 = vunpack.c.l.b16 %v1923_v17 }
 0x4d8   : > { %v2562_v49 = vpack.c.b16 %v2560_v28, %v2559_v35 }
 0x4da   : > { %6717 = vmatmul.msk.bf16.gmra.mxu3 %vm1971_vm0, %v2506_v12 }
 0x4db   : > { %v1836_v43 = vpop.f32.mrf.mxu2 }
 0x4dc   : > { %v1924_v19 = vpack.c.bf16 %v1836_v43, %v1836_v43 }
 0x4dd   : > { %v2315_v51 = vpop.f32.mrf.mxu3 }
 0x4de   : > { %v2322_v52 = vadd.f32 %v2315_v51, %v2266_v13  ;;  %v2613_v7 = vunpack.c.l.b16 %v1924_v19 }
 0x4e3   : > { %v1838_v56 = vpop.f32.mrf.mxu2 }
 0x4e4   : > { %v1925_v11 = vpack.c.bf16 %v1838_v56, %v1838_v56 }
 0x4e5   : > { %v2317_v63 = vpop.f32.mrf.mxu3 }
 0x4e6   : > { %v2323_v50 = vadd.f32 %v2317_v63, %v2267_v54  ;;  %v2614_v33 = vunpack.c.l.b16 %v1925_v11  ;;  %v8356_v63 = vld [vmem:[%s11250_s4 + $0xf8] sm:$0xff] }
 0x4e8   : > { %v2617_v39 = vpack.c.b16 %v2614_v33, %v2613_v7 }
 0x4ea   : > { %6730 = vmatmul.msk.bf16.vlgmr.msrb.gmra.mxu3 %vm1971_vm0, %v2561_v15 }
 0x4eb   : > { %v1841_v4 = vpop.f32.mrf.mxu2  ;;  %2699 = vmatpush.bf16.msrb.mxu3 %v8352_v22 }
 0x4ec   : > { %v1926_v32 = vpack.c.bf16 %v1841_v4, %v1841_v4 }
 0x4ed   : > { %v2366_v60 = vpop.f32.mrf.mxu3 }
 0x4ee   : > { %v2376_v38 = vadd.f32 %v2366_v60, %v2320_v30  ;;  %v2615_v3 = vunpack.c.l.b16 %v1926_v32 }
 0x4ef   : > { %2700 = vmatpush.bf16.msrb.mxu3 %v8351_v6 }
 0x4f3   : > { %v1843_v58 = vpop.f32.mrf.mxu2 }
 0x4f4   : > { %v1927_v1 = vpack.c.bf16 %v1843_v58, %v1843_v58  ;;  %v8382_v58 = vld [vmem:[%s11253_s7 + $0x38] sm:$0xff] }
 0x4f5   : > { %v2368_v57 = vpop.f32.mrf.mxu3  ;;  %8627 = vmatpush.bf16.msrb.mxu2 %v8382_v58  ;;  %3219 = vmatpush.bf16.msrb.mxu0 %v8382_v58 }
 0x4f6   : > { %v2377_v9 = vadd.f32 %v2368_v57, %v2321_v27  ;;  %v2616_v44 = vunpack.c.l.b16 %v1927_v1 }
 0x4f8   : > { %v2618_v5 = vpack.c.b16 %v2616_v44, %v2615_v3  ;;  %v9516_v3 = vld [vmem:[%s11253_s7 + $0x18] sm:$0xff] }
 0x4f9   : > { %3278 = vmatpush.bf16.msrb.mxu1 %v9516_v3 }
 0x4fa   : > { %6731 = vmatmul.msk.bf16.gmra.mxu3 %vm1971_vm0, %v2562_v49 }
 0x4fb   : > { %v1846_v24 = vpop.f32.mrf.mxu2 }
 0x4fc   : > { %v1928_v54 = vpack.c.bf16 %v1846_v24, %v1846_v24 }
 0x4fd   : > { %v2371_v20 = vpop.f32.mrf.mxu3 }
 0x4fe   : > { %v2378_v18 = vadd.f32 %v2371_v20, %v2322_v52  ;;  %v2669_v55 = vunpack.c.l.b16 %v1928_v54 }
 0x503   : > { %v1848_v42 = vpop.f32.mrf.mxu2 }
 0x504   : > { %v1929_v37 = vpack.c.bf16 %v1848_v42, %v1848_v42 }
 0x505   : > { %v2373_v36 = vpop.f32.mrf.mxu3 }
 0x506   : > { %v2379_v25 = vadd.f32 %v2373_v36, %v2323_v50  ;;  %v2670_v29 = vunpack.c.l.b16 %v1929_v37 }
 0x508   : > { %v2673_v8 = vpack.c.b16 %v2670_v29, %v2669_v55 }
 0x50a   : > { %6744 = vmatmul.msk.bf16.vlgmr.msra.gmra.mxu3 %vm1971_vm0, %v2617_v39 }
 0x50b   : > { %v1851_v13 = vpop.f32.mrf.mxu2  ;;  %2755 = vmatpush.bf16.msra.mxu3 %v8354_v14 }
 0x50c   : > { %v1930_v27 = vpack.c.bf16 %v1851_v13, %v1851_v13 }
 0x50d   : > { %v2422_v21 = vpop.f32.mrf.mxu3 }
 0x50e   : > { %v2432_v41 = vadd.f32 %v2422_v21, %v2376_v38  ;;  %v2671_v51 = vunpack.c.l.b16 %v1930_v27 }
 0x50f   : > { %2756 = vmatpush.bf16.msra.mxu3 %v8353_v46 }
 0x513   : > { %v1853_v23 = vpop.f32.mrf.mxu2 }
 0x514   : > { %v1931_v12 = vpack.c.bf16 %v1853_v23, %v1853_v23 }
 0x515   : > { %v2424_v45 = vpop.f32.mrf.mxu3 }
 0x516   : > { %v2433_v47 = vadd.f32 %v2424_v45, %v2377_v9  ;;  %v2672_v52 = vunpack.c.l.b16 %v1931_v12 }
 0x518   : > { %v2674_v31 = vpack.c.b16 %v2672_v52, %v2671_v51  ;;  %v8381_v51 = vld [vmem:[%s11253_s7 + $0x30] sm:$0xff] }
 0x519   : > { %8628 = vmatpush.bf16.msrb.mxu2 %v8381_v51  ;;  %3220 = vmatpush.bf16.msrb.mxu0 %v8381_v51 }
 0x51a   : > { %6745 = vmatmul.msk.bf16.gmra.mxu3 %vm1971_vm0, %v2618_v5 }
 0x51b   : > { %v1856_v40 = vpop.f32.mrf.mxu2 }
 0x51c   : > { %v1932_v0 = vpack.c.bf16 %v1856_v40, %v1856_v40 }
 0x51d   : > { %v2427_v53 = vpop.f32.mrf.mxu3 }
 0x51e   : > { %v2434_v34 = vadd.f32 %v2427_v53, %v2378_v18  ;;  %v2725_v15 = vunpack.c.l.b16 %v1932_v0 }
 0x523   : > { %v1858_v43 = vpop.f32.mrf.mxu2 }
 0x524   : > { %v1933_v50 = vpack.c.bf16 %v1858_v43, %v1858_v43 }
 0x525   : > { %v2429_v30 = vpop.f32.mrf.mxu3 }
 0x526   : > { %v2435_v59 = vadd.f32 %v2429_v30, %v2379_v25  ;;  %v2726_v4 = vunpack.c.l.b16 %v1933_v50 }
 0x528   : > { %v2729_v35 = vpack.c.b16 %v2726_v4, %v2725_v15  ;;  %v8675_v4 = vld [vmem:[%s11251_s5] ss:$0 sm:$0xff] }
 0x52a   : > { %6758 = vmatmul.msk.bf16.vlgmr.msrb.gmra.mxu3 %vm1971_vm0, %v2673_v8 }
 0x52b   : > { %v1861_v56 = vpop.f32.mrf.mxu2  ;;  %2811 = vmatpush.bf16.msrb.mxu3 %v8356_v63 }
 0x52c   : > { %v1934_v49 = vpack.c.bf16 %v1861_v56, %v1861_v56 }
 0x52d   : > { %v2478_v26 = vpop.f32.mrf.mxu3 }
 0x52e   : > { %v2488_v10 = vadd.f32 %v2478_v26, %v2432_v41  ;;  %v2727_v18 = vunpack.c.l.b16 %v1934_v49 }
 0x52f   : > { %2812 = vmatpush.bf16.msrb.mxu3 %v8355_v16 }
 0x533   : > { %v1863_v38 = vpop.f32.mrf.mxu2 }
 0x534   : > { %v1935_v20 = vpack.c.bf16 %v1863_v38, %v1863_v38 }
 0x535   : > { %v2480_v61 = vpop.f32.mrf.mxu3 }
 0x536   : > { %v9496_v2 = vadd.f32 %v2480_v61, %v2433_v47  ;;  %v2728_v22 = vunpack.c.l.b16 %v1935_v20 }
 0x538   : > { %v2730_v19 = vpack.c.b16 %v2728_v22, %v2727_v18 }
 0x53a   : > { %6759 = vmatmul.msk.bf16.gmra.mxu3 %vm1971_vm0, %v2674_v31 }
 0x53b   : > { %v1866_v9 = vpop.f32.mrf.mxu2 }
 0x53c   : > { %v1936_v36 = vpack.c.bf16 %v1866_v9, %v1866_v9 }
 0x53d   : > { %v2483_v62 = vpop.f32.mrf.mxu3 }
 0x53e   : > { %v2490_v48 = vadd.f32 %v2483_v62, %v2434_v34  ;;  %v2781_v39 = vunpack.c.l.b16 %v1936_v36 }
 0x543   : > { %v1868_v11 = vpop.f32.mrf.mxu2 }
 0x544   : > { %v1937_v6 = vpack.c.bf16 %v1868_v11, %v1868_v11 }
 0x545   : > { %v2485_v60 = vpop.f32.mrf.mxu3 }
 0x546   : > { %v9505_v17 = vadd.f32 %v2485_v60, %v2435_v59  ;;  %v2782_v42 = vunpack.c.l.b16 %v1937_v6  ;;  %v8377_v60 = vld [vmem:[%s11253_s7 + $0x10] sm:$0xff] }
 0x547   : > { %3279 = vmatpush.bf16.msrb.mxu1 %v8377_v60 }
 0x548   : > { %v2785_v41 = vpack.c.b16 %v2782_v42, %v2781_v39 }
 0x54a   : > { %6772 = vmatmul.msk.bf16.vlgmr.msra.gmra.mxu3 %vm1971_vm0, %v2729_v35 }
 0x54b   : > { %v1871_v25 = vpop.f32.mrf.mxu2 }
 0x54c   : > { %v1938_v44 = vpack.c.bf16 %v1871_v25, %v1871_v25 }
 0x54d   : > { %v2534_v28 = vpop.f32.mrf.mxu3 }
 0x54e   : > { %v2544_v57 = vadd.f32 %v2534_v28, %v2488_v10  ;;  %v2783_v47 = vunpack.c.l.b16 %v1938_v44  ;;  %v8362_v44 = vld [vmem:[%s11252_s6 + $0x28] sm:$0xff] }
 0x553   : > { %v1873_v32 = vpop.f32.mrf.mxu2 }
 0x554   : > { %v1939_v45 = vpack.c.bf16 %v1873_v32, %v1873_v32  ;;  %v8359_v32 = vld [vmem:[%s11252_s6 + $0x10] sm:$0xff] }
 0x555   : > { %v2536_v24 = vpop.f32.mrf.mxu3 }
 0x556   : > { %v2784_v5 = vunpack.c.l.b16 %v1939_v45  ;;  %v2545_v56 = vadd.f32 %v2536_v24, %v9496_v2  ;;  %v8376_v45 = vld [vmem:[%s11253_s7 + $0x8] sm:$0xff] }
 0x557   : > { %3280 = vmatpush.bf16.msrb.mxu1 %v8376_v45 }
 0x558   : > { %v2786_v23 = vpack.c.b16 %v2784_v5, %v2783_v47  ;;  %v8363_v47 = vld [vmem:[%s11252_s6 + $0x30] sm:$0xff]  ;;  %v8364_v5 = vld [vmem:[%s11252_s6 + $0x38] sm:$0xff] }
 0x55a   : > { %6773 = vmatmul.msk.bf16.gmra.mxu3 %vm1971_vm0, %v2730_v19 }
 0x55d   : > { %v2539_v7 = vpop.f32.mrf.mxu3 }
 0x55e   : > { %v2546_v33 = vadd.f32 %v2539_v7, %v2490_v48 }
 0x565   : > { %v2541_v21 = vpop.f32.mrf.mxu3 }
 0x566   : > { %v2547_v9 = vadd.f32 %v2541_v21, %v9505_v17  ;;  %v8357_v17 = vld [vmem:[%s11252_s6] sm:$0xff]  ;;  %v8358_v21 = vld [vmem:[%s11252_s6 + $0x8] sm:$0xff] }
 0x56a   : > { %6786 = vmatmul.msk.bf16.vlgmr.msrb.gmra.mxu3 %vm1971_vm0, %v2785_v41 }
 0x56d   : > { %v2590_v1 = vpop.f32.mrf.mxu3 }
 0x56e   : > { %v2600_v13 = vadd.f32 %v2590_v1, %v2544_v57  ;;  %v8360_v1 = vld [vmem:[%s11252_s6 + $0x18] sm:$0xff] }
 0x575   : > { %v2592_v53 = vpop.f32.mrf.mxu3 }
 0x576   : > { %v2601_v48 = vadd.f32 %v2592_v53, %v2545_v56  ;;  %v8375_v53 = vld [vmem:[%s11253_s7] sm:$0xff]  ;;  %v8384_v56 = vld [vmem:[%s11253_s7 + $0x48] sm:$0xff] }
 0x577   : > { %3281 = vmatpush.bf16.msrb.mxu1 %v8375_v53 }
 0x57a   : > { %6787 = vmatmul.msk.bf16.gmra.mxu3 %vm1971_vm0, %v2786_v23  ;;  %v8365_v23 = vld [vmem:[%s11252_s6 + $0x40] sm:$0xff] }
 0x57d   : > { %v2595_v34 = vpop.f32.mrf.mxu3 }
 0x57e   : > { %v2602_v14 = vadd.f32 %v2595_v34, %v2546_v33 }
 0x585   : > { %v2597_v54 = vpop.f32.mrf.mxu3 }
 0x586   : > { %v2603_v18 = vadd.f32 %v2597_v54, %v2547_v9 }
 0x58d   : > { %v2646_v37 = vpop.f32.mrf.mxu3 }
 0x58e   : > { %v2656_v55 = vadd.f32 %v2646_v37, %v2600_v13  ;;  %v8380_v13 = vld [vmem:[%s11253_s7 + $0x28] sm:$0xff] }
 0x58f   : > { %8629 = vmatpush.bf16.msrb.mxu2 %v8380_v13  ;;  %3221 = vmatpush.bf16.msrb.mxu0 %v8380_v13 }
 0x595   : > { %v2648_v29 = vpop.f32.mrf.mxu3 }
 0x596   : > { %v2657_v63 = vadd.f32 %v2648_v29, %v2601_v48  ;;  %v8379_v29 = vld [vmem:[%s11253_s7 + $0x20] sm:$0xff] }
 0x597   : > { %3222 = vmatpush.bf16.msrb.mxu0 %v8379_v29  ;;  %8630 = vmatpush.bf16.msrb.mxu2 %v8379_v29 }
 0x59d   : > { %v2651_v30 = vpop.f32.mrf.mxu3 }
 0x59e   : > { %v2658_v46 = vadd.f32 %v2651_v30, %v2602_v14 }
 0x5a5   : > { %v2653_v59 = vpop.f32.mrf.mxu3 }
 0x5a6   : > { %v2659_v22 = vadd.f32 %v2653_v59, %v2603_v18  ;;  %v8389_v18 = vld [vmem:[%s11253_s7 + $0x70] sm:$0xff] }
 0x5ad   : > { %v2702_v40 = vpop.f32.mrf.mxu3 }
 0x5ae   : > { %v2712_v8 = vadd.f32 %v2702_v40, %v2656_v55  ;;  %v8366_v55 = vld [vmem:[%s11252_s6 + $0x48] sm:$0xff] }
 0x5b5   : > { %v2704_v26 = vpop.f32.mrf.mxu3 }
 0x5b6   : > { %v2713_v50 = vadd.f32 %v2704_v26, %v2657_v63 }
 0x5bd   : > { %v2707_v10 = vpop.f32.mrf.mxu3 }
 0x5be   : > { %v2714_v27 = vadd.f32 %v2707_v10, %v2658_v46 }
 0x5c5   : > { %v2709_v12 = vpop.f32.mrf.mxu3 }
 0x5c6   : > { %v2715_v19 = vadd.f32 %v2709_v12, %v2659_v22  ;;  %v8388_v22 = vld [vmem:[%s11253_s7 + $0x68] sm:$0xff] }
 0x5cd   : > { %v2758_v43 = vpop.f32.mrf.mxu3 }
 0x5ce   : > { %v2768_v0 = vadd.f32 %v2758_v43, %v2712_v8 }
 0x5d5   : > { %v2760_v52 = vpop.f32.mrf.mxu3 }
 0x5d6   : > { %v2769_v38 = vadd.f32 %v2760_v52, %v2713_v50  ;;  %v8386_v52 = vld [vmem:[%s11253_s7 + $0x58] sm:$0xff]  ;;  %v8383_v50 = vld [vmem:[%s11253_s7 + $0x40] sm:$0xff] }
 0x5d7   : > { %3346 = vmatpush.bf16.msra.mxu2 %v8386_v52 }
 0x5dd   : > { %v2763_v61 = vpop.f32.mrf.mxu3 }
 0x5de   : > { %v2770_v24 = vadd.f32 %v2763_v61, %v2714_v27  ;;  %v8367_v27 = vld [vmem:[%s11252_s6 + $0x50] sm:$0xff] }
 0x5e5   : > { %v2765_v31 = vpop.f32.mrf.mxu3 }
 0x5e6   : > { %v2771_v7 = vadd.f32 %v2765_v31, %v2715_v19  ;;  %v8385_v31 = vld [vmem:[%s11253_s7 + $0x50] sm:$0xff] }
 0x5e7   : > { %3347 = vmatpush.bf16.msra.mxu2 %v8385_v31  ;;  %v8396_v31 = vld [vmem:[%s11253_s7 + $0xa8] sm:$0xff] }
 0x5eb   : > { %3348 = vmatpush.bf16.msra.mxu2 %v8384_v56 }
 0x5ed   : > { %v2814_v62 = vpop.f32.mrf.mxu3 }
 0x5ee   : > { %v2824_v15 = vadd.f32 %v2814_v62, %v2768_v0  ;;  %v8368_v0 = vld [vmem:[%s11252_s6 + $0x58] sm:$0xff] }
 0x5ef   : > { %3349 = vmatpush.bf16.msra.mxu2 %v8383_v50 }
 0x5f0   : > { %v2832_v35 = vadd.f32 %v8675_v4, %v2824_v15 }
 0x5f2   : > { %v2836_v57 = vmax.f32 %v2832_v35, 0.0 }
 0x5f5   : > { %v2816_v16 = vpop.f32.mrf.mxu3 }
 0x5f6   : > { %v2825_v28 = vadd.f32 %v2816_v16, %v2769_v38 }
 0x5f8   : > { %v2833_v2 = vadd.f32 %v8675_v4, %v2825_v28 }
 0x5fa   : > { %v2837_v58 = vmax.f32 %v2833_v2, 0.0  ;;  %v8369_v2 = vld [vmem:[%s11252_s6 + $0x60] sm:$0xff] }
 0x5fc   : > { %v2840_v49 = vpack.c.bf16 %v2837_v58, %v2836_v57 }
 0x5fd   : > { %v2819_v20 = vpop.f32.mrf.mxu3 }
 0x5fe   : > { %v2826_v11 = vadd.f32 %v2819_v20, %v2770_v24 }
 0x600   : > { %v2834_v36 = vadd.f32 %v8675_v4, %v2826_v11 }
 0x602   : > { %v2838_v39 = vmax.f32 %v2834_v36, 0.0 }
 0x605   : > { %v2821_v33 = vpop.f32.mrf.mxu3 }
 0x606   : > { %v2827_v6 = vadd.f32 %v2821_v33, %v2771_v7  ;;  %v8370_v7 = vld [vmem:[%s11252_s6 + $0x68] sm:$0xff]  ;;  %v8387_v33 = vld [vmem:[%s11253_s7 + $0x60] sm:$0xff] }
 0x608   : > { %v2835_v25 = vadd.f32 %v8675_v4, %v2827_v6 }
 0x60a   : > { %v2839_v42 = vmax.f32 %v2835_v25, 0.0 }
 0x60c   : > { %v2841_v41 = vpack.c.bf16 %v2839_v42, %v2838_v39 }
 0x60e   : > { %3028 = vmatpush.bf16.msra.mxu3 %v2841_v41 }
 0x612   : > { %3029 = vmatpush.bf16.msra.mxu3 %v2840_v49  ;;  %v8390_v49 = vld [vmem:[%s11253_s7 + $0x78] sm:$0xff] }
 0x613   : > { %3418 = vmatpush.bf16.msra.mxu0 %v8390_v49  ;;  %v8401_v49 = vld [vmem:[%s11253_s7 + $0xd0] sm:$0xff] }
 0x615   : > { %6860 = vmatmul.msk.bf16.vlgmr.msra.gmra.mxu3 %vm1971_vm0, %v8357_v17 }
 0x616   : > { %8631 = vmatpush.bf16.msrb.mxu3 %v9516_v3  ;;  %v8361_v3 = vld [vmem:[%s11252_s6 + $0x20] sm:$0xff] }
 0x617   : > { %3419 = vmatpush.bf16.msra.mxu0 %v8389_v18  ;;  %v8399_v18 = vld [vmem:[%s11253_s7 + $0xc0] sm:$0xff] }
 0x61a   : > { %8632 = vmatpush.bf16.msrb.mxu3 %v8377_v60 }
 0x61b   : > { %3420 = vmatpush.bf16.msra.mxu0 %v8388_v22 }
 0x61e   : > { %8633 = vmatpush.bf16.msrb.mxu3 %v8376_v45  ;;  %v8393_v45 = vld [vmem:[%s11253_s7 + $0x90] sm:$0xff] }
 0x61f   : > { %3421 = vmatpush.bf16.msra.mxu0 %v8387_v33 }
 0x622   : > { %8634 = vmatpush.bf16.msrb.mxu3 %v8375_v53 }
 0x625   : > { %6861 = vmatmul.msk.bf16.gmra.mxu3 %vm1971_vm0, %v8358_v21  ;;  %v8371_v21 = vld [vmem:[%s11252_s6 + $0x70] sm:$0xff] }
 0x635   : > { %6862 = vmatmul.msk.bf16.gmra.mxu3 %vm1971_vm0, %v8359_v32 }
 0x645   : > { %6863 = vmatmul.msk.bf16.gmra.mxu3 %vm1971_vm0, %v8360_v1 }
 0x655   : > { %6864 = vmatmul.msk.bf16.gmra.mxu3 %vm1971_vm0, %v8361_v3  ;;  %v8394_v3 = vld [vmem:[%s11253_s7 + $0x98] sm:$0xff] }
 0x656   : > { %3490 = vmatpush.bf16.msra.mxu1 %v8394_v3  ;;  %v8403_v3 = vld [vmem:[%s11253_s7 + $0xe0] sm:$0xff] }
 0x65a   : > { %3491 = vmatpush.bf16.msra.mxu1 %v8393_v45 }
 0x665   : > { %6865 = vmatmul.msk.bf16.gmra.mxu3 %vm1971_vm0, %v8362_v44 }
 0x675   : > { %6866 = vmatmul.msk.bf16.gmra.mxu3 %vm1971_vm0, %v8363_v47  ;;  %v8392_v47 = vld [vmem:[%s11253_s7 + $0x88] sm:$0xff] }
 0x676   : > { %3492 = vmatpush.bf16.msra.mxu1 %v8392_v47 }
 0x685   : > { %6867 = vmatmul.msk.bf16.gmra.mxu3 %vm1971_vm0, %v8364_v5 }
 0x695   : > { %6868 = vmatmul.msk.bf16.gmra.mxu3 %vm1971_vm0, %v8365_v23 }
 0x698   : > { %v3031_v34 = vpop.f32.mrf.mxu3 }
 0x699   : > { %v3121_v14 = vpack.c.bf16 %v3031_v34, %v3031_v34  ;;  %v8372_v34 = vld [vmem:[%s11252_s6 + $0x78] sm:$0xff] }
 0x69b   : > { %v3238_v30 = vunpack.c.l.b16 %v3121_v14  ;;  %v8391_v14 = vld [vmem:[%s11253_s7 + $0x80] sm:$0xff] }
 0x69c   : > { %3493 = vmatpush.bf16.msra.mxu1 %v8391_v14 }
 0x6a0   : > { %v3033_v54 = vpop.f32.mrf.mxu3 }
 0x6a1   : > { %v3122_v37 = vpack.c.bf16 %v3033_v54, %v3033_v54 }
 0x6a3   : > { %v3239_v46 = vunpack.c.l.b16 %v3122_v37 }
 0x6a5   : > { %v3242_v59 = vpack.c.b16 %v3239_v46, %v3238_v30  ;;  %6869 = vmatmul.msk.bf16.gmra.mxu3 %vm1971_vm0, %v8366_v55 }
 0x6a7   : > { %6920 = vmatmul.msk.bf16.vlgmr.msrb.gmra.mxu1 %vm3208_vm1, %v3242_v59 }
 0x6a8   : > { %v3036_v40 = vpop.f32.mrf.mxu3 }
 0x6a9   : > { %v3123_v8 = vpack.c.bf16 %v3036_v40, %v3036_v40  ;;  %v8373_v40 = vld [vmem:[%s11252_s6 + $0x80] sm:$0xff] }
 0x6ab   : > { %v9588_v12 = vunpack.c.l.b16 %v3123_v8 }
 0x6b0   : > { %v3038_v26 = vpop.f32.mrf.mxu3 }
 0x6b1   : > { %v3124_v10 = vpack.c.bf16 %v3038_v26, %v3038_v26 }
 0x6b3   : > { %v9590_v43 = vunpack.c.l.b16 %v3124_v10 }
 0x6b5   : > { %v3243_v51 = vpack.c.b16 %v9590_v43, %v9588_v12  ;;  %6870 = vmatmul.msk.bf16.gmra.mxu3 %vm1971_vm0, %v8367_v27  ;;  %v8398_v27 = vld [vmem:[%s11253_s7 + $0xb8] sm:$0xff] }
 0x6b8   : > { %v3041_v61 = vpop.f32.mrf.mxu3 }
 0x6b9   : > { %v3125_v62 = vpack.c.bf16 %v3041_v61, %v3041_v61  ;;  %v8397_v61 = vld [vmem:[%s11253_s7 + $0xb0] sm:$0xff] }
 0x6bb   : > { %v3178_v15 = vunpack.c.l.b16 %v3125_v62 }
 0x6c0   : > { %v3043_v48 = vpop.f32.mrf.mxu3 }
 0x6c1   : > { %v3126_v63 = vpack.c.bf16 %v3043_v48, %v3043_v48 }
 0x6c3   : > { %v3179_v4 = vunpack.c.l.b16 %v3126_v63  ;;  %v8374_v63 = vld [vmem:[%s11252_s6 + $0x88] sm:$0xff] }
 0x6c5   : > { %v3182_v60 = vpack.c.b16 %v3179_v4, %v3178_v15  ;;  %6871 = vmatmul.msk.bf16.gmra.mxu3 %vm1971_vm0, %v8368_v0  ;;  %v8395_v0 = vld [vmem:[%s11253_s7 + $0xa0] sm:$0xff] }
 0x6c7   : > { %6902 = vmatmul.msk.bf16.vlgmr.msrb.gmra.mxu0 %vm3208_vm1, %v3182_v60 }
 0x6c8   : > { %v3046_v38 = vpop.f32.mrf.mxu3 }
 0x6c9   : > { %v3127_v16 = vpack.c.bf16 %v3046_v38, %v3046_v38 }
 0x6cb   : > { %v3180_v57 = vunpack.c.l.b16 %v3127_v16 }
 0x6d0   : > { %v3048_v35 = vpop.f32.mrf.mxu3 }
 0x6d1   : > { %v3128_v28 = vpack.c.bf16 %v3048_v35, %v3048_v35 }
 0x6d3   : > { %v3181_v58 = vunpack.c.l.b16 %v3128_v28 }
 0x6d5   : > { %v3183_v9 = vpack.c.b16 %v3181_v58, %v3180_v57  ;;  %6872 = vmatmul.msk.bf16.gmra.mxu3 %vm1971_vm0, %v8369_v2  ;;  %v8402_v58 = vld [vmem:[%s11253_s7 + $0xd8] sm:$0xff] }
 0x6d6   : > { %3634 = vmatpush.bf16.msrb.mxu0 %v8402_v58 }
 0x6d7   : > { %6903 = vmatmul.msk.bf16.vlgmr.msrb.gmra.mxu2 %vm3208_vm1, %v3183_v9 }
 0x6d8   : > { %v3051_v20 = vpop.f32.mrf.mxu3  ;;  %3562 = vmatpush.bf16.msrb.mxu2 %v8398_v27 }
 0x6d9   : > { %v3129_v24 = vpack.c.bf16 %v3051_v20, %v3051_v20  ;;  %v8400_v20 = vld [vmem:[%s11253_s7 + $0xc8] sm:$0xff] }
 0x6da   : > { %3635 = vmatpush.bf16.msrb.mxu0 %v8401_v49 }
 0x6db   : > { %v3306_v36 = vunpack.c.l.b16 %v3129_v24 }
 0x6dc   : > { %3563 = vmatpush.bf16.msrb.mxu2 %v8397_v61 }
 0x6de   : > { %3636 = vmatpush.bf16.msrb.mxu0 %v8400_v20 }
 0x6e0   : > { %v3053_v19 = vpop.f32.mrf.mxu3  ;;  %3564 = vmatpush.bf16.msrb.mxu2 %v8396_v31 }
 0x6e1   : > { %v3130_v11 = vpack.c.bf16 %v3053_v19, %v3053_v19 }
 0x6e2   : > { %3637 = vmatpush.bf16.msrb.mxu0 %v8399_v18 }
 0x6e3   : > { %v3307_v6 = vunpack.c.l.b16 %v3130_v11 }
 0x6e4   : > { %3565 = vmatpush.bf16.msrb.mxu2 %v8395_v0 }
 0x6e5   : > { %v3310_v25 = vpack.c.b16 %v3307_v6, %v3306_v36  ;;  %6873 = vmatmul.msk.bf16.gmra.mxu3 %vm1971_vm0, %v8370_v7 }
 0x6e7   : > { %6946 = vmatmul.msk.bf16.vlgmr.msra.gmra.mxu2 %vm3208_vm1, %v3310_v25 }
 0x6e8   : > { %v3056_v39 = vpop.f32.mrf.mxu3 }
 0x6e9   : > { %v3131_v42 = vpack.c.bf16 %v3056_v39, %v3056_v39 }
 0x6eb   : > { %v3308_v32 = vunpack.c.l.b16 %v3131_v42  ;;  %v8406_v42 = vld [vmem:[%s11253_s7 + $0xf8] sm:$0xff] }
 0x6ec   : > { %3706 = vmatpush.bf16.msrb.mxu1 %v8406_v42  ;;  %v7138_v42 = vld [vmem:[%s11255_s9 + $0x70] sm:$0xf] }
 0x6f0   : > { %v3058_v41 = vpop.f32.mrf.mxu3 }
 0x6f1   : > { %v3132_v17 = vpack.c.bf16 %v3058_v41, %v3058_v41 }
 0x6f3   : > { %v3309_v1 = vunpack.c.l.b16 %v3132_v17  ;;  %v8405_v17 = vld [vmem:[%s11253_s7 + $0xf0] sm:$0xff] }
 0x6f4   : > { %3707 = vmatpush.bf16.msrb.mxu1 %v8405_v17  ;;  %v8426_v17 = vld [vmem:[%s11255_s9 + $0x74] sm:$0xf0] }
 0x6f5   : > { %v3311_v13 = vpack.c.b16 %v3309_v1, %v3308_v32  ;;  %6874 = vmatmul.msk.bf16.gmra.mxu3 %vm1971_vm0, %v8371_v21  ;;  %v8404_v21 = vld [vmem:[%s11253_s7 + $0xe8] sm:$0xff] }
 0x6f7   : > { %6947 = vmatmul.msk.bf16.gmra.mxu2 %vm3208_vm1, %v3311_v13 }
 0x6f8   : > { %v3061_v44 = vpop.f32.mrf.mxu3  ;;  %3708 = vmatpush.bf16.msrb.mxu1 %v8404_v21  ;;  %v8425_v21 = vld [vmem:[%s11255_s9 + $0x74] sm:$0xf] }
 0x6f9   : > { %v3133_v5 = vpack.c.bf16 %v3061_v44, %v3061_v44 }
 0x6fb   : > { %v3378_v54 = vunpack.c.l.b16 %v3133_v5 }
 0x6fc   : > { %3709 = vmatpush.bf16.msrb.mxu1 %v8403_v3  ;;  %v7164_v3 = vld [vmem:[%s11255_s9 + $0x20] sm:$0xf] }
 0x700   : > { %v3063_v53 = vpop.f32.mrf.mxu3 }
 0x701   : > { %v3134_v23 = vpack.c.bf16 %v3063_v53, %v3063_v53 }
 0x703   : > { %v3379_v37 = vunpack.c.l.b16 %v3134_v23 }
 0x705   : > { %v3382_v55 = vpack.c.b16 %v3379_v37, %v3378_v54  ;;  %6875 = vmatmul.msk.bf16.gmra.mxu3 %vm1971_vm0, %v8372_v34 }
 0x707   : > { %6972 = vmatmul.msk.bf16.vlgmr.msra.gmra.mxu0 %vm3208_vm1, %v3382_v55  ;;  %v8410_v55 = vld [vmem:[%s11253_s7 + $0x118] sm:$0xff] }
 0x708   : > { %v3066_v29 = vpop.f32.mrf.mxu3  ;;  %3778 = vmatpush.bf16.msra.mxu2 %v8410_v55 }
 0x709   : > { %v3135_v30 = vpack.c.bf16 %v3066_v29, %v3066_v29 }
 0x70b   : > { %v3380_v8 = vunpack.c.l.b16 %v3135_v30  ;;  %v8409_v30 = vld [vmem:[%s11253_s7 + $0x110] sm:$0xff] }
 0x70c   : > { %3779 = vmatpush.bf16.msra.mxu2 %v8409_v30  ;;  %v8414_v30 = vld [vmem:[%s11255_s9 + $0x14] sm:$0xf0] }
 0x710   : > { %v3068_v46 = vpop.f32.mrf.mxu3 }
 0x711   : > { %v3136_v59 = vpack.c.bf16 %v3068_v46, %v3068_v46  ;;  %v8408_v46 = vld [vmem:[%s11253_s7 + $0x108] sm:$0xff] }
 0x712   : > { %3780 = vmatpush.bf16.msra.mxu2 %v8408_v46 }
 0x713   : > { %v3381_v26 = vunpack.c.l.b16 %v3136_v59 }
 0x715   : > { %v3383_v10 = vpack.c.b16 %v3381_v26, %v3380_v8  ;;  %6876 = vmatmul.msk.bf16.gmra.mxu3 %vm1971_vm0, %v8373_v40  ;;  %v8407_v26 = vld [vmem:[%s11253_s7 + $0x100] sm:$0xff] }
 0x716   : > { %3781 = vmatpush.bf16.msra.mxu2 %v8407_v26  ;;  %v8421_v26 = vld [vmem:[%s11255_s9 + $0x54] sm:$0xf] }
 0x717   : > { %6973 = vmatmul.msk.bf16.gmra.mxu0 %vm3208_vm1, %v3383_v10 }
 0x718   : > { %v3071_v52 = vpop.f32.mrf.mxu3 }
 0x719   : > { %v3137_v56 = vpack.c.bf16 %v3071_v52, %v3071_v52 }
 0x71b   : > { %v3450_v50 = vunpack.c.l.b16 %v3137_v56 }
 0x720   : > { %v3073_v62 = vpop.f32.mrf.mxu3 }
 0x721   : > { %v3138_v48 = vpack.c.bf16 %v3073_v62, %v3073_v62 }
 0x723   : > { %v3451_v15 = vunpack.c.l.b16 %v3138_v48 }
 0x725   : > { %v3454_v4 = vpack.c.b16 %v3451_v15, %v3450_v50  ;;  %6877 = vmatmul.msk.bf16.gmra.mxu3 %vm1971_vm0, %v8374_v63 }
 0x727   : > { %6998 = vmatmul.msk.bf16.vlgmr.msra.gmra.mxu1 %vm3208_vm1, %v3454_v4 }
 0x728   : > { %v3076_v60 = vpop.f32.mrf.mxu3 }
 0x729   : > { %v3139_v38 = vpack.c.bf16 %v3076_v60, %v3076_v60 }
 0x72b   : > { %v3452_v28 = vunpack.c.l.b16 %v3139_v38 }
 0x730   : > { %v3078_v16 = vpop.f32.mrf.mxu3 }
 0x731   : > { %v3140_v35 = vpack.c.bf16 %v3078_v16, %v3078_v16 }
 0x733   : > { %v3453_v2 = vunpack.c.l.b16 %v3140_v35 }
 0x735   : > { %v3455_v57 = vpack.c.b16 %v3453_v2, %v3452_v28  ;;  %6921 = vmatmul.msk.bf16.vlgmr.msrb.gmra.mxu3 %vm3208_vm1, %v3243_v51 }
 0x737   : > { %6999 = vmatmul.msk.bf16.gmra.mxu1 %vm3208_vm1, %v3455_v57 }
 0x738   : > { %v3081_v9 = vpop.f32.mrf.mxu3 }
 0x739   : > { %v3141_v12 = vpack.c.bf16 %v3081_v9, %v3081_v9 }
 0x73b   : > { %v3522_v22 = vunpack.c.l.b16 %v3141_v12 }
 0x740   : > { %v3083_v43 = vpop.f32.mrf.mxu3 }
 0x741   : > { %v3142_v51 = vpack.c.bf16 %v3083_v43, %v3083_v43 }
 0x743   : > { %v3523_v24 = vunpack.c.l.b16 %v3142_v51 }
 0x744   : > { %v9733_v18 = vpop.f32.mrf.mxu0 }
 0x745   : > { %v3526_v19 = vpack.c.b16 %v3523_v24, %v3522_v22  ;;  %v9737_v24 = vpop.f32.mrf.mxu1 }
 0x747   : > { %7024 = vmatmul.msk.bf16.vlgmr.msrb.gmra.mxu2 %vm3208_vm1, %v3526_v19 }
 0x748   : > { %v3086_v11 = vpop.f32.mrf.mxu3 }
 0x749   : > { %v3143_v7 = vpack.c.bf16 %v3086_v11, %v3086_v11 }
 0x74b   : > { %v3524_v6 = vunpack.c.l.b16 %v3143_v7 }
 0x74c   : > { %v9739_v19 = vpop.f32.mrf.mxu0 }
 0x74d   : > { %v9743_v7 = vpop.f32.mrf.mxu1 }
 0x750   : > { %v3088_v33 = vpop.f32.mrf.mxu3 }
 0x751   : > { %v3144_v36 = vpack.c.bf16 %v3088_v33, %v3088_v33 }
 0x753   : > { %v3525_v25 = vunpack.c.l.b16 %v3144_v36 }
 0x755   : > { %v3527_v39 = vpack.c.b16 %v3525_v25, %v3524_v6  ;;  %v7172_v25 = vld [vmem:[%s11255_s9 + $0x30] sm:$0xf] }
 0x757   : > { %7025 = vmatmul.msk.bf16.gmra.mxu2 %vm3208_vm1, %v3527_v39  ;;  %v8418_v39 = vld [vmem:[%s11255_s9 + $0x34] sm:$0xf0] }
 0x758   : > { %v3091_v41 = vpop.f32.mrf.mxu3 }
 0x759   : > { %v3145_v32 = vpack.c.bf16 %v3091_v41, %v3091_v41  ;;  %v7173_v41 = vor.u32 %v8418_v39, %v7172_v25  ;;  %v8434_v25 = vld [vmem:[%s11255_s9 + $0xb4] sm:$0xf0] }
 0x75a   : > { %v9727_v12 = vpop.f32.mrf.mxu2 }
 0x75b   : > { %v3594_v44 = vunpack.c.l.b16 %v3145_v32  ;;  %v7140_v32 = vld [vmem:[%s11255_s9 + $0x78] sm:$0xf0]  ;;  %3945 = vmatpush.bf16.msrb.mxu2 %v7173_v41  ;;  %v7208_v41 = vld [vmem:[%s11255_s9 + $0xa8] sm:$0xf0] }
 0x760   : > { %v3093_v1 = vpop.f32.mrf.mxu3 }
 0x761   : > { %v3146_v13 = vpack.c.bf16 %v3093_v1, %v3093_v1  ;;  %v7139_v1 = vor.u32 %v8426_v17, %v7138_v42  ;;  %v8431_v42 = vld [vmem:[%s11255_s9 + $0xa4] sm:$0xf] }
 0x762   : > { %v9729_v43 = vpop.f32.mrf.mxu2  ;;  %v8543_v17 = vld [vmem:[%s11255_s9 + $0x424] sm:$0xf] }
 0x763   : > { %v3595_v45 = vunpack.c.l.b16 %v3146_v13  ;;  %v7143_v13 = vor.u32 %v8425_v21, %v7140_v32  ;;  %3877 = vmatpush.bf16.msra.mxu0 %v7139_v1  ;;  %v7211_v21 = vor.u32 %v8431_v42, %v7208_v41  ;;  %v7796_v32 = vld [vmem:[%s11255_s9 + $0x428] sm:$0xf0]  ;;  %v8559_v41 = vld [vmem:[%s11255_s9 + $0x4a4] sm:$0xf] }
 0x764   : > { %v7799_v1 = vor.u32 %v8543_v17, %v7796_v32  ;;  %v7880_v17 = vld [vmem:[%s11255_s9 + $0x4a8] sm:$0xf0] }
 0x765   : > { %v3598_v47 = vpack.c.b16 %v3595_v45, %v3594_v44  ;;  %v8416_v44 = vld [vmem:[%s11255_s9 + $0x24] sm:$0xf0]  ;;  %3890 = vmatpush.bf16.msra.mxu1 %v7143_v13  ;;  %v8415_v13 = vld [vmem:[%s11255_s9 + $0x24] sm:$0xf] }
 0x766   : > { %v7165_v45 = vor.u32 %v8416_v44, %v7164_v3  ;;  %v7166_v3 = vld [vmem:[%s11255_s9 + $0x28] sm:$0xf0]  ;;  %v7206_v44 = vld [vmem:[%s11255_s9 + $0xa0] sm:$0xf] }
 0x767   : > { %7050 = vmatmul.msk.bf16.vlgmr.msrb.gmra.mxu0 %vm3208_vm1, %v3598_v47 }
 0x768   : > { %v3096_v5 = vpop.f32.mrf.mxu3  ;;  %3946 = vmatpush.bf16.msrb.mxu2 %v7165_v45 }
 0x769   : > { %v3147_v53 = vpack.c.bf16 %v3096_v5, %v3096_v5 }
 0x76a   : > { %v9731_v51 = vpop.f32.mrf.mxu2 }
 0x76b   : > { %v3596_v14 = vunpack.c.l.b16 %v3147_v53 }
 0x770   : > { %v3098_v23 = vpop.f32.mrf.mxu3 }
 0x771   : > { %v3148_v34 = vpack.c.bf16 %v3098_v23, %v3098_v23  ;;  %v7130_v23 = vld [vmem:[%s11255_s9 + $0x60] sm:$0xf] }
 0x772   : > { %v9735_v22 = vpop.f32.mrf.mxu2 }
 0x773   : > { %v3597_v54 = vunpack.c.l.b16 %v3148_v34  ;;  %v8424_v34 = vld [vmem:[%s11255_s9 + $0x64] sm:$0xf0] }
 0x775   : > { %v3599_v37 = vpack.c.b16 %v3597_v54, %v3596_v14  ;;  %v8423_v14 = vld [vmem:[%s11255_s9 + $0x64] sm:$0xf]  ;;  %v7131_v54 = vor.u32 %v8424_v34, %v7130_v23  ;;  %v7169_v34 = vor.u32 %v8415_v13, %v7166_v3 }
 0x777   : > { %7051 = vmatmul.msk.bf16.gmra.mxu0 %vm3208_vm1, %v3599_v37  ;;  %v7132_v37 = vld [vmem:[%s11255_s9 + $0x68] sm:$0xf0] }
 0x778   : > { %v3101_v29 = vpop.f32.mrf.mxu3  ;;  %v7135_v55 = vor.u32 %v8423_v14, %v7132_v37  ;;  %3878 = vmatpush.bf16.msra.mxu0 %v7131_v54  ;;  %v8432_v14 = vld [vmem:[%s11255_s9 + $0xa4] sm:$0xf0]  ;;  %v8429_v37 = vld [vmem:[%s11255_s9 + $0x94] sm:$0xf] }
 0x779   : > { %v3149_v59 = vpack.c.bf16 %v3101_v29, %v3101_v29  ;;  %v7156_v29 = vld [vmem:[%s11255_s9 + $0x10] sm:$0xf]  ;;  %v7207_v54 = vor.u32 %v8432_v14, %v7206_v44 }
 0x77a   : > { %v9741_v11 = vpop.f32.mrf.mxu2  ;;  %v7157_v46 = vor.u32 %v8414_v30, %v7156_v29  ;;  %3891 = vmatpush.bf16.msra.mxu1 %v7135_v55  ;;  %v7200_v55 = vld [vmem:[%s11255_s9 + $0x98] sm:$0xf0]  ;;  %v8541_v29 = vld [vmem:[%s11255_s9 + $0x414] sm:$0xf] }
 0x77b   : > { %v3666_v10 = vunpack.c.l.b16 %v3149_v59  ;;  %v7122_v59 = vld [vmem:[%s11255_s9 + $0x50] sm:$0xf] }
 0x77c   : > { %3947 = vmatpush.bf16.msrb.mxu2 %v7157_v46  ;;  %v7203_v46 = vor.u32 %v8429_v37, %v7200_v55  ;;  %v8555_v55 = vld [vmem:[%s11255_s9 + $0x484] sm:$0xf] }
 0x780   : > { %v3103_v40 = vpop.f32.mrf.mxu3 }
 0x781   : > { %v3150_v8 = vpack.c.bf16 %v3103_v40, %v3103_v40  ;;  %v8422_v40 = vld [vmem:[%s11255_s9 + $0x54] sm:$0xf0] }
 0x782   : > { %v9747_v36 = vpop.f32.mrf.mxu2 }
 0x783   : > { %v3667_v27 = vunpack.c.l.b16 %v3150_v8  ;;  %v7123_v8 = vor.u32 %v8422_v40, %v7122_v59  ;;  %v7788_v59 = vld [vmem:[%s11255_s9 + $0x418] sm:$0xf0] }
 0x784   : > { %v9745_v33 = vpop.f32.mrf.mxu0  ;;  %v7791_v40 = vor.u32 %v8541_v29, %v7788_v59  ;;  %v7864_v29 = vld [vmem:[%s11255_s9 + $0x488] sm:$0xf0]  ;;  %v7298_v59 = vld [vmem:[%s11255_s9 + $0x130] sm:$0xf] }
 0x785   : > { %v3670_v52 = vpack.c.b16 %v3667_v27, %v3666_v10  ;;  %v7124_v10 = vld [vmem:[%s11255_s9 + $0x58] sm:$0xf0]  ;;  %3879 = vmatpush.bf16.msra.mxu0 %v7123_v8  ;;  %v8413_v8 = vld [vmem:[%s11255_s9 + $0x14] sm:$0xf] }
 0x786   : > { %v7127_v27 = vor.u32 %v8421_v26, %v7124_v10  ;;  %v7158_v26 = vld [vmem:[%s11255_s9 + $0x18] sm:$0xf0]  ;;  %v7198_v10 = vld [vmem:[%s11255_s9 + $0x90] sm:$0xf] }
 0x787   : > { %7076 = vmatmul.msk.bf16.vlgmr.msrb.gmra.mxu1 %vm3208_vm1, %v3670_v52  ;;  %v7148_v52 = vld [vmem:[%s11255_s9] sm:$0xf] }
 0x788   : > { %v3106_v61 = vpop.f32.mrf.mxu3  ;;  %3892 = vmatpush.bf16.msra.mxu1 %v7127_v27  ;;  %v7161_v27 = vor.u32 %v8413_v8, %v7158_v26  ;;  %v7256_v8 = vld [vmem:[%s11255_s9 + $0xf0] sm:$0xf]  ;;  %v8442_v26 = vld [vmem:[%s11255_s9 + $0xf4] sm:$0xf0] }
 0x789   : > { %v3151_v31 = vpack.c.bf16 %v3106_v61, %v3106_v61  ;;  %v8412_v61 = vld [vmem:[%s11255_s9 + $0x4] sm:$0xf0] }
 0x78b   : > { %v3668_v48 = vunpack.c.l.b16 %v3151_v31 }
 0x78c   : > { %v9775_v47 = vpop.f32.mrf.mxu0 }
 0x790   : > { %v3108_v56 = vpop.f32.mrf.mxu3 }
 0x791   : > { %v3152_v62 = vpack.c.bf16 %v3108_v56, %v3108_v56 }
 0x793   : > { %v3669_v63 = vunpack.c.l.b16 %v3152_v62  ;;  %v7149_v62 = vor.u32 %v8412_v61, %v7148_v52  ;;  %v8430_v52 = vld [vmem:[%s11255_s9 + $0x94] sm:$0xf0]  ;;  %v3284_v61 = vadd.f32 %v9737_v24, %v9733_v18  ;;  %v7780_v18 = vld [vmem:[%s11255_s9 + $0x408] sm:$0xf0] }
 0x794   : > { %v9817_v31 = vpop.f32.mrf.mxu0 }
 0x795   : > { %v3671_v0 = vpack.c.b16 %v3669_v63, %v3668_v48  ;;  %v7114_v48 = vld [vmem:[%s11255_s9 + $0x40] sm:$0xf]  ;;  %v8420_v63 = vld [vmem:[%s11255_s9 + $0x44] sm:$0xf0]  ;;  %3948 = vmatpush.bf16.msrb.mxu2 %v7149_v62  ;;  %v7199_v62 = vor.u32 %v8430_v52, %v7198_v10  ;;  %v3361_v24 = vadd.f32 %v9731_v51, %v3284_v61  ;;  %v8441_v52 = vld [vmem:[%s11255_s9 + $0xf4] sm:$0xf] }
 0x796   : > { %v8428_v51 = vld [vmem:[%s11255_s9 + $0x84] sm:$0xf0]  ;;  %v7258_v61 = vld [vmem:[%s11255_s9 + $0xf8] sm:$0xf0] }
 0x797   : > { %7077 = vmatmul.msk.bf16.gmra.mxu1 %vm3208_vm1, %v3671_v0  ;;  %v8419_v0 = vld [vmem:[%s11255_s9 + $0x44] sm:$0xf] }
 0x798   : > { %v3111_v50 = vpop.f32.mrf.mxu3 }
 0x799   : > { %v3153_v15 = vpack.c.bf16 %v3111_v50, %v3111_v50 }
 0x79b   : > { %v3738_v38 = vunpack.c.l.b16 %v3153_v15  ;;  %v7115_v15 = vor.u32 %v8420_v63, %v7114_v48  ;;  %v8427_v48 = vld [vmem:[%s11255_s9 + $0x84] sm:$0xf]  ;;  %v7192_v63 = vld [vmem:[%s11255_s9 + $0x88] sm:$0xf0] }
 0x79c   : > { %v9880_v45 = vpop.f32.mrf.mxu0 }
 0x79d   : > { %3880 = vmatpush.bf16.msra.mxu0 %v7115_v15  ;;  %v7195_v15 = vor.u32 %v8427_v48, %v7192_v63  ;;  %v7290_v63 = vld [vmem:[%s11255_s9 + $0x120] sm:$0xf] }
 0x7a0   : > { %v3113_v4 = vpop.f32.mrf.mxu3 }
 0x7a1   : > { %v3154_v60 = vpack.c.bf16 %v3113_v4, %v3113_v4  ;;  %v7116_v4 = vld [vmem:[%s11255_s9 + $0x48] sm:$0xf0] }
 0x7a3   : > { %v3739_v16 = vunpack.c.l.b16 %v3154_v60  ;;  %v7119_v60 = vor.u32 %v8419_v0, %v7116_v4  ;;  %v8539_v0 = vld [vmem:[%s11255_s9 + $0x404] sm:$0xf] }
 0x7a4   : > { %v9749_v6 = vpop.f32.mrf.mxu1  ;;  %v7783_v4 = vor.u32 %v8539_v0, %v7780_v18  ;;  %v7261_v18 = vor.u32 %v8441_v52, %v7258_v61  ;;  %v7340_v61 = vld [vmem:[%s11255_s9 + $0x170] sm:$0xf] }
 0x7a5   : > { %v3742_v35 = vpack.c.b16 %v3739_v16, %v3738_v38  ;;  %v8433_v38 = vld [vmem:[%s11255_s9 + $0xb4] sm:$0xf]  ;;  %v7216_v16 = vld [vmem:[%s11255_s9 + $0xb8] sm:$0xf0]  ;;  %3893 = vmatpush.bf16.msra.mxu1 %v7119_v60  ;;  %v8411_v60 = vld [vmem:[%s11255_s9 + $0x4] sm:$0xf] }
 0x7a7   : > { %7102 = vmatmul.msk.bf16.vlgmr.msra.gmra.mxu2 %vm3208_vm1, %v3742_v35  ;;  %v8545_v35 = vld [vmem:[%s11255_s9 + $0x434] sm:$0xf] }
 0x7a8   : > { %v3116_v28 = vpop.f32.mrf.mxu3 }
 0x7a9   : > { %v3155_v2 = vpack.c.bf16 %v3116_v28, %v3116_v28  ;;  %v7219_v28 = vor.u32 %v8433_v38, %v7216_v16  ;;  %v7150_v38 = vld [vmem:[%s11255_s9 + $0x8] sm:$0xf0]  ;;  %v7190_v16 = vld [vmem:[%s11255_s9 + $0x80] sm:$0xf] }
 0x7ab   : > { %v3740_v58 = vunpack.c.l.b16 %v3155_v2  ;;  %v7804_v2 = vld [vmem:[%s11255_s9 + $0x438] sm:$0xf0]  ;;  %4038 = vmatpush.bf16.msra.mxu2 %v7219_v28  ;;  %v7153_v28 = vor.u32 %v8411_v60, %v7150_v38 }
 0x7ac   : > { %v9779_v53 = vpop.f32.mrf.mxu1 }
 0x7af   : > { %4039 = vmatpush.bf16.msra.mxu2 %v7211_v21 }
 0x7b0   : > { %v3118_v57 = vpop.f32.mrf.mxu3 }
 0x7b1   : > { %v3156_v9 = vpack.c.bf16 %v3118_v57, %v3118_v57  ;;  %v7807_v57 = vor.u32 %v8545_v35, %v7804_v2  ;;  %v3433_v2 = vadd.f32 %v9745_v33, %v3361_v24  ;;  %v7248_v24 = vld [vmem:[%s11255_s9 + $0xe0] sm:$0xf] }
 0x7b3   : > { %v3741_v49 = vunpack.c.l.b16 %v3156_v9  ;;  %v7174_v9 = vld [vmem:[%s11255_s9 + $0x38] sm:$0xf0]  ;;  %5174 = vmatpush.bf16.msra.mxu3 %v7807_v57  ;;  %4040 = vmatpush.bf16.msra.mxu2 %v7203_v46  ;;  %v7191_v57 = vor.u32 %v8428_v51, %v7190_v16  ;;  %v8439_v16 = vld [vmem:[%s11255_s9 + $0xe4] sm:$0xf] }
 0x7b4   : > { %v9830_v50 = vpop.f32.mrf.mxu1 }
 0x7b5   : > { %v3743_v20 = vpack.c.b16 %v3741_v49, %v3740_v58  ;;  %v8417_v58 = vld [vmem:[%s11255_s9 + $0x34] sm:$0xf]  ;;  %v7214_v49 = vld [vmem:[%s11255_s9 + $0xb0] sm:$0xf] }
 0x7b6   : > { %v7215_v39 = vor.u32 %v8434_v25, %v7214_v49  ;;  %v3505_v25 = vadd.f32 %v9749_v6, %v3433_v2  ;;  %v9961_v6 = vld [vmem:[%s11254_s8] ss:$0 sm:$0xff] }
 0x7b7   : > { %7103 = vmatmul.msk.bf16.gmra.mxu2 %vm3208_vm1, %v3743_v20  ;;  %v7177_v20 = vor.u32 %v8417_v58, %v7174_v9  ;;  %5175 = vmatpush.bf16.msra.mxu3 %v7799_v1  ;;  %v8561_v58 = vld [vmem:[%s11255_s9 + $0x4b4] sm:$0xf]  ;;  %v7883_v1 = vor.u32 %v8559_v41, %v7880_v17 }
 0x7b8   : > { %4025 = vmatpush.bf16.msrb.mxu1 %v7215_v39  ;;  %4041 = vmatpush.bf16.msra.mxu2 %v7195_v15  ;;  %v3288_v42 = vpop.f32.mrf.mxu3  ;;  %v7257_v15 = vor.u32 %v8442_v26, %v7256_v8 }
 0x7b9   : > { %3958 = vmatpush.bf16.msrb.mxu0 %v7177_v20  ;;  %v7888_v20 = vld [vmem:[%s11255_s9 + $0x4b8] sm:$0xf0]  ;;  %v3289_v21 = vadd.f32 %v3288_v42, %v9727_v12  ;;  %v8437_v42 = vld [vmem:[%s11255_s9 + $0xd4] sm:$0xf] }
 0x7ba   : > { %v7891_v39 = vor.u32 %v8561_v58, %v7888_v20  ;;  %v7872_v12 = vld [vmem:[%s11255_s9 + $0x498] sm:$0xf0] }
 0x7bb   : > { %5176 = vmatpush.bf16.msra.mxu3 %v7791_v40  ;;  %v7867_v40 = vor.u32 %v8555_v55, %v7864_v29  ;;  %v8457_v29 = vld [vmem:[%s11255_s9 + $0x174] sm:$0xf] }
 0x7bc   : > { %v9896_v30 = vpop.f32.mrf.mxu1  ;;  %4026 = vmatpush.bf16.msrb.mxu1 %v7207_v54 }
 0x7bd   : > { %3959 = vmatpush.bf16.msrb.mxu0 %v7169_v34  ;;  %v3363_v34 = vadd.f32 %v9741_v11, %v3289_v21  ;;  %v8450_v11 = vld [vmem:[%s11255_s9 + $0x134] sm:$0xf0]  ;;  %v7274_v21 = vld [vmem:[%s11255_s9 + $0x100] sm:$0xf] }
 0x7bf   : > { %5177 = vmatpush.bf16.msra.mxu3 %v7783_v4  ;;  %v3435_v10 = vadd.f32 %v9817_v31, %v3363_v34  ;;  %v8448_v31 = vld [vmem:[%s11255_s9 + $0x124] sm:$0xf0] }
 0x7c0   : > { %4027 = vmatpush.bf16.msrb.mxu1 %v7199_v62  ;;  %v7299_v62 = vor.u32 %v8450_v11, %v7298_v59  ;;  %v8440_v4 = vld [vmem:[%s11255_s9 + $0xe4] sm:$0xf0]  ;;  %v7291_v51 = vor.u32 %v8448_v31, %v7290_v63  ;;  %v7342_v59 = vld [vmem:[%s11255_s9 + $0x178] sm:$0xf0]  ;;  %v8577_v11 = vld [vmem:[%s11255_s9 + $0x534] sm:$0xf] }
 0x7c1   : > { %3960 = vmatpush.bf16.msrb.mxu0 %v7161_v27  ;;  %v3507_v60 = vadd.f32 %v9830_v50, %v3435_v10  ;;  %v7282_v50 = vld [vmem:[%s11255_s9 + $0x110] sm:$0xf]  ;;  %v8436_v34 = vld [vmem:[%s11255_s9 + $0xc4] sm:$0xf0]  ;;  %v8449_v10 = vld [vmem:[%s11255_s9 + $0x134] sm:$0xf]  ;;  %v7345_v31 = vor.u32 %v8457_v29, %v7342_v59 }
 0x7c2   : > { %v7276_v29 = vld [vmem:[%s11255_s9 + $0x108] sm:$0xf0]  ;;  %v8452_v59 = vld [vmem:[%s11255_s9 + $0x144] sm:$0xf0] }
 0x7c3   : > { %5338 = vmatpush.bf16.msrb.mxu3 %v7891_v39  ;;  %v8438_v39 = vld [vmem:[%s11255_s9 + $0xd4] sm:$0xf0] }
 0x7c4   : > { %4028 = vmatpush.bf16.msrb.mxu1 %v7191_v57  ;;  %v8446_v57 = vld [vmem:[%s11255_s9 + $0x114] sm:$0xf0] }
 0x7c5   : > { %3961 = vmatpush.bf16.msrb.mxu0 %v7153_v28  ;;  %v7283_v41 = vor.u32 %v8446_v57, %v7282_v50  ;;  %v7332_v50 = vld [vmem:[%s11255_s9 + $0x160] sm:$0xf]  ;;  %v8456_v57 = vld [vmem:[%s11255_s9 + $0x164] sm:$0xf0] }
 0x7c7   : > { %5339 = vmatpush.bf16.msrb.mxu3 %v7883_v1 }
 0x7ca   : > { %v9777_v5 = vpop.f32.mrf.mxu2 }
 0x7cb   : > { %v3577_v33 = vadd.f32 %v9777_v5, %v3505_v25  ;;  %v8557_v5 = vld [vmem:[%s11255_s9 + $0x494] sm:$0xf] }
 0x7cc   : > { %v7875_v54 = vor.u32 %v8557_v5, %v7872_v12 }
 0x7ce   : > { %5340 = vmatpush.bf16.msrb.mxu3 %v7875_v54  ;;  %v7234_v54 = vld [vmem:[%s11255_s9 + $0xc8] sm:$0xf0] }
 0x7d2   : > { %v9819_v56 = vpop.f32.mrf.mxu2  ;;  %5341 = vmatpush.bf16.msrb.mxu3 %v7867_v40  ;;  %v7972_v40 = vld [vmem:[%s11255_s9 + $0x538] sm:$0xf0] }
 0x7da   : > { %v9882_v23 = vpop.f32.mrf.mxu2 }
 0x7db   : > { %v3579_v2 = vadd.f32 %v9882_v23, %v3507_v60  ;;  %v7240_v23 = vld [vmem:[%s11255_s9 + $0xd0] sm:$0xf]  ;;  %v8575_v60 = vld [vmem:[%s11255_s9 + $0x524] sm:$0xf] }
 0x7e2   : > { %v9944_v9 = vpop.f32.mrf.mxu2 }
 0x7e4   : > { %v3639_v35 = vpop.f32.mrf.mxu0 }
 0x7e5   : > { %v3649_v32 = vadd.f32 %v3639_v35, %v3577_v33  ;;  %v7250_v35 = vld [vmem:[%s11255_s9 + $0xe8] sm:$0xf0]  ;;  %v7242_v33 = vld [vmem:[%s11255_s9 + $0xd8] sm:$0xf0] }
 0x7e6   : > { %v7253_v20 = vor.u32 %v8439_v16, %v7250_v35  ;;  %v7245_v5 = vor.u32 %v8437_v42, %v7242_v33  ;;  %v7964_v16 = vld [vmem:[%s11255_s9 + $0x528] sm:$0xf0]  ;;  %v7333_v33 = vor.u32 %v8456_v57, %v7332_v50 }
 0x7ec   : > { %v9966_v3 = vpop.f32.mrf.mxu0 }
 0x7f4   : > { %v3644_v28 = vpop.f32.mrf.mxu0 }
 0x7f5   : > { %v3651_v25 = vadd.f32 %v3644_v28, %v3579_v2  ;;  %v7292_v2 = vld [vmem:[%s11255_s9 + $0x128] sm:$0xf0] }
 0x804   : > { %v3711_v49 = vpop.f32.mrf.mxu1 }
 0x805   : > { %v3721_v13 = vadd.f32 %v3711_v49, %v3649_v32  ;;  %v7249_v49 = vor.u32 %v8440_v4, %v7248_v24  ;;  %v8444_v32 = vld [vmem:[%s11255_s9 + $0x104] sm:$0xf0]  ;;  %v7334_v4 = vld [vmem:[%s11255_s9 + $0x168] sm:$0xf0] }
 0x806   : > { %v7275_v55 = vor.u32 %v8444_v32, %v7274_v21  ;;  %v7324_v21 = vld [vmem:[%s11255_s9 + $0x150] sm:$0xf]  ;;  %v8454_v32 = vld [vmem:[%s11255_s9 + $0x154] sm:$0xf0] }
 0x80c   : > { %v9972_v37 = vpop.f32.mrf.mxu1 }
 0x814   : > { %v3716_v58 = vpop.f32.mrf.mxu1 }
 0x815   : > { %v3723_v17 = vadd.f32 %v3716_v58, %v3651_v25  ;;  %v8573_v25 = vld [vmem:[%s11255_s9 + $0x514] sm:$0xf] }
 0x82a   : > { %v3783_v44 = vpop.f32.mrf.mxu2 }
 0x82b   : > { %v3793_v14 = vadd.f32 %v3783_v44, %v3721_v13  ;;  %v7241_v13 = vor.u32 %v8438_v39, %v7240_v23  ;;  %v7232_v44 = vld [vmem:[%s11255_s9 + $0xc0] sm:$0xf]  ;;  %v7326_v23 = vld [vmem:[%s11255_s9 + $0x158] sm:$0xf0] }
 0x82c   : > { %v7233_v8 = vor.u32 %v8436_v34, %v7232_v44  ;;  %v7956_v39 = vld [vmem:[%s11255_s9 + $0x518] sm:$0xf0]  ;;  %v7318_v44 = vld [vmem:[%s11255_s9 + $0x148] sm:$0xf0] }
 0x82d   : > { %v3801_v46 = vadd.f32 %v9961_v6, %v3793_v14  ;;  %v8435_v14 = vld [vmem:[%s11255_s9 + $0xc4] sm:$0xf]  ;;  %v7948_v34 = vld [vmem:[%s11255_s9 + $0x508] sm:$0xf0] }
 0x82e   : > { %v7237_v26 = vor.u32 %v8435_v14, %v7234_v54  ;;  %v7325_v54 = vor.u32 %v8454_v32, %v7324_v21  ;;  %v8040_v21 = vld [vmem:[%s11255_s9 + $0x598] sm:$0xf0] }
 0x82f   : > { %v3805_v27 = vmax.f32 %v3801_v46, 0.0 }
 0x831   : > { %v10000_v48 = vpack.c.bf16 %v3805_v27, %v3805_v27  ;;  %v7300_v27 = vld [vmem:[%s11255_s9 + $0x138] sm:$0xf0] }
 0x832   : > { %v10008_v0 = vpop.f32.mrf.mxu2  ;;  %v7303_v35 = vor.u32 %v8449_v10, %v7300_v27  ;;  %v8593_v10 = vld [vmem:[%s11255_s9 + $0x5b4] sm:$0xf]  ;;  %v8056_v27 = vld [vmem:[%s11255_s9 + $0x5b8] sm:$0xf0] }
 0x833   : > { %7178 = vmatmul.msk.bf16.vlgmr.msrb.gmra.mxu2 %vm3208_vm1, %v10000_v48  ;;  %v10020_v38 = vshrl.u32 %v10000_v48, 16  ;;  %v3977_v63 = vrot.slane %v10000_v48, 1 }
 0x834   : > { %4187 = vmatpush.bf16.msrb.mxu2 %v7299_v62  ;;  %v8458_v62 = vld [vmem:[%s11255_s9 + $0x174] sm:$0xf0] }
 0x835   : > { %7144 = vmatmul.msk.bf16.vlgmr.msra.gmra.mxu0 %vm3208_vm1, %v10020_v38  ;;  %7145 = vmatmul.msk.bf16.vlgmr.msra.gmra.mxu1 %vm3208_vm1, %v10020_v38  ;;  %v7341_v28 = vor.u32 %v8458_v62, %v7340_v61  ;;  %v7382_v62 = vld [vmem:[%s11255_s9 + $0x1b0] sm:$0xf]  ;;  %v4058_v50 = vrot.slane %v10020_v38, 1 }
 0x836   : > { %4106 = vmatpush.bf16.msra.mxu0 %v7257_v15  ;;  %4119 = vmatpush.bf16.msra.mxu1 %v7261_v18  ;;  %v7975_v15 = vor.u32 %v8577_v11, %v7972_v40  ;;  %v8455_v18 = vld [vmem:[%s11255_s9 + $0x164] sm:$0xf] }
 0x837   : > { %v7337_v58 = vor.u32 %v8455_v18, %v7334_v4  ;;  %v4139_v18 = vrot.slane %v10000_v48, 2 }
 0x838   : > { %4188 = vmatpush.bf16.msrb.mxu2 %v7291_v51  ;;  %v8447_v51 = vld [vmem:[%s11255_s9 + $0x124] sm:$0xf] }
 0x839   : > { %v7295_v42 = vor.u32 %v8447_v51, %v7292_v2  ;;  %v8591_v51 = vld [vmem:[%s11255_s9 + $0x5a4] sm:$0xf]  ;;  %v8048_v2 = vld [vmem:[%s11255_s9 + $0x5a8] sm:$0xf0] }
 0x83a   : > { %v3788_v1 = vpop.f32.mrf.mxu2  ;;  %4107 = vmatpush.bf16.msra.mxu0 %v7249_v49  ;;  %4120 = vmatpush.bf16.msra.mxu1 %v7253_v20  ;;  %v7967_v49 = vor.u32 %v8575_v60, %v7964_v16  ;;  %v8453_v20 = vld [vmem:[%s11255_s9 + $0x154] sm:$0xf]  ;;  %v8059_v16 = vor.u32 %v8593_v10, %v8056_v27  ;;  %v7360_v10 = vld [vmem:[%s11255_s9 + $0x188] sm:$0xf0] }
 0x83b   : > { %v3795_v12 = vadd.f32 %v3788_v1, %v3723_v17  ;;  %v7284_v17 = vld [vmem:[%s11255_s9 + $0x118] sm:$0xf0]  ;;  %v7329_v1 = vor.u32 %v8453_v20, %v7326_v23  ;;  %v8464_v20 = vld [vmem:[%s11255_s9 + $0x1a4] sm:$0xf0]  ;;  %v8463_v23 = vld [vmem:[%s11255_s9 + $0x1a4] sm:$0xf] }
 0x83c   : > { %4189 = vmatpush.bf16.msrb.mxu2 %v7283_v41  ;;  %v8445_v41 = vld [vmem:[%s11255_s9 + $0x114] sm:$0xf] }
 0x83d   : > { %v3803_v46 = vadd.f32 %v9961_v6, %v3795_v12  ;;  %v8571_v12 = vld [vmem:[%s11255_s9 + $0x504] sm:$0xf]  ;;  %v7287_v14 = vor.u32 %v8445_v41, %v7284_v17  ;;  %v8470_v41 = vld [vmem:[%s11255_s9 + $0x1d4] sm:$0xf0]  ;;  %v8589_v17 = vld [vmem:[%s11255_s9 + $0x594] sm:$0xf] }
 0x83e   : > { %4108 = vmatpush.bf16.msra.mxu0 %v7241_v13  ;;  %4121 = vmatpush.bf16.msra.mxu1 %v7245_v5  ;;  %v7959_v13 = vor.u32 %v8573_v25, %v7956_v39  ;;  %v8451_v5 = vld [vmem:[%s11255_s9 + $0x144] sm:$0xf]  ;;  %v7951_v40 = vor.u32 %v8571_v12, %v7948_v34  ;;  %v7376_v25 = vld [vmem:[%s11255_s9 + $0x1a8] sm:$0xf0]  ;;  %v7368_v12 = vld [vmem:[%s11255_s9 + $0x198] sm:$0xf0] }
 0x83f   : > { %v3807_v52 = vmax.f32 %v3803_v46, 0.0  ;;  %v7316_v46 = vld [vmem:[%s11255_s9 + $0x140] sm:$0xf]  ;;  %v7321_v11 = vor.u32 %v8451_v5, %v7318_v44  ;;  %v8462_v5 = vld [vmem:[%s11255_s9 + $0x194] sm:$0xf0] }
 0x840   : > { %4190 = vmatpush.bf16.msrb.mxu2 %v7275_v55  ;;  %v8443_v55 = vld [vmem:[%s11255_s9 + $0x104] sm:$0xf]  ;;  %v7317_v61 = vor.u32 %v8452_v59, %v7316_v46  ;;  %v8461_v44 = vld [vmem:[%s11255_s9 + $0x194] sm:$0xf]  ;;  %v8032_v46 = vld [vmem:[%s11255_s9 + $0x588] sm:$0xf0] }
 0x841   : > { %v10098_v24 = vpack.c.bf16 %v3807_v52, %v3807_v52  ;;  %v7279_v52 = vor.u32 %v8443_v55, %v7276_v29  ;;  %v8468_v55 = vld [vmem:[%s11255_s9 + $0x1c4] sm:$0xf0]  ;;  %v8587_v29 = vld [vmem:[%s11255_s9 + $0x584] sm:$0xf] }
 0x842   : > { %4109 = vmatpush.bf16.msra.mxu0 %v7233_v8  ;;  %4122 = vmatpush.bf16.msra.mxu1 %v7237_v26  ;;  %v7424_v8 = vld [vmem:[%s11255_s9 + $0x1f0] sm:$0xf]  ;;  %v8474_v26 = vld [vmem:[%s11255_s9 + $0x1f4] sm:$0xf0] }
 0x843   : > { %7221 = vmatmul.msk.bf16.vlgmr.msra.gmra.mxu2 %vm3208_vm1, %v3977_v63  ;;  %7809 = vmatmul.msk.bf16.vlgmr.msra.gmra.mxu3 %vm3208_vm1, %v10098_v24  ;;  %v5277_v4 = vrot.slane %v10098_v24, 1  ;;  %v7425_v60 = vor.u32 %v8474_v26, %v7424_v8  ;;  %v8460_v8 = vld [vmem:[%s11255_s9 + $0x184] sm:$0xf0]  ;;  %v8459_v26 = vld [vmem:[%s11255_s9 + $0x184] sm:$0xf] }
 0x844   : > { %4281 = vmatpush.bf16.msra.mxu2 %v7345_v31  ;;  %5500 = vmatpush.bf16.msra.mxu3 %v7975_v15  ;;  %v8465_v31 = vld [vmem:[%s11255_s9 + $0x1b4] sm:$0xf]  ;;  %v7384_v15 = vld [vmem:[%s11255_s9 + $0x1b8] sm:$0xf0] }
 0x845   : > { %7179 = vmatmul.msk.bf16.vlgmr.msrb.gmra.mxu0 %vm3208_vm1, %v10000_v48  ;;  %7220 = vmatmul.msk.bf16.vlgmr.msrb.gmra.mxu1 %vm3208_vm1, %v3977_v63  ;;  %v8466_v63 = vld [vmem:[%s11255_s9 + $0x1b4] sm:$0xf0] }
 0x846   : > { %4200 = vmatpush.bf16.msrb.mxu0 %v7303_v35  ;;  %4268 = vmatpush.bf16.msrb.mxu1 %v7341_v28  ;;  %v7416_v35 = vld [vmem:[%s11255_s9 + $0x1e0] sm:$0xf]  ;;  %v8472_v28 = vld [vmem:[%s11255_s9 + $0x1e4] sm:$0xf0]  ;;  %v7383_v57 = vor.u32 %v8466_v63, %v7382_v62  ;;  %v7468_v62 = vld [vmem:[%s11255_s9 + $0x238] sm:$0xf0] }
 0x847   : > { %v7417_v39 = vor.u32 %v8472_v28, %v7416_v35  ;;  %v8609_v63 = vld [vmem:[%s11255_s9 + $0x634] sm:$0xf]  ;;  %v7426_v28 = vld [vmem:[%s11255_s9 + $0x1f8] sm:$0xf0] }
 0x848   : > { %4282 = vmatpush.bf16.msra.mxu2 %v7337_v58  ;;  %5501 = vmatpush.bf16.msra.mxu3 %v7967_v49  ;;  %v7387_v58 = vor.u32 %v8465_v31, %v7384_v15  ;;  %v7374_v49 = vld [vmem:[%s11255_s9 + $0x1a0] sm:$0xf]  ;;  %v8140_v31 = vld [vmem:[%s11255_s9 + $0x638] sm:$0xf0]  ;;  %v3290_v15 = vpop.f32.mrf.mxu3  ;;  %v8473_v35 = vld [vmem:[%s11255_s9 + $0x1f4] sm:$0xf] }
 0x849   : > { %v7375_v32 = vor.u32 %v8464_v20, %v7374_v49  ;;  %v8143_v49 = vor.u32 %v8609_v63, %v8140_v31  ;;  %v8479_v20 = vld [vmem:[%s11255_s9 + $0x224] sm:$0xf]  ;;  %v7442_v63 = vld [vmem:[%s11255_s9 + $0x200] sm:$0xf]  ;;  %v8476_v31 = vld [vmem:[%s11255_s9 + $0x204] sm:$0xf0] }
 0x84a   : > { %4201 = vmatpush.bf16.msrb.mxu0 %v7295_v42  ;;  %4269 = vmatpush.bf16.msrb.mxu1 %v7333_v33  ;;  %v8051_v42 = vor.u32 %v8591_v51, %v8048_v2  ;;  %v7408_v33 = vld [vmem:[%s11255_s9 + $0x1d0] sm:$0xf]  ;;  %v8482_v2 = vld [vmem:[%s11255_s9 + $0x234] sm:$0xf0] }
 0x84b   : > { %v7409_v34 = vor.u32 %v8470_v41, %v7408_v33  ;;  %v7466_v51 = vld [vmem:[%s11255_s9 + $0x230] sm:$0xf]  ;;  %v7429_v33 = vor.u32 %v8473_v35, %v7426_v28  ;;  %v8498_v28 = vld [vmem:[%s11255_s9 + $0x2b4] sm:$0xf0] }
 0x84c   : > { %4283 = vmatpush.bf16.msra.mxu2 %v7329_v1  ;;  %5502 = vmatpush.bf16.msra.mxu3 %v7959_v13  ;;  %v7379_v1 = vor.u32 %v8463_v23, %v7376_v25  ;;  %v7366_v13 = vld [vmem:[%s11255_s9 + $0x190] sm:$0xf]  ;;  %v3291_v23 = vadd.f32 %v3290_v15, %v9729_v43  ;;  %v7460_v25 = vld [vmem:[%s11255_s9 + $0x228] sm:$0xf0]  ;;  %v7467_v41 = vor.u32 %v8482_v2, %v7466_v51  ;;  %v8471_v43 = vld [vmem:[%s11255_s9 + $0x1e4] sm:$0xf]  ;;  %v3646_v51 = vpop.f32.mrf.mxu0 }
 0x84d   : > { %v7367_v59 = vor.u32 %v8462_v5, %v7366_v13  ;;  %v8477_v5 = vld [vmem:[%s11255_s9 + $0x214] sm:$0xf]  ;;  %v7550_v35 = vld [vmem:[%s11255_s9 + $0x2b0] sm:$0xf] }
 0x84e   : > { %4202 = vmatpush.bf16.msrb.mxu0 %v7287_v14  ;;  %4270 = vmatpush.bf16.msrb.mxu1 %v7325_v54  ;;  %v8043_v14 = vor.u32 %v8589_v17, %v8040_v21  ;;  %v7400_v54 = vld [vmem:[%s11255_s9 + $0x1c0] sm:$0xf]  ;;  %v7418_v17 = vld [vmem:[%s11255_s9 + $0x1e8] sm:$0xf0] }
 0x84f   : > { %v7401_v27 = vor.u32 %v8468_v55, %v7400_v54  ;;  %v7458_v21 = vld [vmem:[%s11255_s9 + $0x220] sm:$0xf]  ;;  %v3286_v55 = vadd.f32 %v9743_v7, %v9739_v19  ;;  %v8475_v19 = vld [vmem:[%s11255_s9 + $0x204] sm:$0xf] }
 0x850   : > { %4284 = vmatpush.bf16.msra.mxu2 %v7321_v11  ;;  %5503 = vmatpush.bf16.msra.mxu3 %v7951_v40  ;;  %v7371_v11 = vor.u32 %v8461_v44, %v7368_v12  ;;  %v7358_v40 = vld [vmem:[%s11255_s9 + $0x180] sm:$0xf]  ;;  %v3364_v44 = vadd.f32 %v9747_v36, %v3291_v23  ;;  %v7452_v12 = vld [vmem:[%s11255_s9 + $0x218] sm:$0xf0]  ;;  %v7421_v36 = vor.u32 %v8471_v43, %v7418_v17  ;;  %v8496_v43 = vld [vmem:[%s11255_s9 + $0x2a4] sm:$0xf0]  ;;  %v3790_v17 = vpop.f32.mrf.mxu2 }
 0x851   : > { %v3362_v7 = vadd.f32 %v9735_v22, %v3286_v55  ;;  %v8467_v22 = vld [vmem:[%s11255_s9 + $0x1c4] sm:$0xf]  ;;  %v7510_v23 = vld [vmem:[%s11255_s9 + $0x278] sm:$0xf0] }
 0x852   : > { %4203 = vmatpush.bf16.msrb.mxu0 %v7279_v52  ;;  %4271 = vmatpush.bf16.msrb.mxu1 %v7317_v61  ;;  %v8035_v52 = vor.u32 %v8587_v29, %v8032_v46  ;;  %v8481_v61 = vld [vmem:[%s11255_s9 + $0x234] sm:$0xf]  ;;  %v7410_v29 = vld [vmem:[%s11255_s9 + $0x1d8] sm:$0xf0]  ;;  %v7450_v46 = vld [vmem:[%s11255_s9 + $0x210] sm:$0xf] }
 0x853   : > { %7304 = vmatmul.msk.bf16.vlgmr.msrb.gmra.mxu2 %vm3208_vm1, %v4139_v18  ;;  %7893 = vmatmul.msk.bf16.vlgmr.msrb.gmra.mxu3 %vm3208_vm1, %v5277_v4 }
 0x854   : > { %4430 = vmatpush.bf16.msrb.mxu2 %v7425_v60  ;;  %5662 = vmatpush.bf16.msrb.mxu3 %v8059_v16  ;;  %v7359_v60 = vor.u32 %v8460_v8, %v7358_v40  ;;  %v7363_v16 = vor.u32 %v8459_v26, %v7360_v10  ;;  %v3436_v8 = vadd.f32 %v9880_v45, %v3364_v44  ;;  %v7444_v26 = vld [vmem:[%s11255_s9 + $0x208] sm:$0xf0]  ;;  %v8603_v10 = vld [vmem:[%s11255_s9 + $0x604] sm:$0xf] }
 0x855   : > { %7262 = vmatmul.msk.bf16.vlgmr.msra.gmra.mxu0 %vm3208_vm1, %v4058_v50  ;;  %7263 = vmatmul.msk.bf16.vlgmr.msra.gmra.mxu1 %vm3208_vm1, %v4058_v50  ;;  %v4220_v50 = vrot.slane %v10020_v38, 2  ;;  %v3434_v45 = vadd.f32 %v9775_v47, %v3362_v7  ;;  %v7447_v15 = vor.u32 %v8475_v19, %v7444_v26  ;;  %v8487_v44 = vld [vmem:[%s11255_s9 + $0x264] sm:$0xf]  ;;  %v7526_v7 = vld [vmem:[%s11255_s9 + $0x280] sm:$0xf] }
 0x856   : > { %4349 = vmatpush.bf16.msra.mxu0 %v7383_v57  ;;  %4362 = vmatpush.bf16.msra.mxu1 %v7387_v58  ;;  %v5439_v57 = vrot.slane %v10098_v24, 2  ;;  %v7471_v58 = vor.u32 %v8481_v61, %v7468_v62  ;;  %v7402_v62 = vld [vmem:[%s11255_s9 + $0x1c8] sm:$0xf0]  ;;  %v3508_v47 = vadd.f32 %v9896_v30, %v3436_v8  ;;  %v8492_v8 = vld [vmem:[%s11255_s9 + $0x284] sm:$0xf0] }
 0x857   : > { %v7405_v2 = vor.u32 %v8467_v22, %v7402_v62  ;;  %v7527_v22 = vor.u32 %v8492_v8, %v7526_v7  ;;  %v8520_v7 = vld [vmem:[%s11255_s9 + $0x364] sm:$0xf0] }
 0x858   : > { %4431 = vmatpush.bf16.msrb.mxu2 %v7417_v39  ;;  %5663 = vmatpush.bf16.msrb.mxu3 %v8051_v42  ;;  %v8607_v39 = vld [vmem:[%s11255_s9 + $0x624] sm:$0xf]  ;;  %v8132_v42 = vld [vmem:[%s11255_s9 + $0x628] sm:$0xf0]  ;;  %v3580_v30 = vadd.f32 %v9944_v9, %v3508_v47  ;;  %v4382_v9 = vrot.slane %v10020_v38, 3 }
 0x859   : > { %v8135_v13 = vor.u32 %v8607_v39, %v8132_v42  ;;  %v7551_v39 = vor.u32 %v8498_v28, %v7550_v35  ;;  %v7552_v47 = vld [vmem:[%s11255_s9 + $0x2b8] sm:$0xf0]  ;;  %v7592_v35 = vld [vmem:[%s11255_s9 + $0x2f0] sm:$0xf]  ;;  %v8506_v28 = vld [vmem:[%s11255_s9 + $0x2f4] sm:$0xf0] }
 0x85a   : > { %4350 = vmatpush.bf16.msra.mxu0 %v7375_v32  ;;  %4363 = vmatpush.bf16.msra.mxu1 %v7379_v1  ;;  %v8480_v32 = vld [vmem:[%s11255_s9 + $0x224] sm:$0xf0]  ;;  %v7463_v1 = vor.u32 %v8479_v20, %v7460_v25  ;;  %v8489_v20 = vld [vmem:[%s11255_s9 + $0x274] sm:$0xf]  ;;  %v3718_v25 = vpop.f32.mrf.mxu1  ;;  %v3652_v42 = vadd.f32 %v3646_v51, %v3580_v30 }
 0x85b   : > { %v7459_v54 = vor.u32 %v8480_v32, %v7458_v21  ;;  %v4301_v21 = vrot.slane %v10000_v48, 3  ;;  %v8488_v48 = vld [vmem:[%s11255_s9 + $0x264] sm:$0xf0]  ;;  %v8493_v38 = vld [vmem:[%s11255_s9 + $0x294] sm:$0xf] }
 0x85c   : > { %4432 = vmatpush.bf16.msrb.mxu2 %v7409_v34  ;;  %5664 = vmatpush.bf16.msrb.mxu3 %v8043_v14  ;;  %v8605_v34 = vld [vmem:[%s11255_s9 + $0x614] sm:$0xf]  ;;  %v8124_v14 = vld [vmem:[%s11255_s9 + $0x618] sm:$0xf0] }
 0x85d   : > { %v8127_v40 = vor.u32 %v8605_v34, %v8124_v14 }
 0x85e   : > { %4351 = vmatpush.bf16.msra.mxu0 %v7367_v59  ;;  %4364 = vmatpush.bf16.msra.mxu1 %v7371_v11  ;;  %v8478_v59 = vld [vmem:[%s11255_s9 + $0x214] sm:$0xf0]  ;;  %v7455_v11 = vor.u32 %v8477_v5, %v7452_v12  ;;  %v3724_v5 = vadd.f32 %v3718_v25, %v3652_v42  ;;  %v7584_v25 = vld [vmem:[%s11255_s9 + $0x2e0] sm:$0xf]  ;;  %v8501_v42 = vld [vmem:[%s11255_s9 + $0x2d4] sm:$0xf] }
 0x85f   : > { %v7451_v61 = vor.u32 %v8478_v59, %v7450_v46  ;;  %v8485_v46 = vld [vmem:[%s11255_s9 + $0x254] sm:$0xf]  ;;  %v7494_v59 = vld [vmem:[%s11255_s9 + $0x258] sm:$0xf0] }
 0x860   : > { %4433 = vmatpush.bf16.msrb.mxu2 %v7401_v27  ;;  %5665 = vmatpush.bf16.msrb.mxu3 %v8035_v52  ;;  %v8116_v27 = vld [vmem:[%s11255_s9 + $0x608] sm:$0xf0]  ;;  %v3796_v14 = vadd.f32 %v3790_v17, %v3724_v5 }
 0x862   : > { %4352 = vmatpush.bf16.msra.mxu0 %v7359_v60  ;;  %4365 = vmatpush.bf16.msra.mxu1 %v7363_v16  ;;  %v8119_v60 = vor.u32 %v8603_v10, %v8116_v27  ;;  %v3506_v16 = vadd.f32 %v9779_v53, %v3434_v45  ;;  %v3804_v19 = vadd.f32 %v9961_v6, %v3796_v14  ;;  %v7484_v27 = vld [vmem:[%s11255_s9 + $0x240] sm:$0xf] }
 0x863   : > { %7347 = vmatmul.msk.bf16.vlgmr.msra.gmra.mxu2 %vm3208_vm1, %v4220_v50  ;;  %7977 = vmatmul.msk.bf16.vlgmr.msra.gmra.mxu3 %vm3208_vm1, %v5439_v57  ;;  %v7497_v10 = vor.u32 %v8485_v46, %v7494_v59  ;;  %v8513_v46 = vld [vmem:[%s11255_s9 + $0x334] sm:$0xf]  ;;  %v7636_v59 = vld [vmem:[%s11255_s9 + $0x338] sm:$0xf0] }
 0x864   : > { %4524 = vmatpush.bf16.msra.mxu2 %v7471_v58  ;;  %5824 = vmatpush.bf16.msra.mxu3 %v8143_v49  ;;  %v7508_v58 = vld [vmem:[%s11255_s9 + $0x270] sm:$0xf]  ;;  %v3578_v53 = vadd.f32 %v9819_v56, %v3506_v16  ;;  %v8490_v49 = vld [vmem:[%s11255_s9 + $0x274] sm:$0xf0]  ;;  %v3808_v62 = vmax.f32 %v3804_v19, 0.0 }
 0x865   : > { %7305 = vmatmul.msk.bf16.vlgmr.msrb.gmra.mxu0 %vm3208_vm1, %v4139_v18  ;;  %7346 = vmatmul.msk.bf16.vlgmr.msrb.gmra.mxu1 %vm3208_vm1, %v4220_v50  ;;  %v8469_v18 = vld [vmem:[%s11255_s9 + $0x1d4] sm:$0xf]  ;;  %v7443_v50 = vor.u32 %v8476_v31, %v7442_v63  ;;  %v7509_v32 = vor.u32 %v8490_v49, %v7508_v58  ;;  %v7594_v31 = vld [vmem:[%s11255_s9 + $0x2f8] sm:$0xf0]  ;;  %v8503_v58 = vld [vmem:[%s11255_s9 + $0x2e4] sm:$0xf]  ;;  %v7593_v49 = vor.u32 %v8506_v28, %v7592_v35 }
 0x866   : > { %4443 = vmatpush.bf16.msrb.mxu0 %v7429_v33  ;;  %4511 = vmatpush.bf16.msrb.mxu1 %v7467_v41  ;;  %v7413_v52 = vor.u32 %v8469_v18, %v7410_v29  ;;  %v3650_v56 = vadd.f32 %v9966_v3, %v3578_v53  ;;  %v5601_v33 = vrot.slane %v10098_v24, 3  ;;  %v7542_v41 = vld [vmem:[%s11255_s9 + $0x2a0] sm:$0xf]  ;;  %v7513_v3 = vor.u32 %v8489_v20, %v7510_v23  ;;  %v8486_v29 = vld [vmem:[%s11255_s9 + $0x254] sm:$0xf0] }
 0x867   : > { %v7543_v12 = vor.u32 %v8496_v43, %v7542_v41  ;;  %v8505_v63 = vld [vmem:[%s11255_s9 + $0x2f4] sm:$0xf]  ;;  %v7586_v53 = vld [vmem:[%s11255_s9 + $0x2e8] sm:$0xf0]  ;;  %v8495_v20 = vld [vmem:[%s11255_s9 + $0x2a4] sm:$0xf] }
 0x868   : > { %4525 = vmatpush.bf16.msra.mxu2 %v7463_v1  ;;  %5825 = vmatpush.bf16.msra.mxu3 %v8135_v13  ;;  %v7500_v1 = vld [vmem:[%s11255_s9 + $0x260] sm:$0xf]  ;;  %v3722_v13 = vadd.f32 %v9972_v37, %v3650_v56  ;;  %v7502_v37 = vld [vmem:[%s11255_s9 + $0x268] sm:$0xf0]  ;;  %v8497_v16 = vld [vmem:[%s11255_s9 + $0x2b4] sm:$0xf]  ;;  %v7597_v51 = vor.u32 %v8505_v63, %v7594_v31  ;;  %v7589_v56 = vor.u32 %v8503_v58, %v7586_v53 }
 0x869   : > { %v7501_v18 = vor.u32 %v8488_v48, %v7500_v1  ;;  %v7505_v55 = vor.u32 %v8487_v44, %v7502_v37  ;;  %v7555_v30 = vor.u32 %v8497_v16, %v7552_v47  ;;  %v7544_v23 = vld [vmem:[%s11255_s9 + $0x2a8] sm:$0xf0]  ;;  %v7578_v41 = vld [vmem:[%s11255_s9 + $0x2d8] sm:$0xf0]  ;;  %v8499_v1 = vld [vmem:[%s11255_s9 + $0x2c4] sm:$0xf] }
 0x86a   : > { %4444 = vmatpush.bf16.msrb.mxu0 %v7421_v36  ;;  %4512 = vmatpush.bf16.msrb.mxu1 %v7459_v54  ;;  %v3794_v34 = vadd.f32 %v10008_v0, %v3722_v13  ;;  %v7534_v36 = vld [vmem:[%s11255_s9 + $0x290] sm:$0xf]  ;;  %v8494_v54 = vld [vmem:[%s11255_s9 + $0x294] sm:$0xf0]  ;;  %v7547_v43 = vor.u32 %v8495_v20, %v7544_v23  ;;  %v7570_v13 = vld [vmem:[%s11255_s9 + $0x2c8] sm:$0xf0] }
 0x86b   : > { %v7492_v0 = vld [vmem:[%s11255_s9 + $0x250] sm:$0xf]  ;;  %v8491_v44 = vld [vmem:[%s11255_s9 + $0x284] sm:$0xf]  ;;  %v7528_v37 = vld [vmem:[%s11255_s9 + $0x288] sm:$0xf0]  ;;  %v7573_v14 = vor.u32 %v8499_v1, %v7570_v13 }
 0x86c   : > { %4526 = vmatpush.bf16.msra.mxu2 %v7455_v11  ;;  %5826 = vmatpush.bf16.msra.mxu3 %v8127_v40  ;;  %v7535_v11 = vor.u32 %v8494_v54, %v7534_v36  ;;  %v3802_v40 = vadd.f32 %v9961_v6, %v3794_v34  ;;  %v7493_v26 = vor.u32 %v8486_v29, %v7492_v0  ;;  %v8484_v6 = vld [vmem:[%s11255_s9 + $0x244] sm:$0xf0]  ;;  %v7676_v36 = vld [vmem:[%s11255_s9 + $0x370] sm:$0xf]  ;;  %v8522_v54 = vld [vmem:[%s11255_s9 + $0x374] sm:$0xf0] }
 0x86d   : > { %v8500_v34 = vld [vmem:[%s11255_s9 + $0x2c4] sm:$0xf0]  ;;  %v7634_v0 = vld [vmem:[%s11255_s9 + $0x330] sm:$0xf]  ;;  %v8514_v29 = vld [vmem:[%s11255_s9 + $0x334] sm:$0xf0] }
 0x86e   : > { %4445 = vmatpush.bf16.msrb.mxu0 %v7413_v52  ;;  %4513 = vmatpush.bf16.msrb.mxu1 %v7451_v61  ;;  %v8483_v52 = vld [vmem:[%s11255_s9 + $0x244] sm:$0xf]  ;;  %v7486_v61 = vld [vmem:[%s11255_s9 + $0x248] sm:$0xf0]  ;;  %v3806_v45 = vmax.f32 %v3802_v40, 0.0 }
 0x86f   : > { %v7668_v19 = vld [vmem:[%s11255_s9 + $0x360] sm:$0xf]  ;;  %v8509_v16 = vld [vmem:[%s11255_s9 + $0x314] sm:$0xf]  ;;  %v7620_v47 = vld [vmem:[%s11255_s9 + $0x318] sm:$0xf0] }
 0x870   : > { %4527 = vmatpush.bf16.msra.mxu2 %v7447_v15  ;;  %5827 = vmatpush.bf16.msra.mxu3 %v8119_v60  ;;  %v7485_v15 = vor.u32 %v8484_v6, %v7484_v27  ;;  %v7489_v60 = vor.u32 %v8483_v52, %v7486_v61  ;;  %v7626_v27 = vld [vmem:[%s11255_s9 + $0x320] sm:$0xf]  ;;  %v8512_v6 = vld [vmem:[%s11255_s9 + $0x324] sm:$0xf0]  ;;  %v8511_v52 = vld [vmem:[%s11255_s9 + $0x324] sm:$0xf]  ;;  %v7623_v53 = vor.u32 %v8509_v16, %v7620_v47 }
 0x871   : > { %v7628_v61 = vld [vmem:[%s11255_s9 + $0x328] sm:$0xf0]  ;;  %v7627_v63 = vor.u32 %v8512_v6, %v7626_v27  ;;  %v7652_v28 = vld [vmem:[%s11255_s9 + $0x340] sm:$0xf]  ;;  %v8507_v20 = vld [vmem:[%s11255_s9 + $0x304] sm:$0xf] }
 0x872   : > { %4446 = vmatpush.bf16.msrb.mxu0 %v7405_v2  ;;  %4514 = vmatpush.bf16.msrb.mxu1 %v7443_v50  ;;  %v10505_v2 = vpack.c.bf16 %v3806_v45, %v3806_v45  ;;  %v10507_v50 = vpack.c.bf16 %v3808_v62, %v3808_v62  ;;  %v7660_v45 = vld [vmem:[%s11255_s9 + $0x350] sm:$0xf]  ;;  %v8518_v62 = vld [vmem:[%s11255_s9 + $0x354] sm:$0xf0]  ;;  %v7631_v31 = vor.u32 %v8511_v52, %v7628_v61  ;;  %v7612_v23 = vld [vmem:[%s11255_s9 + $0x308] sm:$0xf0] }
 0x873   : > { %7430 = vmatmul.msk.bf16.vlgmr.msrb.gmra.mxu2 %vm3208_vm1, %v4382_v9  ;;  %8061 = vmatmul.msk.bf16.vlgmr.msrb.gmra.mxu3 %vm3208_vm1, %v5601_v33  ;;  %v7661_v35 = vor.u32 %v8518_v62, %v7660_v45  ;;  %v7712_v1 = vld [vmem:[%s11255_s9 + $0x3a8] sm:$0xf0]  ;;  %v7694_v27 = vld [vmem:[%s11255_s9 + $0x380] sm:$0xf]  ;;  %v8524_v6 = vld [vmem:[%s11255_s9 + $0x384] sm:$0xf0] }
 0x874   : > { %4675 = vmatpush.bf16.msrb.mxu2 %v7551_v39  ;;  %v8504_v39 = vld [vmem:[%s11255_s9 + $0x2e4] sm:$0xf0]  ;;  %v4627_v40 = vrot.slane %v10505_v2, 1  ;;  %v10598_v8 = vshrl.u32 %v10505_v2, 16  ;;  %v7802_v61 = vld [vmem:[%s11255_s9 + $0x430] sm:$0xf]  ;;  %v7695_v62 = vor.u32 %v8524_v6, %v7694_v27 }
 0x875   : > { %7388 = vmatmul.msk.bf16.vlgmr.msra.gmra.mxu0 %vm3208_vm1, %v4301_v21  ;;  %7389 = vmatmul.msk.bf16.vlgmr.msra.gmra.mxu1 %vm3208_vm1, %v4301_v21  ;;  %v7585_v17 = vor.u32 %v8504_v39, %v7584_v25  ;;  %v7576_v21 = vld [vmem:[%s11255_s9 + $0x2d0] sm:$0xf]  ;;  %v8529_v39 = vld [vmem:[%s11255_s9 + $0x3b4] sm:$0xf]  ;;  %v4951_v27 = vrot.slane %v10505_v2, 3 }
 0x876   : > { %4593 = vmatpush.bf16.msra.mxu0 %v7509_v32  ;;  %4606 = vmatpush.bf16.msra.mxu1 %v7513_v3  ;;  %v8502_v32 = vld [vmem:[%s11255_s9 + $0x2d4] sm:$0xf0]  ;;  %v7581_v3 = vor.u32 %v8501_v42, %v7578_v41  ;;  %v7615_v41 = vor.u32 %v8507_v20, %v7612_v23  ;;  %v4870_v47 = vrot.slane %v10598_v8, 2  ;;  %v7752_v20 = vld [vmem:[%s11255_s9 + $0x3e0] sm:$0xf] }
 0x877   : > { %v7577_v48 = vor.u32 %v8502_v32, %v7576_v21  ;;  %v4708_v32 = vrot.slane %v10598_v8, 1  ;;  %v8536_v23 = vld [vmem:[%s11255_s9 + $0x3e4] sm:$0xf0]  ;;  %v7878_v6 = vld [vmem:[%s11255_s9 + $0x4a0] sm:$0xf] }
 0x878   : > { %4676 = vmatpush.bf16.msrb.mxu2 %v7543_v12  ;;  %v7568_v12 = vld [vmem:[%s11255_s9 + $0x2c0] sm:$0xf] }
 0x87a   : > { %4594 = vmatpush.bf16.msra.mxu0 %v7501_v18  ;;  %4607 = vmatpush.bf16.msra.mxu1 %v7505_v55  ;;  %v7531_v18 = vor.u32 %v8491_v44, %v7528_v37  ;;  %v7569_v55 = vor.u32 %v8500_v34, %v7568_v12  ;;  %v7670_v44 = vld [vmem:[%s11255_s9 + $0x368] sm:$0xf0]  ;;  %v7710_v37 = vld [vmem:[%s11255_s9 + $0x3a0] sm:$0xf]  ;;  %v8528_v12 = vld [vmem:[%s11255_s9 + $0x3a4] sm:$0xf0] }
 0x87c   : > { %4677 = vmatpush.bf16.msrb.mxu2 %v7535_v11  ;;  %v7677_v11 = vor.u32 %v8522_v54, %v7676_v36  ;;  %v7704_v36 = vld [vmem:[%s11255_s9 + $0x398] sm:$0xf0] }
 0x87e   : > { %4595 = vmatpush.bf16.msra.mxu0 %v7493_v26  ;;  %4608 = vmatpush.bf16.msra.mxu1 %v7497_v10  ;;  %v7635_v26 = vor.u32 %v8514_v29, %v7634_v0  ;;  %v7639_v10 = vor.u32 %v8513_v46, %v7636_v59  ;;  %v7662_v0 = vld [vmem:[%s11255_s9 + $0x358] sm:$0xf0]  ;;  %v7702_v29 = vld [vmem:[%s11255_s9 + $0x390] sm:$0xf]  ;;  %v8526_v46 = vld [vmem:[%s11255_s9 + $0x394] sm:$0xf0] }
 0x880   : > { %4678 = vmatpush.bf16.msrb.mxu2 %v7527_v22  ;;  %v7669_v22 = vor.u32 %v8520_v7, %v7668_v19  ;;  %v7703_v7 = vor.u32 %v8526_v46, %v7702_v29  ;;  %v8562_v29 = vld [vmem:[%s11255_s9 + $0x4b4] sm:$0xf0] }
 0x882   : > { %4596 = vmatpush.bf16.msra.mxu0 %v7485_v15  ;;  %4609 = vmatpush.bf16.msra.mxu1 %v7489_v60  ;;  %v7618_v15 = vld [vmem:[%s11255_s9 + $0x310] sm:$0xf]  ;;  %v8510_v60 = vld [vmem:[%s11255_s9 + $0x314] sm:$0xf0] }
 0x883   : > { %7473 = vmatmul.msk.bf16.vlgmr.msra.gmra.mxu2 %vm3208_vm1, %v10505_v2  ;;  %8145 = vmatmul.msk.bf16.vlgmr.msra.gmra.mxu3 %vm3208_vm1, %v10507_v50  ;;  %v7619_v58 = vor.u32 %v8510_v60, %v7618_v15  ;;  %v8537_v15 = vld [vmem:[%s11255_s9 + $0x3f4] sm:$0xf]  ;;  %v7762_v60 = vld [vmem:[%s11255_s9 + $0x3f8] sm:$0xf0] }
 0x884   : > { %4769 = vmatpush.bf16.msra.mxu2 %v7597_v51  ;;  %v8516_v51 = vld [vmem:[%s11255_s9 + $0x344] sm:$0xf0] }
 0x885   : > { %7431 = vmatmul.msk.bf16.vlgmr.msrb.gmra.mxu0 %vm3208_vm1, %v4382_v9  ;;  %7472 = vmatmul.msk.bf16.vlgmr.msrb.gmra.mxu1 %vm3208_vm1, %v10505_v2  ;;  %v7536_v9 = vld [vmem:[%s11255_s9 + $0x298] sm:$0xf0]  ;;  %v7653_v25 = vor.u32 %v8516_v51, %v7652_v28  ;;  %v8544_v28 = vld [vmem:[%s11255_s9 + $0x424] sm:$0xf0] }
 0x886   : > { %4688 = vmatpush.bf16.msrb.mxu0 %v7555_v30  ;;  %4756 = vmatpush.bf16.msrb.mxu1 %v7593_v49  ;;  %v7539_v5 = vor.u32 %v8493_v38, %v7536_v9  ;;  %v7610_v30 = vld [vmem:[%s11255_s9 + $0x300] sm:$0xf]  ;;  %v8508_v49 = vld [vmem:[%s11255_s9 + $0x304] sm:$0xf0]  ;;  %v7718_v38 = vld [vmem:[%s11255_s9 + $0x3b0] sm:$0xf] }
 0x887   : > { %v7611_v42 = vor.u32 %v8508_v49, %v7610_v30  ;;  %v8530_v9 = vld [vmem:[%s11255_s9 + $0x3b4] sm:$0xf0]  ;;  %v7765_v49 = vor.u32 %v8537_v15, %v7762_v60  ;;  %v8552_v15 = vld [vmem:[%s11255_s9 + $0x464] sm:$0xf0]  ;;  %v8551_v60 = vld [vmem:[%s11255_s9 + $0x464] sm:$0xf] }
 0x888   : > { %4770 = vmatpush.bf16.msra.mxu2 %v7589_v56  ;;  %v7720_v56 = vld [vmem:[%s11255_s9 + $0x3b8] sm:$0xf0] }
 0x889   : > { %v7723_v21 = vor.u32 %v8529_v39, %v7720_v56  ;;  %v7754_v39 = vld [vmem:[%s11255_s9 + $0x3e8] sm:$0xf0] }
 0x88a   : > { %4689 = vmatpush.bf16.msrb.mxu0 %v7547_v43  ;;  %4757 = vmatpush.bf16.msrb.mxu1 %v7585_v17  ;;  %v8521_v43 = vld [vmem:[%s11255_s9 + $0x374] sm:$0xf]  ;;  %v7678_v17 = vld [vmem:[%s11255_s9 + $0x378] sm:$0xf0] }
 0x88b   : > { %v7681_v13 = vor.u32 %v8521_v43, %v7678_v17  ;;  %v7753_v17 = vor.u32 %v8536_v23, %v7752_v20  ;;  %v8550_v23 = vld [vmem:[%s11255_s9 + $0x454] sm:$0xf0] }
 0x88c   : > { %4771 = vmatpush.bf16.msra.mxu2 %v7581_v3  ;;  %v8527_v3 = vld [vmem:[%s11255_s9 + $0x3a4] sm:$0xf] }
 0x88d   : > { %v7715_v34 = vor.u32 %v8527_v3, %v7712_v1  ;;  %v8533_v3 = vld [vmem:[%s11255_s9 + $0x3d4] sm:$0xf]  ;;  %v7746_v1 = vld [vmem:[%s11255_s9 + $0x3d8] sm:$0xf0] }
 0x88e   : > { %4690 = vmatpush.bf16.msrb.mxu0 %v7539_v5  ;;  %4758 = vmatpush.bf16.msrb.mxu1 %v7577_v48  ;;  %v7719_v5 = vor.u32 %v8530_v9, %v7718_v38  ;;  %v8519_v48 = vld [vmem:[%s11255_s9 + $0x364] sm:$0xf]  ;;  %v7744_v9 = vld [vmem:[%s11255_s9 + $0x3d0] sm:$0xf] }
 0x88f   : > { %v7673_v54 = vor.u32 %v8519_v48, %v7670_v44  ;;  %v8540_v48 = vld [vmem:[%s11255_s9 + $0x404] sm:$0xf0] }
 0x890   : > { %4772 = vmatpush.bf16.msra.mxu2 %v7573_v14  ;;  %v8525_v14 = vld [vmem:[%s11255_s9 + $0x394] sm:$0xf] }
 0x891   : > { %v7707_v59 = vor.u32 %v8525_v14, %v7704_v36  ;;  %v7736_v14 = vld [vmem:[%s11255_s9 + $0x3c0] sm:$0xf]  ;;  %v8532_v36 = vld [vmem:[%s11255_s9 + $0x3c4] sm:$0xf0] }
 0x892   : > { %4691 = vmatpush.bf16.msrb.mxu0 %v7531_v18  ;;  %4759 = vmatpush.bf16.msrb.mxu1 %v7569_v55  ;;  %v7711_v18 = vor.u32 %v8528_v12, %v7710_v37  ;;  %v8517_v55 = vld [vmem:[%s11255_s9 + $0x354] sm:$0xf] }
 0x893   : > { %7556 = vmatmul.msk.bf16.vlgmr.msrb.gmra.mxu2 %vm3208_vm1, %v4627_v40  ;;  %v7665_v19 = vor.u32 %v8517_v55, %v7662_v0  ;;  %v7886_v0 = vld [vmem:[%s11255_s9 + $0x4b0] sm:$0xf] }
 0x894   : > { %4918 = vmatpush.bf16.msrb.mxu2 %v7677_v11  ;;  %v8523_v11 = vld [vmem:[%s11255_s9 + $0x384] sm:$0xf] }
 0x895   : > { %7514 = vmatmul.msk.bf16.vlgmr.msra.gmra.mxu0 %vm3208_vm1, %v10598_v8  ;;  %7515 = vmatmul.msk.bf16.vlgmr.msra.gmra.mxu1 %vm3208_vm1, %v10598_v8 }
 0x896   : > { %4837 = vmatpush.bf16.msra.mxu0 %v7635_v26  ;;  %4850 = vmatpush.bf16.msra.mxu1 %v7639_v10  ;;  %v8515_v26 = vld [vmem:[%s11255_s9 + $0x344] sm:$0xf]  ;;  %v7654_v10 = vld [vmem:[%s11255_s9 + $0x348] sm:$0xf0] }
 0x897   : > { %v7657_v45 = vor.u32 %v8515_v26, %v7654_v10  ;;  %v7846_v26 = vld [vmem:[%s11255_s9 + $0x478] sm:$0xf0]  ;;  %v7887_v10 = vor.u32 %v8562_v29, %v7886_v0  ;;  %v7962_v0 = vld [vmem:[%s11255_s9 + $0x520] sm:$0xf]  ;;  %v8576_v29 = vld [vmem:[%s11255_s9 + $0x524] sm:$0xf0] }
 0x898   : > { %4919 = vmatpush.bf16.msrb.mxu2 %v7669_v22  ;;  %v8546_v22 = vld [vmem:[%s11255_s9 + $0x434] sm:$0xf0] }
 0x899   : > { %v7803_v16 = vor.u32 %v8546_v22, %v7802_v61 }
 0x89a   : > { %4838 = vmatpush.bf16.msra.mxu0 %v7627_v63  ;;  %4851 = vmatpush.bf16.msra.mxu1 %v7631_v31  ;;  %v7760_v63 = vld [vmem:[%s11255_s9 + $0x3f0] sm:$0xf]  ;;  %v8538_v31 = vld [vmem:[%s11255_s9 + $0x3f4] sm:$0xf0] }
 0x89b   : > { %v7761_v30 = vor.u32 %v8538_v31, %v7760_v63  ;;  %v7836_v63 = vld [vmem:[%s11255_s9 + $0x460] sm:$0xf] }
 0x89c   : > { %4920 = vmatpush.bf16.msrb.mxu2 %v7661_v35  ;;  %v7794_v35 = vld [vmem:[%s11255_s9 + $0x420] sm:$0xf] }
 0x89d   : > { %v7795_v56 = vor.u32 %v8544_v28, %v7794_v35  ;;  %v7870_v28 = vld [vmem:[%s11255_s9 + $0x490] sm:$0xf] }
 0x89e   : > { %4839 = vmatpush.bf16.msra.mxu0 %v7619_v58  ;;  %4852 = vmatpush.bf16.msra.mxu1 %v7623_v53  ;;  %v4789_v53 = vrot.slane %v10505_v2, 2 }
 0x8a0   : > { %4921 = vmatpush.bf16.msrb.mxu2 %v7653_v25  ;;  %v8535_v25 = vld [vmem:[%s11255_s9 + $0x3e4] sm:$0xf] }
 0x8a1   : > { %v7757_v38 = vor.u32 %v8535_v25, %v7754_v39  ;;  %v8549_v25 = vld [vmem:[%s11255_s9 + $0x454] sm:$0xf]  ;;  %v7830_v39 = vld [vmem:[%s11255_s9 + $0x458] sm:$0xf0] }
 0x8a2   : > { %4840 = vmatpush.bf16.msra.mxu0 %v7611_v42  ;;  %4853 = vmatpush.bf16.msra.mxu1 %v7615_v41  ;;  %v7786_v42 = vld [vmem:[%s11255_s9 + $0x410] sm:$0xf]  ;;  %v8542_v41 = vld [vmem:[%s11255_s9 + $0x414] sm:$0xf0] }
 0x8a3   : > { %7599 = vmatmul.msk.bf16.vlgmr.msra.gmra.mxu2 %vm3208_vm1, %v4708_v32 }
 0x8a4   : > { %5012 = vmatpush.bf16.msra.mxu2 %v7723_v21 }
 0x8a5   : > { %7557 = vmatmul.msk.bf16.vlgmr.msrb.gmra.mxu0 %vm3208_vm1, %v4627_v40  ;;  %7598 = vmatmul.msk.bf16.vlgmr.msrb.gmra.mxu1 %vm3208_vm1, %v4708_v32  ;;  %v7696_v40 = vld [vmem:[%s11255_s9 + $0x388] sm:$0xf0]  ;;  %v8534_v32 = vld [vmem:[%s11255_s9 + $0x3d4] sm:$0xf0] }
 0x8a6   : > { %4931 = vmatpush.bf16.msrb.mxu0 %v7681_v13  ;;  %4999 = vmatpush.bf16.msrb.mxu1 %v7719_v5  ;;  %v7699_v52 = vor.u32 %v8523_v11, %v7696_v40  ;;  %v7787_v13 = vor.u32 %v8542_v41, %v7786_v42  ;;  %v7778_v5 = vld [vmem:[%s11255_s9 + $0x400] sm:$0xf]  ;;  %v7745_v12 = vor.u32 %v8534_v32, %v7744_v9  ;;  %v7844_v40 = vld [vmem:[%s11255_s9 + $0x470] sm:$0xf]  ;;  %v8556_v41 = vld [vmem:[%s11255_s9 + $0x484] sm:$0xf0] }
 0x8a7   : > { %v7779_v55 = vor.u32 %v8540_v48, %v7778_v5  ;;  %v7862_v42 = vld [vmem:[%s11255_s9 + $0x480] sm:$0xf]  ;;  %v7833_v9 = vor.u32 %v8549_v25, %v7830_v39  ;;  %v8548_v32 = vld [vmem:[%s11255_s9 + $0x444] sm:$0xf0]  ;;  %v7970_v5 = vld [vmem:[%s11255_s9 + $0x530] sm:$0xf] }
 0x8a8   : > { %5013 = vmatpush.bf16.msra.mxu2 %v7715_v34  ;;  %v7749_v34 = vor.u32 %v8533_v3, %v7746_v1  ;;  %v8547_v3 = vld [vmem:[%s11255_s9 + $0x444] sm:$0xf]  ;;  %v7822_v1 = vld [vmem:[%s11255_s9 + $0x448] sm:$0xf0]  ;;  %v8578_v48 = vld [vmem:[%s11255_s9 + $0x534] sm:$0xf0] }
 0x8a9   : > { %v8564_v25 = vld [vmem:[%s11255_s9 + $0x4c4] sm:$0xf0]  ;;  %v8563_v39 = vld [vmem:[%s11255_s9 + $0x4c4] sm:$0xf] }
 0x8aa   : > { %4932 = vmatpush.bf16.msrb.mxu0 %v7673_v54  ;;  %5000 = vmatpush.bf16.msrb.mxu1 %v7711_v18  ;;  %v8531_v54 = vld [vmem:[%s11255_s9 + $0x3c4] sm:$0xf]  ;;  %v7738_v18 = vld [vmem:[%s11255_s9 + $0x3c8] sm:$0xf0] }
 0x8ab   : > { %v7741_v11 = vor.u32 %v8531_v54, %v7738_v18  ;;  %v8569_v54 = vld [vmem:[%s11255_s9 + $0x4f4] sm:$0xf]  ;;  %v7930_v18 = vld [vmem:[%s11255_s9 + $0x4f8] sm:$0xf0] }
 0x8ac   : > { %5014 = vmatpush.bf16.msra.mxu2 %v7707_v59  ;;  %v7737_v59 = vor.u32 %v8532_v36, %v7736_v14  ;;  %v7928_v14 = vld [vmem:[%s11255_s9 + $0x4f0] sm:$0xf]  ;;  %v8570_v36 = vld [vmem:[%s11255_s9 + $0x4f4] sm:$0xf0] }
 0x8ae   : > { %4933 = vmatpush.bf16.msrb.mxu0 %v7665_v19  ;;  %5001 = vmatpush.bf16.msrb.mxu1 %v7703_v7  ;;  %v8554_v19 = vld [vmem:[%s11255_s9 + $0x474] sm:$0xf0]  ;;  %v8553_v7 = vld [vmem:[%s11255_s9 + $0x474] sm:$0xf] }
 0x8b0   : > { %5015 = vmatpush.bf16.msra.mxu2 %v7699_v52  ;;  %v8560_v52 = vld [vmem:[%s11255_s9 + $0x4a4] sm:$0xf0] }
 0x8b1   : > { %v7879_v35 = vor.u32 %v8560_v52, %v7878_v6  ;;  %v7922_v6 = vld [vmem:[%s11255_s9 + $0x4e8] sm:$0xf0]  ;;  %v7963_v52 = vor.u32 %v8576_v29, %v7962_v0  ;;  %v8584_v0 = vld [vmem:[%s11255_s9 + $0x564] sm:$0xf0]  ;;  %v8583_v29 = vld [vmem:[%s11255_s9 + $0x564] sm:$0xf] }
 0x8b2   : > { %v3882_v51 = vpop.f32.mrf.mxu0  ;;  %v10758_v58 = vpop.f32.mrf.mxu1  ;;  %4934 = vmatpush.bf16.msrb.mxu0 %v7657_v45  ;;  %5002 = vmatpush.bf16.msrb.mxu1 %v7695_v62  ;;  %v7845_v45 = vor.u32 %v8554_v19, %v7844_v40  ;;  %v7849_v62 = vor.u32 %v8553_v7, %v7846_v26  ;;  %v7929_v40 = vor.u32 %v8570_v36, %v7928_v14  ;;  %v7920_v7 = vld [vmem:[%s11255_s9 + $0x4e0] sm:$0xf] }
 0x8b3   : > { %7682 = vmatmul.msk.bf16.vlgmr.msrb.gmra.mxu2 %vm3208_vm1, %v4870_v47  ;;  %v7933_v19 = vor.u32 %v8569_v54, %v7930_v18  ;;  %v8004_v54 = vld [vmem:[%s11255_s9 + $0x560] sm:$0xf] }
 0x8b4   : > { %5161 = vmatpush.bf16.msrb.mxu2 %v7803_v16  ;;  %v7838_v16 = vld [vmem:[%s11255_s9 + $0x468] sm:$0xf0] }
 0x8b5   : > { %7640 = vmatmul.msk.bf16.vlgmr.msra.gmra.mxu0 %vm3208_vm1, %v4789_v53  ;;  %7641 = vmatmul.msk.bf16.vlgmr.msra.gmra.mxu1 %vm3208_vm1, %v4789_v53 }
 0x8b6   : > { %v3950_v43 = vpop.f32.mrf.mxu2  ;;  %5080 = vmatpush.bf16.msra.mxu0 %v7761_v30  ;;  %5093 = vmatpush.bf16.msra.mxu1 %v7765_v49  ;;  %v7837_v30 = vor.u32 %v8552_v15, %v7836_v63  ;;  %v7841_v49 = vor.u32 %v8551_v60, %v7838_v16  ;;  %v8566_v60 = vld [vmem:[%s11255_s9 + $0x4d4] sm:$0xf0]  ;;  %v8565_v16 = vld [vmem:[%s11255_s9 + $0x4d4] sm:$0xf] }
 0x8b7   : > { %v3951_v21 = vadd.f32 %v3950_v43, %v3882_v51  ;;  %v8558_v51 = vld [vmem:[%s11255_s9 + $0x494] sm:$0xf0] }
 0x8b8   : > { %5162 = vmatpush.bf16.msrb.mxu2 %v7795_v56  ;;  %v7871_v56 = vor.u32 %v8558_v51, %v7870_v28  ;;  %v7946_v51 = vld [vmem:[%s11255_s9 + $0x500] sm:$0xf] }
 0x8ba   : > { %v3884_v44 = vpop.f32.mrf.mxu0  ;;  %v3897_v37 = vpop.f32.mrf.mxu1  ;;  %5081 = vmatpush.bf16.msra.mxu0 %v7753_v17  ;;  %5094 = vmatpush.bf16.msra.mxu1 %v7757_v38 }
 0x8bc   : > { %5163 = vmatpush.bf16.msrb.mxu2 %v7787_v13  ;;  %v7863_v13 = vor.u32 %v8556_v41, %v7862_v42  ;;  %v8054_v41 = vld [vmem:[%s11255_s9 + $0x5b0] sm:$0xf] }
 0x8be   : > { %v3952_v46 = vpop.f32.mrf.mxu2  ;;  %5082 = vmatpush.bf16.msra.mxu0 %v7745_v12  ;;  %5095 = vmatpush.bf16.msra.mxu1 %v7749_v34  ;;  %v7825_v34 = vor.u32 %v8547_v3, %v7822_v1  ;;  %v8586_v3 = vld [vmem:[%s11255_s9 + $0x574] sm:$0xf0]  ;;  %v8585_v1 = vld [vmem:[%s11255_s9 + $0x574] sm:$0xf] }
 0x8c0   : > { %5164 = vmatpush.bf16.msrb.mxu2 %v7779_v55  ;;  %v7971_v55 = vor.u32 %v8578_v48, %v7970_v5  ;;  %v8046_v48 = vld [vmem:[%s11255_s9 + $0x5a0] sm:$0xf] }
 0x8c2   : > { %v3963_v61 = vpop.f32.mrf.mxu0  ;;  %v4030_v22 = vpop.f32.mrf.mxu1  ;;  %5083 = vmatpush.bf16.msra.mxu0 %v7737_v59  ;;  %5096 = vmatpush.bf16.msra.mxu1 %v7741_v11  ;;  %v5032_v11 = vrot.slane %v10598_v8, 3  ;;  %v8567_v8 = vld [vmem:[%s11255_s9 + $0x4e4] sm:$0xf] }
 0x8c3   : > { %v3964_v2 = vadd.f32 %v3963_v61, %v10758_v58  ;;  %v4047_v31 = vadd.f32 %v4030_v22, %v3951_v21  ;;  %7725 = vmatmul.msk.bf16.vlgmr.msra.gmra.mxu2 %vm3208_vm1, %v4951_v27  ;;  %v7820_v21 = vld [vmem:[%s11255_s9 + $0x440] sm:$0xf]  ;;  %v7954_v61 = vld [vmem:[%s11255_s9 + $0x510] sm:$0xf]  ;;  %v8574_v22 = vld [vmem:[%s11255_s9 + $0x514] sm:$0xf0] }
 0x8c4   : > { %5325 = vmatpush.bf16.msra.mxu2 %v7887_v10  ;;  %v7821_v12 = vor.u32 %v8548_v32, %v7820_v21  ;;  %v7955_v28 = vor.u32 %v8574_v22, %v7954_v61  ;;  %v8012_v32 = vld [vmem:[%s11255_s9 + $0x570] sm:$0xf]  ;;  %v8030_v22 = vld [vmem:[%s11255_s9 + $0x580] sm:$0xf] }
 0x8c5   : > { %7683 = vmatmul.msk.bf16.vlgmr.msrb.gmra.mxu0 %vm3208_vm1, %v4870_v47  ;;  %7724 = vmatmul.msk.bf16.vlgmr.msrb.gmra.mxu1 %vm3208_vm1, %v4951_v27  ;;  %v7828_v47 = vld [vmem:[%s11255_s9 + $0x450] sm:$0xf]  ;;  %v8568_v27 = vld [vmem:[%s11255_s9 + $0x4e4] sm:$0xf0]  ;;  %v8013_v14 = vor.u32 %v8586_v3, %v8012_v32 }
 0x8c6   : > { %v4043_v58 = vpop.f32.mrf.mxu2  ;;  %v10863_v53 = vpop.f32.mrf.mxu3  ;;  %5243 = vmatpush.bf16.msrb.mxu0 %v7845_v45  ;;  %5256 = vmatpush.bf16.msrb.mxu1 %v7849_v62  ;;  %v7829_v38 = vor.u32 %v8550_v23, %v7828_v47  ;;  %v7921_v63 = vor.u32 %v8568_v27, %v7920_v7  ;;  %v7904_v23 = vld [vmem:[%s11255_s9 + $0x4c0] sm:$0xf]  ;;  %v8005_v7 = vor.u32 %v8584_v0, %v8004_v54  ;;  %v8080_v0 = vld [vmem:[%s11255_s9 + $0x5d0] sm:$0xf] }
 0x8c7   : > { %v4048_v20 = vadd.f32 %v4043_v58, %v3964_v2  ;;  %v7925_v2 = vor.u32 %v8567_v8, %v7922_v6  ;;  %v8572_v58 = vld [vmem:[%s11255_s9 + $0x504] sm:$0xf0]  ;;  %v8582_v8 = vld [vmem:[%s11255_s9 + $0x554] sm:$0xf0]  ;;  %v8581_v6 = vld [vmem:[%s11255_s9 + $0x554] sm:$0xf] }
 0x8c8   : > { %5326 = vmatpush.bf16.msra.mxu2 %v7879_v35  ;;  %v7914_v35 = vld [vmem:[%s11255_s9 + $0x4d8] sm:$0xf0]  ;;  %v7947_v42 = vor.u32 %v8572_v58, %v7946_v51  ;;  %v8138_v58 = vld [vmem:[%s11255_s9 + $0x630] sm:$0xf] }
 0x8ca   : > { %v3965_v43 = vpop.f32.mrf.mxu0  ;;  %v4032_v17 = vpop.f32.mrf.mxu1  ;;  %5244 = vmatpush.bf16.msrb.mxu0 %v7837_v30  ;;  %5257 = vmatpush.bf16.msrb.mxu1 %v7841_v49 }
 0x8cb   : > { %v8594_v43 = vld [vmem:[%s11255_s9 + $0x5b4] sm:$0xf0] }
 0x8cc   : > { %5327 = vmatpush.bf16.msra.mxu2 %v7871_v56  ;;  %v7906_v56 = vld [vmem:[%s11255_s9 + $0x4c8] sm:$0xf0]  ;;  %v8055_v5 = vor.u32 %v8594_v43, %v8054_v41  ;;  %v8130_v43 = vld [vmem:[%s11255_s9 + $0x620] sm:$0xf] }
 0x8cd   : > { %v7909_v21 = vor.u32 %v8563_v39, %v7906_v56  ;;  %v8602_v39 = vld [vmem:[%s11255_s9 + $0x5f4] sm:$0xf0]  ;;  %v8601_v56 = vld [vmem:[%s11255_s9 + $0x5f4] sm:$0xf] }
 0x8ce   : > { %v4045_v44 = vpop.f32.mrf.mxu2  ;;  %v5181_v37 = vpop.f32.mrf.mxu3  ;;  %5245 = vmatpush.bf16.msrb.mxu0 %v7829_v38  ;;  %5258 = vmatpush.bf16.msrb.mxu1 %v7833_v9  ;;  %v7905_v9 = vor.u32 %v8564_v25, %v7904_v23  ;;  %v8096_v25 = vld [vmem:[%s11255_s9 + $0x5f0] sm:$0xf] }
 0x8cf   : > { %v8592_v44 = vld [vmem:[%s11255_s9 + $0x5a4] sm:$0xf0]  ;;  %v8097_v32 = vor.u32 %v8602_v39, %v8096_v25 }
 0x8d0   : > { %5328 = vmatpush.bf16.msra.mxu2 %v7863_v13  ;;  %v8014_v13 = vld [vmem:[%s11255_s9 + $0x578] sm:$0xf0] }
 0x8d1   : > { %v8017_v36 = vor.u32 %v8585_v1, %v8014_v13  ;;  %v8088_v1 = vld [vmem:[%s11255_s9 + $0x5e0] sm:$0xf] }
 0x8d2   : > { %v4111_v46 = vpop.f32.mrf.mxu0  ;;  %v4124_v59 = vpop.f32.mrf.mxu1  ;;  %5246 = vmatpush.bf16.msrb.mxu0 %v7821_v12  ;;  %5259 = vmatpush.bf16.msrb.mxu1 %v7825_v34  ;;  %v10999_v34 = vshrl.u32 %v10098_v24, 16 }
 0x8d3   : > { %v4128_v26 = vadd.f32 %v4111_v46, %v4047_v31  ;;  %v4129_v10 = vadd.f32 %v4124_v59, %v4048_v20  ;;  %7808 = vmatmul.msk.bf16.vlgmr.msrb.gmra.mxu2 %vm3208_vm1, %v10098_v24  ;;  %v7912_v31 = vld [vmem:[%s11255_s9 + $0x4d0] sm:$0xf]  ;;  %v7917_v20 = vor.u32 %v8565_v16, %v7914_v35  ;;  %v8006_v46 = vld [vmem:[%s11255_s9 + $0x568] sm:$0xf0]  ;;  %v8047_v59 = vor.u32 %v8592_v44, %v8046_v48  ;;  %v8580_v16 = vld [vmem:[%s11255_s9 + $0x544] sm:$0xf0] }
 0x8d4   : > { %5487 = vmatpush.bf16.msrb.mxu2 %v7971_v55  ;;  %v7913_v47 = vor.u32 %v8566_v60, %v7912_v31  ;;  %v7988_v60 = vld [vmem:[%s11255_s9 + $0x540] sm:$0xf]  ;;  %v8579_v35 = vld [vmem:[%s11255_s9 + $0x544] sm:$0xf]  ;;  %v8600_v48 = vld [vmem:[%s11255_s9 + $0x5e4] sm:$0xf0] }
 0x8d5   : > { %7766 = vmatmul.msk.bf16.vlgmr.msra.gmra.mxu0 %vm3208_vm1, %v5032_v11  ;;  %7767 = vmatmul.msk.bf16.vlgmr.msra.gmra.mxu1 %vm3208_vm1, %v5032_v11  ;;  %v8590_v11 = vld [vmem:[%s11255_s9 + $0x594] sm:$0xf0]  ;;  %v8599_v44 = vld [vmem:[%s11255_s9 + $0x5e4] sm:$0xf] }
 0x8d6   : > { %v4192_v45 = vpop.f32.mrf.mxu2  ;;  %v10942_v62 = vpop.f32.mrf.mxu3  ;;  %5406 = vmatpush.bf16.msra.mxu0 %v7929_v40  ;;  %5419 = vmatpush.bf16.msra.mxu1 %v7933_v19 }
 0x8d7   : > { %v4209_v15 = vadd.f32 %v4192_v45, %v4128_v26  ;;  %v8009_v26 = vor.u32 %v8583_v29, %v8006_v46  ;;  %v8588_v45 = vld [vmem:[%s11255_s9 + $0x584] sm:$0xf0]  ;;  %v8598_v46 = vld [vmem:[%s11255_s9 + $0x5d4] sm:$0xf0] }
 0x8d8   : > { %5488 = vmatpush.bf16.msrb.mxu2 %v7963_v52  ;;  %v7998_v52 = vld [vmem:[%s11255_s9 + $0x558] sm:$0xf0]  ;;  %v8031_v51 = vor.u32 %v8588_v45, %v8030_v22  ;;  %v8074_v22 = vld [vmem:[%s11255_s9 + $0x5c8] sm:$0xf0] }
 0x8da   : > { %v4113_v30 = vpop.f32.mrf.mxu0  ;;  %v4126_v49 = vpop.f32.mrf.mxu1  ;;  %5407 = vmatpush.bf16.msra.mxu0 %v7921_v63  ;;  %5420 = vmatpush.bf16.msra.mxu1 %v7925_v2 }
 0x8db   : > { %v8610_v30 = vld [vmem:[%s11255_s9 + $0x634] sm:$0xf0] }
 0x8dc   : > { %5489 = vmatpush.bf16.msrb.mxu2 %v7955_v28  ;;  %v7990_v28 = vld [vmem:[%s11255_s9 + $0x548] sm:$0xf0]  ;;  %v8139_v41 = vor.u32 %v8610_v30, %v8138_v58 }
 0x8dd   : > { %v7993_v23 = vor.u32 %v8579_v35, %v7990_v28 }
 0x8de   : > { %v4194_v17 = vpop.f32.mrf.mxu2  ;;  %v5345_v38 = vpop.f32.mrf.mxu3  ;;  %5408 = vmatpush.bf16.msra.mxu0 %v7913_v47  ;;  %5421 = vmatpush.bf16.msra.mxu1 %v7917_v20  ;;  %v7989_v20 = vor.u32 %v8580_v16, %v7988_v60 }
 0x8df   : > { %v8608_v17 = vld [vmem:[%s11255_s9 + $0x624] sm:$0xf0] }
 0x8e0   : > { %5490 = vmatpush.bf16.msrb.mxu2 %v7947_v42  ;;  %v8098_v42 = vld [vmem:[%s11255_s9 + $0x5f8] sm:$0xf0] }
 0x8e1   : > { %v8101_v3 = vor.u32 %v8601_v56, %v8098_v42 }
 0x8e2   : > { %v4205_v37 = vpop.f32.mrf.mxu0  ;;  %v4273_v12 = vpop.f32.mrf.mxu1  ;;  %5409 = vmatpush.bf16.msra.mxu0 %v7905_v9  ;;  %5422 = vmatpush.bf16.msra.mxu1 %v7909_v21  ;;  %v5358_v21 = vrot.slane %v10999_v34, 1 }
 0x8e3   : > { %v4210_v18 = vadd.f32 %v4205_v37, %v4129_v10  ;;  %v4290_v55 = vadd.f32 %v4273_v12, %v4209_v15  ;;  %7892 = vmatmul.msk.bf16.vlgmr.msra.gmra.mxu2 %vm3208_vm1, %v5277_v4  ;;  %v8038_v4 = vld [vmem:[%s11255_s9 + $0x590] sm:$0xf]  ;;  %v8001_v15 = vor.u32 %v8581_v6, %v7998_v52  ;;  %v8090_v37 = vld [vmem:[%s11255_s9 + $0x5e8] sm:$0xf0]  ;;  %v8131_v12 = vor.u32 %v8608_v17, %v8130_v43  ;;  %v8072_v6 = vld [vmem:[%s11255_s9 + $0x5c0] sm:$0xf] }
 0x8e4   : > { %5649 = vmatpush.bf16.msra.mxu2 %v8055_v5  ;;  %v7996_v10 = vld [vmem:[%s11255_s9 + $0x550] sm:$0xf]  ;;  %v8039_v61 = vor.u32 %v8590_v11, %v8038_v4  ;;  %v8082_v4 = vld [vmem:[%s11255_s9 + $0x5d8] sm:$0xf0]  ;;  %v8596_v52 = vld [vmem:[%s11255_s9 + $0x5c4] sm:$0xf0] }
 0x8e5   : > { %7850 = vmatmul.msk.bf16.vlgmr.msrb.gmra.mxu0 %vm3208_vm1, %v10999_v34  ;;  %7851 = vmatmul.msk.bf16.vlgmr.msrb.gmra.mxu1 %vm3208_vm1, %v10999_v34  ;;  %v7997_v31 = vor.u32 %v8582_v8, %v7996_v10 }
 0x8e6   : > { %v4286_v40 = vpop.f32.mrf.mxu2  ;;  %v11026_v19 = vpop.f32.mrf.mxu3  ;;  %5568 = vmatpush.bf16.msrb.mxu0 %v8013_v14  ;;  %5581 = vmatpush.bf16.msrb.mxu1 %v8017_v36  ;;  %v8606_v14 = vld [vmem:[%s11255_s9 + $0x614] sm:$0xf0] }
 0x8e7   : > { %v4291_v27 = vadd.f32 %v4286_v40, %v4210_v18  ;;  %v8089_v18 = vor.u32 %v8600_v48, %v8088_v1  ;;  %v8114_v40 = vld [vmem:[%s11255_s9 + $0x600] sm:$0xf] }
 0x8e8   : > { %5650 = vmatpush.bf16.msra.mxu2 %v8047_v59  ;;  %v8597_v59 = vld [vmem:[%s11255_s9 + $0x5d4] sm:$0xf] }
 0x8e9   : > { %v8085_v8 = vor.u32 %v8597_v59, %v8082_v4 }
 0x8ea   : > { %v4207_v63 = vpop.f32.mrf.mxu0  ;;  %v4275_v2 = vpop.f32.mrf.mxu1  ;;  %5569 = vmatpush.bf16.msrb.mxu0 %v8005_v7  ;;  %5582 = vmatpush.bf16.msrb.mxu1 %v8009_v26  ;;  %v8604_v7 = vld [vmem:[%s11255_s9 + $0x604] sm:$0xf0] }
 0x8eb   : > { %v8115_v45 = vor.u32 %v8604_v7, %v8114_v40 }
 0x8ec   : > { %5651 = vmatpush.bf16.msra.mxu2 %v8039_v61  ;;  %v8595_v61 = vld [vmem:[%s11255_s9 + $0x5c4] sm:$0xf] }
 0x8ee   : > { %v4288_v49 = vpop.f32.mrf.mxu2  ;;  %v5507_v47 = vpop.f32.mrf.mxu3  ;;  %5570 = vmatpush.bf16.msrb.mxu0 %v7997_v31  ;;  %5583 = vmatpush.bf16.msrb.mxu1 %v8001_v15  ;;  %v8073_v31 = vor.u32 %v8596_v52, %v8072_v6  ;;  %v8077_v15 = vor.u32 %v8595_v61, %v8074_v22  ;;  %v8626_v61 = vld [vmem:[%s11257_s11 + $0x78] sm:$0xff] }
 0x8ef   : > { %v8618_v22 = vld [vmem:[%s11257_s11 + $0x38] sm:$0xff] }
 0x8f0   : > { %5652 = vmatpush.bf16.msra.mxu2 %v8031_v51  ;;  %v5520_v51 = vrot.slane %v10999_v34, 2 }
 0x8f2   : > { %v4354_v38 = vpop.f32.mrf.mxu0  ;;  %v4367_v9 = vpop.f32.mrf.mxu1  ;;  %5571 = vmatpush.bf16.msrb.mxu0 %v7989_v20  ;;  %5584 = vmatpush.bf16.msrb.mxu1 %v7993_v23 }
 0x8f3   : > { %v4371_v13 = vadd.f32 %v4354_v38, %v4290_v55  ;;  %v4372_v5 = vadd.f32 %v4367_v9, %v4291_v27  ;;  %7976 = vmatmul.msk.bf16.vlgmr.msrb.gmra.mxu2 %vm3208_vm1, %v5439_v57  ;;  %v8122_v57 = vld [vmem:[%s11255_s9 + $0x610] sm:$0xf]  ;;  %v8093_v55 = vor.u32 %v8599_v44, %v8090_v37  ;;  %v8081_v27 = vor.u32 %v8598_v46, %v8080_v0 }
 0x8f4   : > { %5811 = vmatpush.bf16.msrb.mxu2 %v8139_v41  ;;  %v8123_v11 = vor.u32 %v8606_v14, %v8122_v57 }
 0x8f5   : > { %7934 = vmatmul.msk.bf16.vlgmr.msra.gmra.mxu0 %vm3208_vm1, %v5358_v21  ;;  %7935 = vmatmul.msk.bf16.vlgmr.msra.gmra.mxu1 %vm3208_vm1, %v5358_v21 }
 0x8f6   : > { %v4435_v36 = vpop.f32.mrf.mxu2  ;;  %v11106_v54 = vpop.f32.mrf.mxu3  ;;  %5730 = vmatpush.bf16.msra.mxu0 %v8097_v32  ;;  %5743 = vmatpush.bf16.msra.mxu1 %v8101_v3 }
 0x8f7   : > { %v4452_v29 = vadd.f32 %v4435_v36, %v4371_v13 }
 0x8f8   : > { %5812 = vmatpush.bf16.msrb.mxu2 %v8131_v12 }
 0x8fa   : > { %v4356_v26 = vpop.f32.mrf.mxu0  ;;  %v4369_v10 = vpop.f32.mrf.mxu1  ;;  %5731 = vmatpush.bf16.msra.mxu0 %v8089_v18  ;;  %5744 = vmatpush.bf16.msra.mxu1 %v8093_v55 }
 0x8fc   : > { %5813 = vmatpush.bf16.msrb.mxu2 %v8123_v11 }
 0x8fe   : > { %v4437_v63 = vpop.f32.mrf.mxu2  ;;  %v5669_v2 = vpop.f32.mrf.mxu3  ;;  %5732 = vmatpush.bf16.msra.mxu0 %v8081_v27  ;;  %5745 = vmatpush.bf16.msra.mxu1 %v8085_v8 }
 0x8ff   : > { %v8625_v2 = vld [vmem:[%s11257_s11 + $0x70] sm:$0xff] }
 0x900   : > { %5814 = vmatpush.bf16.msrb.mxu2 %v8115_v45 }
 0x902   : > { %v4448_v60 = vpop.f32.mrf.mxu0  ;;  %v4516_v16 = vpop.f32.mrf.mxu1  ;;  %5733 = vmatpush.bf16.msra.mxu0 %v8073_v31  ;;  %5746 = vmatpush.bf16.msra.mxu1 %v8077_v15  ;;  %v8617_v31 = vld [vmem:[%s11257_s11 + $0x30] sm:$0xff] }
 0x903   : > { %v4453_v35 = vadd.f32 %v4448_v60, %v4372_v5  ;;  %v4533_v28 = vadd.f32 %v4516_v16, %v4452_v29  ;;  %8060 = vmatmul.msk.bf16.vlgmr.msra.gmra.mxu2 %vm3208_vm1, %v5601_v33  ;;  %v5682_v33 = vrot.slane %v10999_v34, 3  ;;  %v8624_v60 = vld [vmem:[%s11257_s11 + $0x68] sm:$0xff] }
 0x904   : > { %v8616_v16 = vld [vmem:[%s11257_s11 + $0x28] sm:$0xff] }
 0x905   : > { %8018 = vmatmul.msk.bf16.vlgmr.msrb.gmra.mxu0 %vm3208_vm1, %v5520_v51  ;;  %8019 = vmatmul.msk.bf16.vlgmr.msrb.gmra.mxu1 %vm3208_vm1, %v5520_v51  ;;  %v8623_v51 = vld [vmem:[%s11257_s11 + $0x60] sm:$0xff] }
 0x906   : > { %v4529_v58 = vpop.f32.mrf.mxu2  ;;  %v11144_v30 = vpop.f32.mrf.mxu3  ;;  %6000 = vmatpush.bf16.msrb.mxu1 %v8626_v61  ;;  %5987 = vmatpush.bf16.msrb.mxu0 %v8618_v22  ;;  %v5851_v22 = vlaneseq }
 0x907   : > { %v4534_v49 = vadd.f32 %v4529_v58, %v4453_v35  ;;  %v8615_v58 = vld [vmem:[%s11257_s11 + $0x20] sm:$0xff] }
 0x908   : > { %vm5853_vm3 = vcmp.lt.s32.totalorder %v5851_v22, 256 }
 0x90a   : > { %v4450_v47 = vpop.f32.mrf.mxu0  ;;  %v4518_v20 = vpop.f32.mrf.mxu1  ;;  %6001 = vmatpush.bf16.msrb.mxu1 %v8625_v2  ;;  %5988 = vmatpush.bf16.msrb.mxu0 %v8617_v31 }
 0x90b   : > { %v8622_v47 = vld [vmem:[%s11257_s11 + $0x58] sm:$0xff] }
 0x90c   : > { %v8614_v20 = vld [vmem:[%s11257_s11 + $0x18] sm:$0xff] }
 0x90e   : > { %v4531_v23 = vpop.f32.mrf.mxu2  ;;  %v5831_v25 = vpop.f32.mrf.mxu3  ;;  %6002 = vmatpush.bf16.msrb.mxu1 %v8624_v60  ;;  %5989 = vmatpush.bf16.msrb.mxu0 %v8616_v16 }
 0x912   : > { %v4598_v39 = vpop.f32.mrf.mxu0  ;;  %v4611_v56 = vpop.f32.mrf.mxu1  ;;  %6003 = vmatpush.bf16.msrb.mxu1 %v8623_v51  ;;  %5990 = vmatpush.bf16.msrb.mxu0 %v8615_v58  ;;  %v5890_v51 = vld [vmem:[%s11258_s12] sm:$0x1] }
 0x913   : > { %v4615_v42 = vadd.f32 %v4598_v39, %v4533_v28  ;;  %v4616_v24 = vadd.f32 %v4611_v56, %v4534_v49  ;;  %8144 = vmatmul.msk.bf16.vlgmr.msrb.gmra.mxu2 %vm3208_vm1, %v10507_v50 }
 0x915   : > { %8102 = vmatmul.msk.bf16.vlgmr.msra.gmra.mxu0 %vm3208_vm1, %v5682_v33  ;;  %8103 = vmatmul.msk.bf16.vlgmr.msra.gmra.mxu1 %vm3208_vm1, %v5682_v33 }
 0x916   : > { %v4680_v41 = vpop.f32.mrf.mxu2  ;;  %6004 = vmatpush.bf16.msrb.mxu1 %v8622_v47  ;;  %5991 = vmatpush.bf16.msrb.mxu0 %v8614_v20 }
 0x917   : > { %v4697_v43 = vadd.f32 %v4680_v41, %v4615_v42 }
 0x91a   : > { %v4600_v17 = vpop.f32.mrf.mxu0  ;;  %v4613_v38 = vpop.f32.mrf.mxu1 }
 0x91b   : > { %v8613_v17 = vld [vmem:[%s11257_s11 + $0x10] sm:$0xff] }
 0x91c   : > { %5992 = vmatpush.bf16.msrb.mxu0 %v8613_v17 }
 0x91e   : > { %v4682_v9 = vpop.f32.mrf.mxu2 }
 0x91f   : > { %v8620_v9 = vld [vmem:[%s11257_s11 + $0x48] sm:$0xff] }
 0x922   : > { %v4693_v21 = vpop.f32.mrf.mxu0  ;;  %v4761_v32 = vpop.f32.mrf.mxu1 }
 0x923   : > { %v4698_v3 = vadd.f32 %v4693_v21, %v4616_v24  ;;  %v4778_v1 = vadd.f32 %v4761_v32, %v4697_v43  ;;  %v8621_v43 = vld [vmem:[%s11257_s11 + $0x50] sm:$0xff]  ;;  %v8612_v21 = vld [vmem:[%s11257_s11 + $0x8] sm:$0xff] }
 0x924   : > { %6005 = vmatpush.bf16.msrb.mxu1 %v8621_v43  ;;  %5993 = vmatpush.bf16.msrb.mxu0 %v8612_v21 }
 0x926   : > { %v4774_v13 = vpop.f32.mrf.mxu2 }
 0x927   : > { %v4779_v5 = vadd.f32 %v4774_v13, %v4698_v3  ;;  %v8611_v13 = vld [vmem:[%s11257_s11] sm:$0xff] }
 0x928   : > { %6006 = vmatpush.bf16.msrb.mxu1 %v8620_v9  ;;  %5994 = vmatpush.bf16.msrb.mxu0 %v8611_v13 }
 0x92a   : > { %v4695_v48 = vpop.f32.mrf.mxu0  ;;  %v4763_v44 = vpop.f32.mrf.mxu1 }
 0x92e   : > { %v4776_v50 = vpop.f32.mrf.mxu2 }
 0x932   : > { %v4842_v37 = vpop.f32.mrf.mxu0  ;;  %v4855_v34 = vpop.f32.mrf.mxu1 }
 0x933   : > { %v4859_v12 = vadd.f32 %v4842_v37, %v4778_v1  ;;  %v4860_v57 = vadd.f32 %v4855_v34, %v4779_v5  ;;  %v8619_v1 = vld [vmem:[%s11257_s11 + $0x40] sm:$0xff] }
 0x934   : > { %6007 = vmatpush.bf16.msrb.mxu1 %v8619_v1 }
 0x936   : > { %v4923_v14 = vpop.f32.mrf.mxu2 }
 0x937   : > { %v4940_v36 = vadd.f32 %v4923_v14, %v4859_v12 }
 0x93a   : > { %v4844_v18 = vpop.f32.mrf.mxu0  ;;  %v4857_v55 = vpop.f32.mrf.mxu1 }
 0x93e   : > { %v4925_v0 = vpop.f32.mrf.mxu2 }
 0x942   : > { %v4936_v29 = vpop.f32.mrf.mxu0  ;;  %v5004_v46 = vpop.f32.mrf.mxu1 }
 0x943   : > { %v5021_v59 = vadd.f32 %v5004_v46, %v4940_v36  ;;  %v4941_v56 = vadd.f32 %v4936_v29, %v4860_v57 }
 0x946   : > { %v5017_v4 = vpop.f32.mrf.mxu2 }
 0x947   : > { %v5022_v42 = vadd.f32 %v5017_v4, %v4941_v56 }
 0x94a   : > { %v4938_v11 = vpop.f32.mrf.mxu0  ;;  %v5006_v40 = vpop.f32.mrf.mxu1 }
 0x94e   : > { %v5019_v7 = vpop.f32.mrf.mxu2 }
 0x952   : > { %v5085_v26 = vpop.f32.mrf.mxu0  ;;  %v5098_v10 = vpop.f32.mrf.mxu1 }
 0x953   : > { %v5103_v41 = vadd.f32 %v5098_v10, %v5022_v42  ;;  %v5102_v44 = vadd.f32 %v5085_v26, %v5021_v59 }
 0x955   : > { %v5184_v32 = vadd.f32 %v10863_v53, %v5103_v41 }
 0x956   : > { %v5166_v27 = vpop.f32.mrf.mxu2 }
 0x957   : > { %v5183_v53 = vadd.f32 %v5166_v27, %v5102_v44 }
 0x95a   : > { %v5087_v8 = vpop.f32.mrf.mxu0  ;;  %v5100_v6 = vpop.f32.mrf.mxu1 }
 0x95e   : > { %v5168_v52 = vpop.f32.mrf.mxu2 }
 0x962   : > { %v5248_v45 = vpop.f32.mrf.mxu0  ;;  %v5261_v63 = vpop.f32.mrf.mxu1 }
 0x963   : > { %v5266_v3 = vadd.f32 %v5261_v63, %v5184_v32  ;;  %v5265_v12 = vadd.f32 %v5248_v45, %v5183_v53 }
 0x965   : > { %v5348_v50 = vadd.f32 %v10942_v62, %v5266_v3  ;;  %v5835_v62 = vld [vmem:[%s11256_s10] sm:$0x3] }
 0x966   : > { %v5330_v15 = vpop.f32.mrf.mxu2  ;;  %v5838_v10 = vperm.slane %v5835_v62, 1  ;;  %v5837_v8 = vperm.slane %v5835_v62, 0 }
 0x967   : > { %v5347_v36 = vadd.f32 %v5330_v15, %v5265_v12 }
 0x96a   : > { %v5250_v35 = vpop.f32.mrf.mxu0  ;;  %v5263_v28 = vpop.f32.mrf.mxu1 }
 0x96e   : > { %v5332_v49 = vpop.f32.mrf.mxu2 }
 0x972   : > { %v5411_v23 = vpop.f32.mrf.mxu0  ;;  %v5424_v25 = vpop.f32.mrf.mxu1 }
 0x973   : > { %v5429_v34 = vadd.f32 %v5424_v25, %v5348_v50  ;;  %v5428_v55 = vadd.f32 %v5411_v23, %v5347_v36 }
 0x975   : > { %v5510_v18 = vadd.f32 %v11026_v19, %v5429_v34 }
 0x976   : > { %v5492_v39 = vpop.f32.mrf.mxu2 }
 0x977   : > { %v5509_v46 = vadd.f32 %v5492_v39, %v5428_v55 }
 0x97a   : > { %v5413_v24 = vpop.f32.mrf.mxu0  ;;  %v5426_v33 = vpop.f32.mrf.mxu1 }
 0x97e   : > { %v5494_v38 = vpop.f32.mrf.mxu2 }
 0x982   : > { %v5573_v5 = vpop.f32.mrf.mxu0  ;;  %v5586_v48 = vpop.f32.mrf.mxu1 }
 0x983   : > { %v5591_v0 = vadd.f32 %v5586_v48, %v5510_v18  ;;  %v5590_v59 = vadd.f32 %v5573_v5, %v5509_v46 }
 0x985   : > { %v5672_v4 = vadd.f32 %v11106_v54, %v5591_v0 }
 0x986   : > { %v5654_v37 = vpop.f32.mrf.mxu2 }
 0x987   : > { %v5671_v7 = vadd.f32 %v5654_v37, %v5590_v59 }
 0x98a   : > { %v5575_v57 = vpop.f32.mrf.mxu0  ;;  %v5588_v14 = vpop.f32.mrf.mxu1 }
 0x98e   : > { %v5656_v29 = vpop.f32.mrf.mxu2 }
 0x992   : > { %v5735_v11 = vpop.f32.mrf.mxu0  ;;  %v5748_v40 = vpop.f32.mrf.mxu1 }
 0x993   : > { %v5753_v26 = vadd.f32 %v5748_v40, %v5672_v4  ;;  %v5752_v27 = vadd.f32 %v5735_v11, %v5671_v7 }
 0x995   : > { %v5834_v19 = vadd.f32 %v11144_v30, %v5753_v26 }
 0x996   : > { %v5816_v6 = vpop.f32.mrf.mxu2 }
 0x997   : > { %v5842_v52 = vadd.f32 %v5838_v10, %v5834_v19  ;;  %v5833_v61 = vadd.f32 %v5816_v6, %v5752_v27 }
 0x999   : > { %v5844_v45 = vmax.f32 %v5842_v52, 0.0  ;;  %v5841_v63 = vadd.f32 %v5837_v8, %v5833_v61 }
 0x99a   : > { %v5737_v54 = vpop.f32.mrf.mxu0  ;;  %v5750_v2 = vpop.f32.mrf.mxu1 }
 0x99b   : > { %v5847_v31 = vrot.slane %v5844_v45, 7  ;;  %v5857_v15 = vpack.c.bf16 %v5844_v45, %v5844_v45  ;;  %v5843_v30 = vmax.f32 %v5841_v63, 0.0 }
 0x99d   : > { %v5849_v60 = vsel %vm5848_vm2, %v5843_v30, %v5847_v31  ;;  %v5856_v16 = vpack.c.bf16 %v5843_v30, %v5843_v30  ;;  %6008 = vmatmul.bf16.vlgmr.msrb.gmra.mxu1 %v5857_v15 }
 0x99e   : > { %5855 = vst.msk [vmem:[%s475_s16] sm:$0x3] %vm5853_vm3, %v5849_v60  ;;  %v5818_v35 = vpop.f32.mrf.mxu2 }
 0x99f   : > { %5995 = vmatmul.bf16.vlgmr.msrb.gmra.mxu0 %v5856_v16 }
 0xa1a   : > { %v6009_v28 = vpop.f32.mrf.mxu1 }
 0xa1c   : > { %v5996_v58 = vpop.f32.mrf.mxu0 }
 0xa1d   : > { %v5997_v49 = vadd.f32 %v5996_v58, %v5890_v51 }
 0xa1f   : > { %v6010_v47 = vadd.f32 %v6009_v28, %v5997_v49 }
 0xa21   : > { %6013 = vst [vmem:[%s466_s15] sm:$0x1] %v6010_v47 }
 0xa22   : > { %v6011_v20 = vpop.f32.mrf.mxu1 }
 0xa23   : > { %8705 = shalt.err (!%p8702_p3)
}
 0xa24   : > { %8635 = dma.vmem_to_hbm [thread:$0]  (%p8855_p5), %s6033_s27, 16, %s6035_s28, %s6019_s19   ;;  %v5998_v23 = vpop.f32.mrf.mxu0 }
 0xa25 PF: > { %s11275_s26 = sld [smem:[#allocation7_spill]] }
 0xa26   : > { %s11276_s21 = sld [smem:[#allocation5_spill]] }
 0xa2b   : > { %p8641_p4 = scmp.ge.s32.totalorder %s11275_s26, 2 }
 0xa2c   : > { %s6053_s15 = sand.u32 1, %s11276_s21  }
 0xa2d   : > { %p8638_p7 = pnand %p8641_p4, %p8859_p6  ;;  %s6054_s29 = scalar_lea.sflag [#allocation3], %s6053_s15 }
 0xa2f   : > { %p8639_p8 = pneg %p8638_p7 }
 0xa31   : > { %8723 = dma.done.wait (%p8639_p8), %s6054_s29, 16  }
 0xa32   : > { %8725 = vsyncadd (%p8639_p8), %s6054_s29, 4294967280  ;;  %s11278_s16 = sld [smem:[#allocation8_spill]]  ;;  %s11281_s29 = smov %s8732_s30 }
 0xa33   : > { %s11279_s18 = sld [smem:[#allocation6_spill]] }
 0xa34   : > { %s11280_s15 = sld [smem:[#allocation9_spill]] }
 0xa38   : > { %p25_p9 = scmp.ge.s32.totalorder %s11278_s16, 4  }
 0xa39   : > { %s11282_s30 = smov %s11279_s18 }
 0xa3a   :  { %27 = sbr.rel (!%p25_p9) target bundleno = 3 (0x3), region = 166 }
 0xa3f   :  { %6059 = vsyncpa [#allocation3], 1 }
 0xa40   :  { %6061 = vsyncpa [#allocation3 + $0x1], 1 }

</bundles_post_ra>
